<compile_context>
chip_gen: v5e
topology: v5e:2x2
jax: 0.10.0
libtpu: 0.0.40
codegen_flags: <defaults>
</compile_context>

<pallas_src>
import jax
import jax.numpy as jnp
from jax.experimental import pallas as pl
from jax.experimental.pallas import tpu as pltpu


# ----------------------------------------------------------------------------- utils
def _round_up(x, m):
    return (x + m - 1) // m * m


def _pick_tile(dim, align, tmax):
    """Return (tile, padded_dim) with tile a multiple of `align`, <= tmax."""
    d = _round_up(dim, align)
    if d <= tmax:
        return d, d
    return tmax, _round_up(d, tmax)


# ----------------------------------------------------------------------------- fused MXU kernel
def _make_fused_mm_kernel(relu: bool, has_res: bool):
    """matmul (bf16 operands, f32 acc) + BN scale/shift (+residual) + ReLU epilogue."""

    def kernel(a_ref, b_ref, sc_ref, sh_ref, *rest):
        if has_res:
            res_ref, o_ref, acc_ref = rest
        else:
            o_ref, acc_ref = rest

        k = pl.program_id(2)

        @pl.when(k == 0)
        def _init():
            acc_ref[...] = jnp.zeros_like(acc_ref)

        acc_ref[...] += jnp.dot(a_ref[...], b_ref[...],
                                preferred_element_type=jnp.float32)

        @pl.when(k == pl.num_programs(2) - 1)
        def _epilogue():
            y = acc_ref[...] * sc_ref[...] + sh_ref[...]
            if has_res:
                y = y + res_ref[...].astype(jnp.float32)
            if relu:
                y = jnp.maximum(y, 0.0)
            o_ref[...] = y.astype(o_ref.dtype)

    return kernel


def fused_matmul_bn_act(a, b, scale, shift, residual=None, relu=True,
                        out_dtype=jnp.float32,
                        tm_max=512, tn_max=256, tk_max=1536):
    """out = act((a @ b) * scale + shift [+ residual]); a:(M,K), b:(K,N)."""
    M, K = a.shape
    _, N = b.shape
    tm, Mp = _pick_tile(M, 8, tm_max)
    tn, Np = _pick_tile(N, 128, tn_max)
    tk, Kp = _pick_tile(K, 128, tk_max)

    a_p = jnp.pad(a.astype(jnp.bfloat16), ((0, Mp - M), (0, Kp - K)))
    b_p = jnp.pad(b.astype(jnp.bfloat16), ((0, Kp - K), (0, Np - N)))
    sc = jnp.pad(scale.astype(jnp.float32), (0, Np - N)).reshape(1, Np)
    sh = jnp.pad(shift.astype(jnp.float32), (0, Np - N)).reshape(1, Np)

    in_specs = [
        pl.BlockSpec((tm, tk), lambda i, j, k: (i, k)),
        pl.BlockSpec((tk, tn), lambda i, j, k: (k, j)),
        pl.BlockSpec((1, tn), lambda i, j, k: (0, j)),
        pl.BlockSpec((1, tn), lambda i, j, k: (0, j)),
    ]
    args = [a_p, b_p, sc, sh]
    if residual is not None:
        r_p = jnp.pad(residual, ((0, Mp - M), (0, Np - N)))
        in_specs.append(pl.BlockSpec((tm, tn), lambda i, j, k: (i, j)))
        args.append(r_p)

    out = pl.pallas_call(
        _make_fused_mm_kernel(relu=relu, has_res=residual is not None),
        out_shape=jax.ShapeDtypeStruct((Mp, Np), out_dtype),
        grid=(Mp // tm, Np // tn, Kp // tk),
        in_specs=in_specs,
        out_specs=pl.BlockSpec((tm, tn), lambda i, j, k: (i, j)),
        scratch_shapes=[pltpu.VMEM((tm, tn), jnp.float32)],
        compiler_params=pltpu.CompilerParams(
            dimension_semantics=("parallel", "parallel", "arbitrary")),
    )(*args)
    return out[:M, :N]


# ----------------------------------------------------------------------------- fused GAP + FC + ReLU head
def _gap_fc_relu_kernel(x_ref, w_ref, b_ref, o_ref):
    # x_ref: (HW, N, C) -> mean over HW -> (N, C) -> Linear -> ReLU
    feat = jnp.mean(x_ref[...].astype(jnp.float32), axis=0)
    y = jnp.dot(feat, w_ref[...], preferred_element_type=jnp.float32) + b_ref[...]
    o_ref[...] = jnp.maximum(y, 0.0)


def gap_fc_relu(x, fc):
    """AdaptiveAvgPool2d((1,1)) + flatten + Linear + ReLU, all in one kernel."""
    N, H, W, C = x.shape
    w, b = fc["w"], fc["b"]                         # (out, in), (out,)
    O = w.shape[0]
    Np, Cp, Op = _round_up(N, 8), _round_up(C, 128), _round_up(O, 128)

    xt = jnp.transpose(x.astype(jnp.float32), (1, 2, 0, 3)).reshape(H * W, N, C)
    xt = jnp.pad(xt, ((0, 0), (0, Np - N), (0, Cp - C)))
    wm = jnp.pad(w.T.astype(jnp.float32), ((0, Cp - C), (0, Op - O)))
    bp = jnp.pad(b.astype(jnp.float32), (0, Op - O)).reshape(1, Op)

    out = pl.pallas_call(
        _gap_fc_relu_kernel,
        out_shape=jax.ShapeDtypeStruct((Np, Op), jnp.float32),
    )(xt, wm, bp)
    return out[:N, :O]


# ----------------------------------------------------------------------------- conv (im2col) + fused BN/act
def _bn_scale_shift(bn, eps=1e-5):
    scale = bn["gamma"] * jax.lax.rsqrt(bn["var"] + eps)
    shift = bn["beta"] - bn["mean"] * scale
    return scale, shift


def conv_bn_act(x, w, bn, stride, padding, relu=True, residual=None):
    """Conv2d (PyTorch weight layout (Cout,Cin,kh,kw), no bias) + BN (+res) + ReLU."""
    N, H, W, Cin = x.shape
    Cout, _, kh, kw = w.shape
    Ho = (H + 2 * padding - kh) // stride + 1
    Wo = (W + 2 * padding - kw) // stride + 1

    xb = x.astype(jnp.bfloat16)
    xp = jnp.pad(xb, ((0, 0), (padding, padding), (padding, padding), (0, 0)))
    patches = [xp[:, ki:ki + stride * Ho:stride, kj:kj + stride * Wo:stride, :]
               for ki in range(kh) for kj in range(kw)]
    a = jnp.stack(patches, axis=3).reshape(N * Ho * Wo, kh * kw * Cin)      # im2col
    wm = jnp.transpose(w, (2, 3, 1, 0)).reshape(kh * kw * Cin, Cout).astype(jnp.bfloat16)

    scale, shift = _bn_scale_shift(bn)
    res = None if residual is None else residual.reshape(N * Ho * Wo, Cout)
    out = fused_matmul_bn_act(a, wm, scale, shift, residual=res, relu=relu,
                              out_dtype=jnp.bfloat16)
    return out.reshape(N, Ho, Wo, Cout)


# ----------------------------------------------------------------------------- maxpool (XLA-fused tree reduction)
def maxpool3x3_s2(x):
    """nn.MaxPool2d(kernel_size=3, stride=2, padding=1) on NHWC.
    Fused jnp tree-reduction over the 9 taps: no 9x stacked HBM copy."""
    N, H, W, C = x.shape
    Ho = (H + 2 - 3) // 2 + 1
    Wo = (W + 2 - 3) // 2 + 1
    xp = jnp.pad(x, ((0, 0), (1, 1), (1, 1), (0, 0)), constant_values=-jnp.inf)
    out = None
    for ki in range(3):
        for kj in range(3):
            win = xp[:, ki:ki + 2 * Ho:2, kj:kj + 2 * Wo:2, :]
            out = win if out is None else jnp.maximum(out, win)
    return out


# ----------------------------------------------------------------------------- model
def basic_block(x, p):
    identity = x
    h = conv_bn_act(x, p["conv1_w"], p["bn1"], stride=p["stride"], padding=1, relu=True)
    if p["down"] is not None:
        identity = conv_bn_act(x, p["down"]["w"], p["down"]["bn"],
                               stride=p["stride"], padding=0, relu=False)
    # conv2 + bn2 + residual add + relu all fused in the matmul epilogue
    return conv_bn_act(h, p["conv2_w"], p["bn2"], stride=1, padding=1,
                       relu=True, residual=identity)


def rgbd_perception_net(params, x_nchw):
    x = jnp.transpose(x_nchw, (0, 2, 3, 1)).astype(jnp.float32)      # NCHW -> NHWC
    x = conv_bn_act(x, params["conv1_w"], params["norm1"],
                    stride=2, padding=3, relu=True)                   # 7x7 s2 + BN + ReLU
    x = maxpool3x3_s2(x)
    for blocks in params["layers"]:
        for blk in blocks:
            x = basic_block(x, blk)
    return gap_fc_relu(x, params["fc"])                               # GAP + Linear + ReLU


# ----------------------------------------------------------------------------- deterministic init
def _conv_init(key, cout, cin, k):
    fan_in = cin * k * k
    return jax.random.normal(key, (cout, cin, k, k), jnp.float32) * (2.0 / fan_in) ** 0.5


def _bn_init(key, c):
    k1, k2 = jax.random.split(key)
    return dict(
        gamma=1.0 + 0.1 * jax.random.normal(k1, (c,), jnp.float32),
        beta=0.1 * jax.random.normal(k2, (c,), jnp.float32),
        mean=jnp.zeros((c,), jnp.float32),
        var=jnp.ones((c,), jnp.float32),
    )


def _basic_block_init(key, in_planes, planes, stride):
    ks = jax.random.split(key, 6)
    p = dict(
        stride=stride,
        conv1_w=_conv_init(ks[0], planes, in_planes, 3),
        bn1=_bn_init(ks[1], planes),
        conv2_w=_conv_init(ks[2], planes, planes, 3),
        bn2=_bn_init(ks[3], planes),
        down=None,
    )
    if stride != 1 or in_planes != planes:  # BasicBlock.expansion == 1
        p["down"] = dict(w=_conv_init(ks[4], planes, in_planes, 1),
                         bn=_bn_init(ks[5], planes))
    return p


def init_params(key, in_ch, base_planes, layer_sizes, out_dim):
    keys = jax.random.split(key, 3 + len(layer_sizes))
    params = dict(
        conv1_w=_conv_init(keys[0], base_planes, in_ch, 7),
        norm1=_bn_init(keys[1], base_planes),
    )
    in_planes = base_planes
    layers = []
    for li, count in enumerate(layer_sizes):
        planes = base_planes * (2 ** li)
        stride = 1 if li == 0 else 2
        bkeys = jax.random.split(keys[2 + li], count)
        blocks = []
        for bi in range(count):
            s = stride if bi == 0 else 1
            blocks.append(_basic_block_init(bkeys[bi], in_planes, planes, s))
            in_planes = planes
        layers.append(blocks)
    params["layers"] = layers
    kfc = jax.random.split(keys[-1], 2)
    params["fc"] = dict(
        w=jax.random.normal(kfc[0], (out_dim, in_planes), jnp.float32) * (1.0 / in_planes) ** 0.5,
        b=0.01 * jax.random.normal(kfc[1], (out_dim,), jnp.float32),
    )
    return params


# ----------------------------------------------------------------------------- main
if __name__ == "__main__":
    key = jax.random.PRNGKey(0)
    kx, kp = jax.random.split(key)

    # Small RGBD input, NCHW like PyTorch: batch=2, channels=4 (RGB+D), 32x32 spatial.
    x = jax.random.normal(kx, (2, 4, 32, 32), jnp.float32)

    # Tiny ResNet config: layer_sizes=[1,1,1,1], base_planes=16, BasicBlock, out_dim=32.
    params = init_params(kp, in_ch=4, base_planes=16, layer_sizes=(1, 1, 1, 1), out_dim=32)

    # jit with params closed over (so stride / None stay static Python values);
    # XLA fuses the im2col / maxpool glue around the Pallas calls.
    fwd = jax.jit(lambda xin: rgbd_perception_net(params, xin))

    out = fwd(x)
    out = jax.block_until_ready(out)

    assert out.shape == (2, 32), out.shape
    assert bool(jnp.all(jnp.isfinite(out)))
    assert bool(jnp.all(out >= 0.0))   # final ReLU
    print("KERNEL_OK")
</pallas_src>

<mosaic_0001>
module attributes {stable_mosaic.version = 11 : i64} {
  func.func @kernel(%arg0: i32, %arg1: i32, %arg2: i32, %arg3: memref<512x256xbf16, #tpu.memory_space<vmem>>, %arg4: memref<256x128xbf16, #tpu.memory_space<vmem>>, %arg5: memref<1x128xf32, #tpu.memory_space<vmem>>, %arg6: memref<1x128xf32, #tpu.memory_space<vmem>>, %arg7: memref<512x128xbf16, #tpu.memory_space<vmem>>, %arg8: memref<512x128xf32, #tpu.memory_space<vmem>>) attributes {dimension_semantics = [#tpu.dimension_semantics<parallel>, #tpu.dimension_semantics<parallel>, #tpu.dimension_semantics<arbitrary>], iteration_bounds = array<i64: 1, 1, 1>, scalar_prefetch = 0 : i64, scratch_operands = 1 : i64, tpu.core_type = #tpu.core_type<tc>, window_params = [{transform_indices = @transform_0, window_bounds = array<i64: 512, 256>}, {transform_indices = @transform_1, window_bounds = array<i64: 256, 128>}, {transform_indices = @transform_2, window_bounds = array<i64: 1, 128>}, {transform_indices = @transform_3, window_bounds = array<i64: 1, 128>}, {transform_indices = @transform_4, window_bounds = array<i64: 512, 128>}]} {
    %c0_i32 = arith.constant 0 : i32
    %0 = arith.cmpi eq, %arg2, %c0_i32 : i32
    %1 = arith.extui %0 : i1 to i32
    %c0_i32_0 = arith.constant 0 : i32
    %2 = arith.cmpi ne, %1, %c0_i32_0 : i32
    scf.if %2 {
      %cst_10 = arith.constant 0.000000e+00 : f32
      %12 = vector.broadcast %cst_10 : f32 to vector<512x128xf32>
      %c0_11 = arith.constant 0 : index
      %c0_12 = arith.constant 0 : index
      %13 = vector.load %arg8[%c0_11, %c0_12] : memref<512x128xf32, #tpu.memory_space<vmem>>, vector<512x128xf32>
      tpu.vector_store %arg8[%c0_11, %c0_12], %12 {strides = array<i32>} : memref<512x128xf32, #tpu.memory_space<vmem>>, vector<512x128xf32>,
    } else {
    }
    %c0 = arith.constant 0 : index
    %c0_1 = arith.constant 0 : index
    %3 = vector.load %arg8[%c0, %c0_1] : memref<512x128xf32, #tpu.memory_space<vmem>>, vector<512x128xf32>
    %c0_2 = arith.constant 0 : index
    %c0_3 = arith.constant 0 : index
    %4 = vector.load %arg3[%c0_2, %c0_3] : memref<512x256xbf16, #tpu.memory_space<vmem>>, vector<512x256xbf16>
    %c0_4 = arith.constant 0 : index
    %c0_5 = arith.constant 0 : index
    %5 = vector.load %arg4[%c0_4, %c0_5] : memref<256x128xbf16, #tpu.memory_space<vmem>>, vector<256x128xbf16>
    %cst = arith.constant dense<0.000000e+00> : vector<512x128xf32>
    %6 = tpu.matmul %4, %5, %cst {dimension_numbers = #tpu.dot_dimension_numbers<[1], [0], [0], [1], [0, 0, 1, 1], [], []>} : vector<512x256xbf16>, vector<256x128xbf16>, vector<512x128xf32> -> vector<512x128xf32>
    %7 = arith.addf %3, %6 : vector<512x128xf32>
    %c0_6 = arith.constant 0 : index
    %c0_7 = arith.constant 0 : index
    %8 = vector.load %arg8[%c0_6, %c0_7] : memref<512x128xf32, #tpu.memory_space<vmem>>, vector<512x128xf32>
    tpu.vector_store %arg8[%c0_6, %c0_7], %7 {strides = array<i32>} : memref<512x128xf32, #tpu.memory_space<vmem>>, vector<512x128xf32>,
    %c0_i32_8 = arith.constant 0 : i32
    %9 = arith.cmpi eq, %arg2, %c0_i32_8 : i32
    %10 = arith.extui %9 : i1 to i32
    %c0_i32_9 = arith.constant 0 : i32
    %11 = arith.cmpi ne, %10, %c0_i32_9 : i32
    scf.if %11 {
      %c0_10 = arith.constant 0 : index
      %c0_11 = arith.constant 0 : index
      %12 = vector.load %arg8[%c0_10, %c0_11] : memref<512x128xf32, #tpu.memory_space<vmem>>, vector<512x128xf32>
      %c0_12 = arith.constant 0 : index
      %c0_13 = arith.constant 0 : index
      %13 = vector.load %arg5[%c0_12, %c0_13] : memref<1x128xf32, #tpu.memory_space<vmem>>, vector<1x128xf32>
      %14 = vector.broadcast %13 : vector<1x128xf32> to vector<512x128xf32>
      %15 = arith.mulf %12, %14 : vector<512x128xf32>
      %c0_14 = arith.constant 0 : index
      %c0_15 = arith.constant 0 : index
      %16 = vector.load %arg6[%c0_14, %c0_15] : memref<1x128xf32, #tpu.memory_space<vmem>>, vector<1x128xf32>
      %17 = vector.broadcast %16 : vector<1x128xf32> to vector<512x128xf32>
      %18 = arith.addf %15, %17 : vector<512x128xf32>
      %cst_16 = arith.constant 0.000000e+00 : f32
      %19 = vector.broadcast %cst_16 : f32 to vector<512x128xf32>
      %20 = arith.maximumf %18, %19 : vector<512x128xf32>
      %21 = arith.truncf %20 : vector<512x128xf32> to vector<512x128xbf16>
      %c0_17 = arith.constant 0 : index
      %c0_18 = arith.constant 0 : index
      %22 = vector.load %arg7[%c0_17, %c0_18] : memref<512x128xbf16, #tpu.memory_space<vmem>>, vector<512x128xbf16>
      tpu.vector_store %arg7[%c0_17, %c0_18], %21 {strides = array<i32>} : memref<512x128xbf16, #tpu.memory_space<vmem>>, vector<512x128xbf16>,
    } else {
    }
    return
  }
  func.func @transform_0(%arg0: i32, %arg1: i32, %arg2: i32) -> (i32, i32) {
    %c0_i32 = arith.constant 0 : i32
    return %arg0, %arg2 : i32, i32
  }
  func.func @transform_1(%arg0: i32, %arg1: i32, %arg2: i32) -> (i32, i32) {
    %c0_i32 = arith.constant 0 : i32
    return %arg2, %arg1 : i32, i32
  }
  func.func @transform_2(%arg0: i32, %arg1: i32, %arg2: i32) -> (i32, i32) {
    %c0_i32 = arith.constant 0 : i32
    %c0_i32_0 = arith.constant 0 : i32
    return %c0_i32, %arg1 : i32, i32
  }
  func.func @transform_3(%arg0: i32, %arg1: i32, %arg2: i32) -> (i32, i32) {
    %c0_i32 = arith.constant 0 : i32
    %c0_i32_0 = arith.constant 0 : i32
    return %c0_i32, %arg1 : i32, i32
  }
  func.func @transform_4(%arg0: i32, %arg1: i32, %arg2: i32) -> (i32, i32) {
    %c0_i32 = arith.constant 0 : i32
    return %arg0, %arg1 : i32, i32
  }
}

module attributes {stable_mosaic.version = 11 : i64} {
  func.func @kernel(%arg0: i32, %arg1: i32, %arg2: i32, %arg3: memref<128x256xbf16, #tpu.memory_space<vmem>>, %arg4: memref<256x128xbf16, #tpu.memory_space<vmem>>, %arg5: memref<1x128xf32, #tpu.memory_space<vmem>>, %arg6: memref<1x128xf32, #tpu.memory_space<vmem>>, %arg7: memref<128x128xbf16, #tpu.memory_space<vmem>>, %arg8: memref<128x128xf32, #tpu.memory_space<vmem>>) attributes {dimension_semantics = [#tpu.dimension_semantics<parallel>, #tpu.dimension_semantics<parallel>, #tpu.dimension_semantics<arbitrary>], iteration_bounds = array<i64: 1, 1, 1>, scalar_prefetch = 0 : i64, scratch_operands = 1 : i64, tpu.core_type = #tpu.core_type<tc>, window_params = [{transform_indices = @transform_0, window_bounds = array<i64: 128, 256>}, {transform_indices = @transform_1, window_bounds = array<i64: 256, 128>}, {transform_indices = @transform_2, window_bounds = array<i64: 1, 128>}, {transform_indices = @transform_3, window_bounds = array<i64: 1, 128>}, {transform_indices = @transform_4, window_bounds = array<i64: 128, 128>}]} {
    %c0_i32 = arith.constant 0 : i32
    %0 = arith.cmpi eq, %arg2, %c0_i32 : i32
    %1 = arith.extui %0 : i1 to i32
    %c0_i32_0 = arith.constant 0 : i32
    %2 = arith.cmpi ne, %1, %c0_i32_0 : i32
    scf.if %2 {
      %cst_10 = arith.constant 0.000000e+00 : f32
      %12 = vector.broadcast %cst_10 : f32 to vector<128x128xf32>
      %c0_11 = arith.constant 0 : index
      %c0_12 = arith.constant 0 : index
      %13 = vector.load %arg8[%c0_11, %c0_12] : memref<128x128xf32, #tpu.memory_space<vmem>>, vector<128x128xf32>
      tpu.vector_store %arg8[%c0_11, %c0_12], %12 {strides = array<i32>} : memref<128x128xf32, #tpu.memory_space<vmem>>, vector<128x128xf32>,
    } else {
    }
    %c0 = arith.constant 0 : index
    %c0_1 = arith.constant 0 : index
    %3 = vector.load %arg8[%c0, %c0_1] : memref<128x128xf32, #tpu.memory_space<vmem>>, vector<128x128xf32>
    %c0_2 = arith.constant 0 : index
    %c0_3 = arith.constant 0 : index
    %4 = vector.load %arg3[%c0_2, %c0_3] : memref<128x256xbf16, #tpu.memory_space<vmem>>, vector<128x256xbf16>
    %c0_4 = arith.constant 0 : index
    %c0_5 = arith.constant 0 : index
    %5 = vector.load %arg4[%c0_4, %c0_5] : memref<256x128xbf16, #tpu.memory_space<vmem>>, vector<256x128xbf16>
    %cst = arith.constant dense<0.000000e+00> : vector<128x128xf32>
    %6 = tpu.matmul %4, %5, %cst {dimension_numbers = #tpu.dot_dimension_numbers<[1], [0], [0], [1], [0, 0, 1, 1], [], []>} : vector<128x256xbf16>, vector<256x128xbf16>, vector<128x128xf32> -> vector<128x128xf32>
    %7 = arith.addf %3, %6 : vector<128x128xf32>
    %c0_6 = arith.constant 0 : index
    %c0_7 = arith.constant 0 : index
    %8 = vector.load %arg8[%c0_6, %c0_7] : memref<128x128xf32, #tpu.memory_space<vmem>>, vector<128x128xf32>
    tpu.vector_store %arg8[%c0_6, %c0_7], %7 {strides = array<i32>} : memref<128x128xf32, #tpu.memory_space<vmem>>, vector<128x128xf32>,
    %c0_i32_8 = arith.constant 0 : i32
    %9 = arith.cmpi eq, %arg2, %c0_i32_8 : i32
    %10 = arith.extui %9 : i1 to i32
    %c0_i32_9 = arith.constant 0 : i32
    %11 = arith.cmpi ne, %10, %c0_i32_9 : i32
    scf.if %11 {
      %c0_10 = arith.constant 0 : index
      %c0_11 = arith.constant 0 : index
      %12 = vector.load %arg8[%c0_10, %c0_11] : memref<128x128xf32, #tpu.memory_space<vmem>>, vector<128x128xf32>
      %c0_12 = arith.constant 0 : index
      %c0_13 = arith.constant 0 : index
      %13 = vector.load %arg5[%c0_12, %c0_13] : memref<1x128xf32, #tpu.memory_space<vmem>>, vector<1x128xf32>
      %14 = vector.broadcast %13 : vector<1x128xf32> to vector<128x128xf32>
      %15 = arith.mulf %12, %14 : vector<128x128xf32>
      %c0_14 = arith.constant 0 : index
      %c0_15 = arith.constant 0 : index
      %16 = vector.load %arg6[%c0_14, %c0_15] : memref<1x128xf32, #tpu.memory_space<vmem>>, vector<1x128xf32>
      %17 = vector.broadcast %16 : vector<1x128xf32> to vector<128x128xf32>
      %18 = arith.addf %15, %17 : vector<128x128xf32>
      %cst_16 = arith.constant 0.000000e+00 : f32
      %19 = vector.broadcast %cst_16 : f32 to vector<128x128xf32>
      %20 = arith.maximumf %18, %19 : vector<128x128xf32>
      %21 = arith.truncf %20 : vector<128x128xf32> to vector<128x128xbf16>
      %c0_17 = arith.constant 0 : index
      %c0_18 = arith.constant 0 : index
      %22 = vector.load %arg7[%c0_17, %c0_18] : memref<128x128xbf16, #tpu.memory_space<vmem>>, vector<128x128xbf16>
      tpu.vector_store %arg7[%c0_17, %c0_18], %21 {strides = array<i32>} : memref<128x128xbf16, #tpu.memory_space<vmem>>, vector<128x128xbf16>,
    } else {
    }
    return
  }
  func.func @transform_0(%arg0: i32, %arg1: i32, %arg2: i32) -> (i32, i32) {
    %c0_i32 = arith.constant 0 : i32
    return %arg0, %arg2 : i32, i32
  }
  func.func @transform_1(%arg0: i32, %arg1: i32, %arg2: i32) -> (i32, i32) {
    %c0_i32 = arith.constant 0 : i32
    return %arg2, %arg1 : i32, i32
  }
  func.func @transform_2(%arg0: i32, %arg1: i32, %arg2: i32) -> (i32, i32) {
    %c0_i32 = arith.constant 0 : i32
    %c0_i32_0 = arith.constant 0 : i32
    return %c0_i32, %arg1 : i32, i32
  }
  func.func @transform_3(%arg0: i32, %arg1: i32, %arg2: i32) -> (i32, i32) {
    %c0_i32 = arith.constant 0 : i32
    %c0_i32_0 = arith.constant 0 : i32
    return %c0_i32, %arg1 : i32, i32
  }
  func.func @transform_4(%arg0: i32, %arg1: i32, %arg2: i32) -> (i32, i32) {
    %c0_i32 = arith.constant 0 : i32
    return %arg0, %arg1 : i32, i32
  }
}

module attributes {stable_mosaic.version = 11 : i64} {
  func.func @kernel(%arg0: i32, %arg1: i32, %arg2: i32, %arg3: memref<128x256xbf16, #tpu.memory_space<vmem>>, %arg4: memref<256x128xbf16, #tpu.memory_space<vmem>>, %arg5: memref<1x128xf32, #tpu.memory_space<vmem>>, %arg6: memref<1x128xf32, #tpu.memory_space<vmem>>, %arg7: memref<128x128xbf16, #tpu.memory_space<vmem>>, %arg8: memref<128x128xbf16, #tpu.memory_space<vmem>>, %arg9: memref<128x128xf32, #tpu.memory_space<vmem>>) attributes {dimension_semantics = [#tpu.dimension_semantics<parallel>, #tpu.dimension_semantics<parallel>, #tpu.dimension_semantics<arbitrary>], iteration_bounds = array<i64: 1, 1, 1>, scalar_prefetch = 0 : i64, scratch_operands = 1 : i64, tpu.core_type = #tpu.core_type<tc>, window_params = [{transform_indices = @transform_0, window_bounds = array<i64: 128, 256>}, {transform_indices = @transform_1, window_bounds = array<i64: 256, 128>}, {transform_indices = @transform_2, window_bounds = array<i64: 1, 128>}, {transform_indices = @transform_3, window_bounds = array<i64: 1, 128>}, {transform_indices = @transform_4, window_bounds = array<i64: 128, 128>}, {transform_indices = @transform_5, window_bounds = array<i64: 128, 128>}]} {
    %c0_i32 = arith.constant 0 : i32
    %0 = arith.cmpi eq, %arg2, %c0_i32 : i32
    %1 = arith.extui %0 : i1 to i32
    %c0_i32_0 = arith.constant 0 : i32
    %2 = arith.cmpi ne, %1, %c0_i32_0 : i32
    scf.if %2 {
      %cst_10 = arith.constant 0.000000e+00 : f32
      %12 = vector.broadcast %cst_10 : f32 to vector<128x128xf32>
      %c0_11 = arith.constant 0 : index
      %c0_12 = arith.constant 0 : index
      %13 = vector.load %arg9[%c0_11, %c0_12] : memref<128x128xf32, #tpu.memory_space<vmem>>, vector<128x128xf32>
      tpu.vector_store %arg9[%c0_11, %c0_12], %12 {strides = array<i32>} : memref<128x128xf32, #tpu.memory_space<vmem>>, vector<128x128xf32>,
    } else {
    }
    %c0 = arith.constant 0 : index
    %c0_1 = arith.constant 0 : index
    %3 = vector.load %arg9[%c0, %c0_1] : memref<128x128xf32, #tpu.memory_space<vmem>>, vector<128x128xf32>
    %c0_2 = arith.constant 0 : index
    %c0_3 = arith.constant 0 : index
    %4 = vector.load %arg3[%c0_2, %c0_3] : memref<128x256xbf16, #tpu.memory_space<vmem>>, vector<128x256xbf16>
    %c0_4 = arith.constant 0 : index
    %c0_5 = arith.constant 0 : index
    %5 = vector.load %arg4[%c0_4, %c0_5] : memref<256x128xbf16, #tpu.memory_space<vmem>>, vector<256x128xbf16>
    %cst = arith.constant dense<0.000000e+00> : vector<128x128xf32>
    %6 = tpu.matmul %4, %5, %cst {dimension_numbers = #tpu.dot_dimension_numbers<[1], [0], [0], [1], [0, 0, 1, 1], [], []>} : vector<128x256xbf16>, vector<256x128xbf16>, vector<128x128xf32> -> vector<128x128xf32>
    %7 = arith.addf %3, %6 : vector<128x128xf32>
    %c0_6 = arith.constant 0 : index
    %c0_7 = arith.constant 0 : index
    %8 = vector.load %arg9[%c0_6, %c0_7] : memref<128x128xf32, #tpu.memory_space<vmem>>, vector<128x128xf32>
    tpu.vector_store %arg9[%c0_6, %c0_7], %7 {strides = array<i32>} : memref<128x128xf32, #tpu.memory_space<vmem>>, vector<128x128xf32>,
    %c0_i32_8 = arith.constant 0 : i32
    %9 = arith.cmpi eq, %arg2, %c0_i32_8 : i32
    %10 = arith.extui %9 : i1 to i32
    %c0_i32_9 = arith.constant 0 : i32
    %11 = arith.cmpi ne, %10, %c0_i32_9 : i32
    scf.if %11 {
      %c0_10 = arith.constant 0 : index
      %c0_11 = arith.constant 0 : index
      %12 = vector.load %arg9[%c0_10, %c0_11] : memref<128x128xf32, #tpu.memory_space<vmem>>, vector<128x128xf32>
      %c0_12 = arith.constant 0 : index
      %c0_13 = arith.constant 0 : index
      %13 = vector.load %arg5[%c0_12, %c0_13] : memref<1x128xf32, #tpu.memory_space<vmem>>, vector<1x128xf32>
      %14 = vector.broadcast %13 : vector<1x128xf32> to vector<128x128xf32>
      %15 = arith.mulf %12, %14 : vector<128x128xf32>
      %c0_14 = arith.constant 0 : index
      %c0_15 = arith.constant 0 : index
      %16 = vector.load %arg6[%c0_14, %c0_15] : memref<1x128xf32, #tpu.memory_space<vmem>>, vector<1x128xf32>
      %17 = vector.broadcast %16 : vector<1x128xf32> to vector<128x128xf32>
      %18 = arith.addf %15, %17 : vector<128x128xf32>
      %c0_16 = arith.constant 0 : index
      %c0_17 = arith.constant 0 : index
      %19 = vector.load %arg7[%c0_16, %c0_17] : memref<128x128xbf16, #tpu.memory_space<vmem>>, vector<128x128xbf16>
      %20 = arith.extf %19 : vector<128x128xbf16> to vector<128x128xf32>
      %21 = arith.addf %18, %20 : vector<128x128xf32>
      %cst_18 = arith.constant 0.000000e+00 : f32
      %22 = vector.broadcast %cst_18 : f32 to vector<128x128xf32>
      %23 = arith.maximumf %21, %22 : vector<128x128xf32>
      %24 = arith.truncf %23 : vector<128x128xf32> to vector<128x128xbf16>
      %c0_19 = arith.constant 0 : index
      %c0_20 = arith.constant 0 : index
      %25 = vector.load %arg8[%c0_19, %c0_20] : memref<128x128xbf16, #tpu.memory_space<vmem>>, vector<128x128xbf16>
      tpu.vector_store %arg8[%c0_19, %c0_20], %24 {strides = array<i32>} : memref<128x128xbf16, #tpu.memory_space<vmem>>, vector<128x128xbf16>,
    } else {
    }
    return
  }
  func.func @transform_0(%arg0: i32, %arg1: i32, %arg2: i32) -> (i32, i32) {
    %c0_i32 = arith.constant 0 : i32
    return %arg0, %arg2 : i32, i32
  }
  func.func @transform_1(%arg0: i32, %arg1: i32, %arg2: i32) -> (i32, i32) {
    %c0_i32 = arith.constant 0 : i32
    return %arg2, %arg1 : i32, i32
  }
  func.func @transform_2(%arg0: i32, %arg1: i32, %arg2: i32) -> (i32, i32) {
    %c0_i32 = arith.constant 0 : i32
    %c0_i32_0 = arith.constant 0 : i32
    return %c0_i32, %arg1 : i32, i32
  }
  func.func @transform_3(%arg0: i32, %arg1: i32, %arg2: i32) -> (i32, i32) {
    %c0_i32 = arith.constant 0 : i32
    %c0_i32_0 = arith.constant 0 : i32
    return %c0_i32, %arg1 : i32, i32
  }
  func.func @transform_4(%arg0: i32, %arg1: i32, %arg2: i32) -> (i32, i32) {
    %c0_i32 = arith.constant 0 : i32
    return %arg0, %arg1 : i32, i32
  }
  func.func @transform_5(%arg0: i32, %arg1: i32, %arg2: i32) -> (i32, i32) {
    %c0_i32 = arith.constant 0 : i32
    return %arg0, %arg1 : i32, i32
  }
}

module attributes {stable_mosaic.version = 11 : i64} {
  func.func @kernel(%arg0: i32, %arg1: i32, %arg2: i32, %arg3: memref<32x256xbf16, #tpu.memory_space<vmem>>, %arg4: memref<256x128xbf16, #tpu.memory_space<vmem>>, %arg5: memref<1x128xf32, #tpu.memory_space<vmem>>, %arg6: memref<1x128xf32, #tpu.memory_space<vmem>>, %arg7: memref<32x128xbf16, #tpu.memory_space<vmem>>, %arg8: memref<32x128xf32, #tpu.memory_space<vmem>>) attributes {dimension_semantics = [#tpu.dimension_semantics<parallel>, #tpu.dimension_semantics<parallel>, #tpu.dimension_semantics<arbitrary>], iteration_bounds = array<i64: 1, 1, 1>, scalar_prefetch = 0 : i64, scratch_operands = 1 : i64, tpu.core_type = #tpu.core_type<tc>, window_params = [{transform_indices = @transform_0, window_bounds = array<i64: 32, 256>}, {transform_indices = @transform_1, window_bounds = array<i64: 256, 128>}, {transform_indices = @transform_2, window_bounds = array<i64: 1, 128>}, {transform_indices = @transform_3, window_bounds = array<i64: 1, 128>}, {transform_indices = @transform_4, window_bounds = array<i64: 32, 128>}]} {
    %c0_i32 = arith.constant 0 : i32
    %0 = arith.cmpi eq, %arg2, %c0_i32 : i32
    %1 = arith.extui %0 : i1 to i32
    %c0_i32_0 = arith.constant 0 : i32
    %2 = arith.cmpi ne, %1, %c0_i32_0 : i32
    scf.if %2 {
      %cst_10 = arith.constant 0.000000e+00 : f32
      %12 = vector.broadcast %cst_10 : f32 to vector<32x128xf32>
      %c0_11 = arith.constant 0 : index
      %c0_12 = arith.constant 0 : index
      %13 = vector.load %arg8[%c0_11, %c0_12] : memref<32x128xf32, #tpu.memory_space<vmem>>, vector<32x128xf32>
      tpu.vector_store %arg8[%c0_11, %c0_12], %12 {strides = array<i32>} : memref<32x128xf32, #tpu.memory_space<vmem>>, vector<32x128xf32>,
    } else {
    }
    %c0 = arith.constant 0 : index
    %c0_1 = arith.constant 0 : index
    %3 = vector.load %arg8[%c0, %c0_1] : memref<32x128xf32, #tpu.memory_space<vmem>>, vector<32x128xf32>
    %c0_2 = arith.constant 0 : index
    %c0_3 = arith.constant 0 : index
    %4 = vector.load %arg3[%c0_2, %c0_3] : memref<32x256xbf16, #tpu.memory_space<vmem>>, vector<32x256xbf16>
    %c0_4 = arith.constant 0 : index
    %c0_5 = arith.constant 0 : index
    %5 = vector.load %arg4[%c0_4, %c0_5] : memref<256x128xbf16, #tpu.memory_space<vmem>>, vector<256x128xbf16>
    %cst = arith.constant dense<0.000000e+00> : vector<32x128xf32>
    %6 = tpu.matmul %4, %5, %cst {dimension_numbers = #tpu.dot_dimension_numbers<[1], [0], [0], [1], [0, 0, 1, 1], [], []>} : vector<32x256xbf16>, vector<256x128xbf16>, vector<32x128xf32> -> vector<32x128xf32>
    %7 = arith.addf %3, %6 : vector<32x128xf32>
    %c0_6 = arith.constant 0 : index
    %c0_7 = arith.constant 0 : index
    %8 = vector.load %arg8[%c0_6, %c0_7] : memref<32x128xf32, #tpu.memory_space<vmem>>, vector<32x128xf32>
    tpu.vector_store %arg8[%c0_6, %c0_7], %7 {strides = array<i32>} : memref<32x128xf32, #tpu.memory_space<vmem>>, vector<32x128xf32>,
    %c0_i32_8 = arith.constant 0 : i32
    %9 = arith.cmpi eq, %arg2, %c0_i32_8 : i32
    %10 = arith.extui %9 : i1 to i32
    %c0_i32_9 = arith.constant 0 : i32
    %11 = arith.cmpi ne, %10, %c0_i32_9 : i32
    scf.if %11 {
      %c0_10 = arith.constant 0 : index
      %c0_11 = arith.constant 0 : index
      %12 = vector.load %arg8[%c0_10, %c0_11] : memref<32x128xf32, #tpu.memory_space<vmem>>, vector<32x128xf32>
      %c0_12 = arith.constant 0 : index
      %c0_13 = arith.constant 0 : index
      %13 = vector.load %arg5[%c0_12, %c0_13] : memref<1x128xf32, #tpu.memory_space<vmem>>, vector<1x128xf32>
      %14 = vector.broadcast %13 : vector<1x128xf32> to vector<32x128xf32>
      %15 = arith.mulf %12, %14 : vector<32x128xf32>
      %c0_14 = arith.constant 0 : index
      %c0_15 = arith.constant 0 : index
      %16 = vector.load %arg6[%c0_14, %c0_15] : memref<1x128xf32, #tpu.memory_space<vmem>>, vector<1x128xf32>
      %17 = vector.broadcast %16 : vector<1x128xf32> to vector<32x128xf32>
      %18 = arith.addf %15, %17 : vector<32x128xf32>
      %cst_16 = arith.constant 0.000000e+00 : f32
      %19 = vector.broadcast %cst_16 : f32 to vector<32x128xf32>
      %20 = arith.maximumf %18, %19 : vector<32x128xf32>
      %21 = arith.truncf %20 : vector<32x128xf32> to vector<32x128xbf16>
      %c0_17 = arith.constant 0 : index
      %c0_18 = arith.constant 0 : index
      %22 = vector.load %arg7[%c0_17, %c0_18] : memref<32x128xbf16, #tpu.memory_space<vmem>>, vector<32x128xbf16>
      tpu.vector_store %arg7[%c0_17, %c0_18], %21 {strides = array<i32>} : memref<32x128xbf16, #tpu.memory_space<vmem>>, vector<32x128xbf16>,
    } else {
    }
    return
  }
  func.func @transform_0(%arg0: i32, %arg1: i32, %arg2: i32) -> (i32, i32) {
    %c0_i32 = arith.constant 0 : i32
    return %arg0, %arg2 : i32, i32
  }
  func.func @transform_1(%arg0: i32, %arg1: i32, %arg2: i32) -> (i32, i32) {
    %c0_i32 = arith.constant 0 : i32
    return %arg2, %arg1 : i32, i32
  }
  func.func @transform_2(%arg0: i32, %arg1: i32, %arg2: i32) -> (i32, i32) {
    %c0_i32 = arith.constant 0 : i32
    %c0_i32_0 = arith.constant 0 : i32
    return %c0_i32, %arg1 : i32, i32
  }
  func.func @transform_3(%arg0: i32, %arg1: i32, %arg2: i32) -> (i32, i32) {
    %c0_i32 = arith.constant 0 : i32
    %c0_i32_0 = arith.constant 0 : i32
    return %c0_i32, %arg1 : i32, i32
  }
  func.func @transform_4(%arg0: i32, %arg1: i32, %arg2: i32) -> (i32, i32) {
    %c0_i32 = arith.constant 0 : i32
    return %arg0, %arg1 : i32, i32
  }
}

module attributes {stable_mosaic.version = 11 : i64} {
  func.func @kernel(%arg0: i32, %arg1: i32, %arg2: i32, %arg3: memref<32x128xbf16, #tpu.memory_space<vmem>>, %arg4: memref<128x128xbf16, #tpu.memory_space<vmem>>, %arg5: memref<1x128xf32, #tpu.memory_space<vmem>>, %arg6: memref<1x128xf32, #tpu.memory_space<vmem>>, %arg7: memref<32x128xbf16, #tpu.memory_space<vmem>>, %arg8: memref<32x128xf32, #tpu.memory_space<vmem>>) attributes {dimension_semantics = [#tpu.dimension_semantics<parallel>, #tpu.dimension_semantics<parallel>, #tpu.dimension_semantics<arbitrary>], iteration_bounds = array<i64: 1, 1, 1>, scalar_prefetch = 0 : i64, scratch_operands = 1 : i64, tpu.core_type = #tpu.core_type<tc>, window_params = [{transform_indices = @transform_0, window_bounds = array<i64: 32, 128>}, {transform_indices = @transform_1, window_bounds = array<i64: 128, 128>}, {transform_indices = @transform_2, window_bounds = array<i64: 1, 128>}, {transform_indices = @transform_3, window_bounds = array<i64: 1, 128>}, {transform_indices = @transform_4, window_bounds = array<i64: 32, 128>}]} {
    %c0_i32 = arith.constant 0 : i32
    %0 = arith.cmpi eq, %arg2, %c0_i32 : i32
    %1 = arith.extui %0 : i1 to i32
    %c0_i32_0 = arith.constant 0 : i32
    %2 = arith.cmpi ne, %1, %c0_i32_0 : i32
    scf.if %2 {
      %cst_10 = arith.constant 0.000000e+00 : f32
      %12 = vector.broadcast %cst_10 : f32 to vector<32x128xf32>
      %c0_11 = arith.constant 0 : index
      %c0_12 = arith.constant 0 : index
      %13 = vector.load %arg8[%c0_11, %c0_12] : memref<32x128xf32, #tpu.memory_space<vmem>>, vector<32x128xf32>
      tpu.vector_store %arg8[%c0_11, %c0_12], %12 {strides = array<i32>} : memref<32x128xf32, #tpu.memory_space<vmem>>, vector<32x128xf32>,
    } else {
    }
    %c0 = arith.constant 0 : index
    %c0_1 = arith.constant 0 : index
    %3 = vector.load %arg8[%c0, %c0_1] : memref<32x128xf32, #tpu.memory_space<vmem>>, vector<32x128xf32>
    %c0_2 = arith.constant 0 : index
    %c0_3 = arith.constant 0 : index
    %4 = vector.load %arg3[%c0_2, %c0_3] : memref<32x128xbf16, #tpu.memory_space<vmem>>, vector<32x128xbf16>
    %c0_4 = arith.constant 0 : index
    %c0_5 = arith.constant 0 : index
    %5 = vector.load %arg4[%c0_4, %c0_5] : memref<128x128xbf16, #tpu.memory_space<vmem>>, vector<128x128xbf16>
    %cst = arith.constant dense<0.000000e+00> : vector<32x128xf32>
    %6 = tpu.matmul %4, %5, %cst {dimension_numbers = #tpu.dot_dimension_numbers<[1], [0], [0], [1], [0, 0, 1, 1], [], []>} : vector<32x128xbf16>, vector<128x128xbf16>, vector<32x128xf32> -> vector<32x128xf32>
    %7 = arith.addf %3, %6 : vector<32x128xf32>
    %c0_6 = arith.constant 0 : index
    %c0_7 = arith.constant 0 : index
    %8 = vector.load %arg8[%c0_6, %c0_7] : memref<32x128xf32, #tpu.memory_space<vmem>>, vector<32x128xf32>
    tpu.vector_store %arg8[%c0_6, %c0_7], %7 {strides = array<i32>} : memref<32x128xf32, #tpu.memory_space<vmem>>, vector<32x128xf32>,
    %c0_i32_8 = arith.constant 0 : i32
    %9 = arith.cmpi eq, %arg2, %c0_i32_8 : i32
    %10 = arith.extui %9 : i1 to i32
    %c0_i32_9 = arith.constant 0 : i32
    %11 = arith.cmpi ne, %10, %c0_i32_9 : i32
    scf.if %11 {
      %c0_10 = arith.constant 0 : index
      %c0_11 = arith.constant 0 : index
      %12 = vector.load %arg8[%c0_10, %c0_11] : memref<32x128xf32, #tpu.memory_space<vmem>>, vector<32x128xf32>
      %c0_12 = arith.constant 0 : index
      %c0_13 = arith.constant 0 : index
      %13 = vector.load %arg5[%c0_12, %c0_13] : memref<1x128xf32, #tpu.memory_space<vmem>>, vector<1x128xf32>
      %14 = vector.broadcast %13 : vector<1x128xf32> to vector<32x128xf32>
      %15 = arith.mulf %12, %14 : vector<32x128xf32>
      %c0_14 = arith.constant 0 : index
      %c0_15 = arith.constant 0 : index
      %16 = vector.load %arg6[%c0_14, %c0_15] : memref<1x128xf32, #tpu.memory_space<vmem>>, vector<1x128xf32>
      %17 = vector.broadcast %16 : vector<1x128xf32> to vector<32x128xf32>
      %18 = arith.addf %15, %17 : vector<32x128xf32>
      %19 = arith.truncf %18 : vector<32x128xf32> to vector<32x128xbf16>
      %c0_16 = arith.constant 0 : index
      %c0_17 = arith.constant 0 : index
      %20 = vector.load %arg7[%c0_16, %c0_17] : memref<32x128xbf16, #tpu.memory_space<vmem>>, vector<32x128xbf16>
      tpu.vector_store %arg7[%c0_16, %c0_17], %19 {strides = array<i32>} : memref<32x128xbf16, #tpu.memory_space<vmem>>, vector<32x128xbf16>,
    } else {
    }
    return
  }
  func.func @transform_0(%arg0: i32, %arg1: i32, %arg2: i32) -> (i32, i32) {
    %c0_i32 = arith.constant 0 : i32
    return %arg0, %arg2 : i32, i32
  }
  func.func @transform_1(%arg0: i32, %arg1: i32, %arg2: i32) -> (i32, i32) {
    %c0_i32 = arith.constant 0 : i32
    return %arg2, %arg1 : i32, i32
  }
  func.func @transform_2(%arg0: i32, %arg1: i32, %arg2: i32) -> (i32, i32) {
    %c0_i32 = arith.constant 0 : i32
    %c0_i32_0 = arith.constant 0 : i32
    return %c0_i32, %arg1 : i32, i32
  }
  func.func @transform_3(%arg0: i32, %arg1: i32, %arg2: i32) -> (i32, i32) {
    %c0_i32 = arith.constant 0 : i32
    %c0_i32_0 = arith.constant 0 : i32
    return %c0_i32, %arg1 : i32, i32
  }
  func.func @transform_4(%arg0: i32, %arg1: i32, %arg2: i32) -> (i32, i32) {
    %c0_i32 = arith.constant 0 : i32
    return %arg0, %arg1 : i32, i32
  }
}

module attributes {stable_mosaic.version = 11 : i64} {
  func.func @kernel(%arg0: i32, %arg1: i32, %arg2: i32, %arg3: memref<32x384xbf16, #tpu.memory_space<vmem>>, %arg4: memref<384x128xbf16, #tpu.memory_space<vmem>>, %arg5: memref<1x128xf32, #tpu.memory_space<vmem>>, %arg6: memref<1x128xf32, #tpu.memory_space<vmem>>, %arg7: memref<32x128xbf16, #tpu.memory_space<vmem>>, %arg8: memref<32x128xbf16, #tpu.memory_space<vmem>>, %arg9: memref<32x128xf32, #tpu.memory_space<vmem>>) attributes {dimension_semantics = [#tpu.dimension_semantics<parallel>, #tpu.dimension_semantics<parallel>, #tpu.dimension_semantics<arbitrary>], iteration_bounds = array<i64: 1, 1, 1>, scalar_prefetch = 0 : i64, scratch_operands = 1 : i64, tpu.core_type = #tpu.core_type<tc>, window_params = [{transform_indices = @transform_0, window_bounds = array<i64: 32, 384>}, {transform_indices = @transform_1, window_bounds = array<i64: 384, 128>}, {transform_indices = @transform_2, window_bounds = array<i64: 1, 128>}, {transform_indices = @transform_3, window_bounds = array<i64: 1, 128>}, {transform_indices = @transform_4, window_bounds = array<i64: 32, 128>}, {transform_indices = @transform_5, window_bounds = array<i64: 32, 128>}]} {
    %c0_i32 = arith.constant 0 : i32
    %0 = arith.cmpi eq, %arg2, %c0_i32 : i32
    %1 = arith.extui %0 : i1 to i32
    %c0_i32_0 = arith.constant 0 : i32
    %2 = arith.cmpi ne, %1, %c0_i32_0 : i32
    scf.if %2 {
      %cst_10 = arith.constant 0.000000e+00 : f32
      %12 = vector.broadcast %cst_10 : f32 to vector<32x128xf32>
      %c0_11 = arith.constant 0 : index
      %c0_12 = arith.constant 0 : index
      %13 = vector.load %arg9[%c0_11, %c0_12] : memref<32x128xf32, #tpu.memory_space<vmem>>, vector<32x128xf32>
      tpu.vector_store %arg9[%c0_11, %c0_12], %12 {strides = array<i32>} : memref<32x128xf32, #tpu.memory_space<vmem>>, vector<32x128xf32>,
    } else {
    }
    %c0 = arith.constant 0 : index
    %c0_1 = arith.constant 0 : index
    %3 = vector.load %arg9[%c0, %c0_1] : memref<32x128xf32, #tpu.memory_space<vmem>>, vector<32x128xf32>
    %c0_2 = arith.constant 0 : index
    %c0_3 = arith.constant 0 : index
    %4 = vector.load %arg3[%c0_2, %c0_3] : memref<32x384xbf16, #tpu.memory_space<vmem>>, vector<32x384xbf16>
    %c0_4 = arith.constant 0 : index
    %c0_5 = arith.constant 0 : index
    %5 = vector.load %arg4[%c0_4, %c0_5] : memref<384x128xbf16, #tpu.memory_space<vmem>>, vector<384x128xbf16>
    %cst = arith.constant dense<0.000000e+00> : vector<32x128xf32>
    %6 = tpu.matmul %4, %5, %cst {dimension_numbers = #tpu.dot_dimension_numbers<[1], [0], [0], [1], [0, 0, 1, 1], [], []>} : vector<32x384xbf16>, vector<384x128xbf16>, vector<32x128xf32> -> vector<32x128xf32>
    %7 = arith.addf %3, %6 : vector<32x128xf32>
    %c0_6 = arith.constant 0 : index
    %c0_7 = arith.constant 0 : index
    %8 = vector.load %arg9[%c0_6, %c0_7] : memref<32x128xf32, #tpu.memory_space<vmem>>, vector<32x128xf32>
    tpu.vector_store %arg9[%c0_6, %c0_7], %7 {strides = array<i32>} : memref<32x128xf32, #tpu.memory_space<vmem>>, vector<32x128xf32>,
    %c0_i32_8 = arith.constant 0 : i32
    %9 = arith.cmpi eq, %arg2, %c0_i32_8 : i32
    %10 = arith.extui %9 : i1 to i32
    %c0_i32_9 = arith.constant 0 : i32
    %11 = arith.cmpi ne, %10, %c0_i32_9 : i32
    scf.if %11 {
      %c0_10 = arith.constant 0 : index
      %c0_11 = arith.constant 0 : index
      %12 = vector.load %arg9[%c0_10, %c0_11] : memref<32x128xf32, #tpu.memory_space<vmem>>, vector<32x128xf32>
      %c0_12 = arith.constant 0 : index
      %c0_13 = arith.constant 0 : index
      %13 = vector.load %arg5[%c0_12, %c0_13] : memref<1x128xf32, #tpu.memory_space<vmem>>, vector<1x128xf32>
      %14 = vector.broadcast %13 : vector<1x128xf32> to vector<32x128xf32>
      %15 = arith.mulf %12, %14 : vector<32x128xf32>
      %c0_14 = arith.constant 0 : index
      %c0_15 = arith.constant 0 : index
      %16 = vector.load %arg6[%c0_14, %c0_15] : memref<1x128xf32, #tpu.memory_space<vmem>>, vector<1x128xf32>
      %17 = vector.broadcast %16 : vector<1x128xf32> to vector<32x128xf32>
      %18 = arith.addf %15, %17 : vector<32x128xf32>
      %c0_16 = arith.constant 0 : index
      %c0_17 = arith.constant 0 : index
      %19 = vector.load %arg7[%c0_16, %c0_17] : memref<32x128xbf16, #tpu.memory_space<vmem>>, vector<32x128xbf16>
      %20 = arith.extf %19 : vector<32x128xbf16> to vector<32x128xf32>
      %21 = arith.addf %18, %20 : vector<32x128xf32>
      %cst_18 = arith.constant 0.000000e+00 : f32
      %22 = vector.broadcast %cst_18 : f32 to vector<32x128xf32>
      %23 = arith.maximumf %21, %22 : vector<32x128xf32>
      %24 = arith.truncf %23 : vector<32x128xf32> to vector<32x128xbf16>
      %c0_19 = arith.constant 0 : index
      %c0_20 = arith.constant 0 : index
      %25 = vector.load %arg8[%c0_19, %c0_20] : memref<32x128xbf16, #tpu.memory_space<vmem>>, vector<32x128xbf16>
      tpu.vector_store %arg8[%c0_19, %c0_20], %24 {strides = array<i32>} : memref<32x128xbf16, #tpu.memory_space<vmem>>, vector<32x128xbf16>,
    } else {
    }
    return
  }
  func.func @transform_0(%arg0: i32, %arg1: i32, %arg2: i32) -> (i32, i32) {
    %c0_i32 = arith.constant 0 : i32
    return %arg0, %arg2 : i32, i32
  }
  func.func @transform_1(%arg0: i32, %arg1: i32, %arg2: i32) -> (i32, i32) {
    %c0_i32 = arith.constant 0 : i32
    return %arg2, %arg1 : i32, i32
  }
  func.func @transform_2(%arg0: i32, %arg1: i32, %arg2: i32) -> (i32, i32) {
    %c0_i32 = arith.constant 0 : i32
    %c0_i32_0 = arith.constant 0 : i32
    return %c0_i32, %arg1 : i32, i32
  }
  func.func @transform_3(%arg0: i32, %arg1: i32, %arg2: i32) -> (i32, i32) {
    %c0_i32 = arith.constant 0 : i32
    %c0_i32_0 = arith.constant 0 : i32
    return %c0_i32, %arg1 : i32, i32
  }
  func.func @transform_4(%arg0: i32, %arg1: i32, %arg2: i32) -> (i32, i32) {
    %c0_i32 = arith.constant 0 : i32
    return %arg0, %arg1 : i32, i32
  }
  func.func @transform_5(%arg0: i32, %arg1: i32, %arg2: i32) -> (i32, i32) {
    %c0_i32 = arith.constant 0 : i32
    return %arg0, %arg1 : i32, i32
  }
}

module attributes {stable_mosaic.version = 11 : i64} {
  func.func @kernel(%arg0: i32, %arg1: i32, %arg2: i32, %arg3: memref<8x384xbf16, #tpu.memory_space<vmem>>, %arg4: memref<384x128xbf16, #tpu.memory_space<vmem>>, %arg5: memref<1x128xf32, #tpu.memory_space<vmem>>, %arg6: memref<1x128xf32, #tpu.memory_space<vmem>>, %arg7: memref<8x128xbf16, #tpu.memory_space<vmem>>, %arg8: memref<8x128xf32, #tpu.memory_space<vmem>>) attributes {dimension_semantics = [#tpu.dimension_semantics<parallel>, #tpu.dimension_semantics<parallel>, #tpu.dimension_semantics<arbitrary>], iteration_bounds = array<i64: 1, 1, 1>, scalar_prefetch = 0 : i64, scratch_operands = 1 : i64, tpu.core_type = #tpu.core_type<tc>, window_params = [{transform_indices = @transform_0, window_bounds = array<i64: 8, 384>}, {transform_indices = @transform_1, window_bounds = array<i64: 384, 128>}, {transform_indices = @transform_2, window_bounds = array<i64: 1, 128>}, {transform_indices = @transform_3, window_bounds = array<i64: 1, 128>}, {transform_indices = @transform_4, window_bounds = array<i64: 8, 128>}]} {
    %c0_i32 = arith.constant 0 : i32
    %0 = arith.cmpi eq, %arg2, %c0_i32 : i32
    %1 = arith.extui %0 : i1 to i32
    %c0_i32_0 = arith.constant 0 : i32
    %2 = arith.cmpi ne, %1, %c0_i32_0 : i32
    scf.if %2 {
      %cst_10 = arith.constant 0.000000e+00 : f32
      %12 = vector.broadcast %cst_10 : f32 to vector<8x128xf32>
      %c0_11 = arith.constant 0 : index
      %c0_12 = arith.constant 0 : index
      %13 = vector.load %arg8[%c0_11, %c0_12] : memref<8x128xf32, #tpu.memory_space<vmem>>, vector<8x128xf32>
      tpu.vector_store %arg8[%c0_11, %c0_12], %12 {strides = array<i32>} : memref<8x128xf32, #tpu.memory_space<vmem>>, vector<8x128xf32>,
    } else {
    }
    %c0 = arith.constant 0 : index
    %c0_1 = arith.constant 0 : index
    %3 = vector.load %arg8[%c0, %c0_1] : memref<8x128xf32, #tpu.memory_space<vmem>>, vector<8x128xf32>
    %c0_2 = arith.constant 0 : index
    %c0_3 = arith.constant 0 : index
    %4 = vector.load %arg3[%c0_2, %c0_3] : memref<8x384xbf16, #tpu.memory_space<vmem>>, vector<8x384xbf16>
    %c0_4 = arith.constant 0 : index
    %c0_5 = arith.constant 0 : index
    %5 = vector.load %arg4[%c0_4, %c0_5] : memref<384x128xbf16, #tpu.memory_space<vmem>>, vector<384x128xbf16>
    %cst = arith.constant dense<0.000000e+00> : vector<8x128xf32>
    %6 = tpu.matmul %4, %5, %cst {dimension_numbers = #tpu.dot_dimension_numbers<[1], [0], [0], [1], [0, 0, 1, 1], [], []>} : vector<8x384xbf16>, vector<384x128xbf16>, vector<8x128xf32> -> vector<8x128xf32>
    %7 = arith.addf %3, %6 : vector<8x128xf32>
    %c0_6 = arith.constant 0 : index
    %c0_7 = arith.constant 0 : index
    %8 = vector.load %arg8[%c0_6, %c0_7] : memref<8x128xf32, #tpu.memory_space<vmem>>, vector<8x128xf32>
    tpu.vector_store %arg8[%c0_6, %c0_7], %7 {strides = array<i32>} : memref<8x128xf32, #tpu.memory_space<vmem>>, vector<8x128xf32>,
    %c0_i32_8 = arith.constant 0 : i32
    %9 = arith.cmpi eq, %arg2, %c0_i32_8 : i32
    %10 = arith.extui %9 : i1 to i32
    %c0_i32_9 = arith.constant 0 : i32
    %11 = arith.cmpi ne, %10, %c0_i32_9 : i32
    scf.if %11 {
      %c0_10 = arith.constant 0 : index
      %c0_11 = arith.constant 0 : index
      %12 = vector.load %arg8[%c0_10, %c0_11] : memref<8x128xf32, #tpu.memory_space<vmem>>, vector<8x128xf32>
      %c0_12 = arith.constant 0 : index
      %c0_13 = arith.constant 0 : index
      %13 = vector.load %arg5[%c0_12, %c0_13] : memref<1x128xf32, #tpu.memory_space<vmem>>, vector<1x128xf32>
      %14 = vector.broadcast %13 : vector<1x128xf32> to vector<8x128xf32>
      %15 = arith.mulf %12, %14 : vector<8x128xf32>
      %c0_14 = arith.constant 0 : index
      %c0_15 = arith.constant 0 : index
      %16 = vector.load %arg6[%c0_14, %c0_15] : memref<1x128xf32, #tpu.memory_space<vmem>>, vector<1x128xf32>
      %17 = vector.broadcast %16 : vector<1x128xf32> to vector<8x128xf32>
      %18 = arith.addf %15, %17 : vector<8x128xf32>
      %cst_16 = arith.constant 0.000000e+00 : f32
      %19 = vector.broadcast %cst_16 : f32 to vector<8x128xf32>
      %20 = arith.maximumf %18, %19 : vector<8x128xf32>
      %21 = arith.truncf %20 : vector<8x128xf32> to vector<8x128xbf16>
      %c0_17 = arith.constant 0 : index
      %c0_18 = arith.constant 0 : index
      %22 = vector.load %arg7[%c0_17, %c0_18] : memref<8x128xbf16, #tpu.memory_space<vmem>>, vector<8x128xbf16>
      tpu.vector_store %arg7[%c0_17, %c0_18], %21 {strides = array<i32>} : memref<8x128xbf16, #tpu.memory_space<vmem>>, vector<8x128xbf16>,
    } else {
    }
    return
  }
  func.func @transform_0(%arg0: i32, %arg1: i32, %arg2: i32) -> (i32, i32) {
    %c0_i32 = arith.constant 0 : i32
    return %arg0, %arg2 : i32, i32
  }
  func.func @transform_1(%arg0: i32, %arg1: i32, %arg2: i32) -> (i32, i32) {
    %c0_i32 = arith.constant 0 : i32
    return %arg2, %arg1 : i32, i32
  }
  func.func @transform_2(%arg0: i32, %arg1: i32, %arg2: i32) -> (i32, i32) {
    %c0_i32 = arith.constant 0 : i32
    %c0_i32_0 = arith.constant 0 : i32
    return %c0_i32, %arg1 : i32, i32
  }
  func.func @transform_3(%arg0: i32, %arg1: i32, %arg2: i32) -> (i32, i32) {
    %c0_i32 = arith.constant 0 : i32
    %c0_i32_0 = arith.constant 0 : i32
    return %c0_i32, %arg1 : i32, i32
  }
  func.func @transform_4(%arg0: i32, %arg1: i32, %arg2: i32) -> (i32, i32) {
    %c0_i32 = arith.constant 0 : i32
    return %arg0, %arg1 : i32, i32
  }
}

module attributes {stable_mosaic.version = 11 : i64} {
  func.func @kernel(%arg0: i32, %arg1: i32, %arg2: i32, %arg3: memref<8x128xbf16, #tpu.memory_space<vmem>>, %arg4: memref<128x128xbf16, #tpu.memory_space<vmem>>, %arg5: memref<1x128xf32, #tpu.memory_space<vmem>>, %arg6: memref<1x128xf32, #tpu.memory_space<vmem>>, %arg7: memref<8x128xbf16, #tpu.memory_space<vmem>>, %arg8: memref<8x128xf32, #tpu.memory_space<vmem>>) attributes {dimension_semantics = [#tpu.dimension_semantics<parallel>, #tpu.dimension_semantics<parallel>, #tpu.dimension_semantics<arbitrary>], iteration_bounds = array<i64: 1, 1, 1>, scalar_prefetch = 0 : i64, scratch_operands = 1 : i64, tpu.core_type = #tpu.core_type<tc>, window_params = [{transform_indices = @transform_0, window_bounds = array<i64: 8, 128>}, {transform_indices = @transform_1, window_bounds = array<i64: 128, 128>}, {transform_indices = @transform_2, window_bounds = array<i64: 1, 128>}, {transform_indices = @transform_3, window_bounds = array<i64: 1, 128>}, {transform_indices = @transform_4, window_bounds = array<i64: 8, 128>}]} {
    %c0_i32 = arith.constant 0 : i32
    %0 = arith.cmpi eq, %arg2, %c0_i32 : i32
    %1 = arith.extui %0 : i1 to i32
    %c0_i32_0 = arith.constant 0 : i32
    %2 = arith.cmpi ne, %1, %c0_i32_0 : i32
    scf.if %2 {
      %cst_10 = arith.constant 0.000000e+00 : f32
      %12 = vector.broadcast %cst_10 : f32 to vector<8x128xf32>
      %c0_11 = arith.constant 0 : index
      %c0_12 = arith.constant 0 : index
      %13 = vector.load %arg8[%c0_11, %c0_12] : memref<8x128xf32, #tpu.memory_space<vmem>>, vector<8x128xf32>
      tpu.vector_store %arg8[%c0_11, %c0_12], %12 {strides = array<i32>} : memref<8x128xf32, #tpu.memory_space<vmem>>, vector<8x128xf32>,
    } else {
    }
    %c0 = arith.constant 0 : index
    %c0_1 = arith.constant 0 : index
    %3 = vector.load %arg8[%c0, %c0_1] : memref<8x128xf32, #tpu.memory_space<vmem>>, vector<8x128xf32>
    %c0_2 = arith.constant 0 : index
    %c0_3 = arith.constant 0 : index
    %4 = vector.load %arg3[%c0_2, %c0_3] : memref<8x128xbf16, #tpu.memory_space<vmem>>, vector<8x128xbf16>
    %c0_4 = arith.constant 0 : index
    %c0_5 = arith.constant 0 : index
    %5 = vector.load %arg4[%c0_4, %c0_5] : memref<128x128xbf16, #tpu.memory_space<vmem>>, vector<128x128xbf16>
    %cst = arith.constant dense<0.000000e+00> : vector<8x128xf32>
    %6 = tpu.matmul %4, %5, %cst {dimension_numbers = #tpu.dot_dimension_numbers<[1], [0], [0], [1], [0, 0, 1, 1], [], []>} : vector<8x128xbf16>, vector<128x128xbf16>, vector<8x128xf32> -> vector<8x128xf32>
    %7 = arith.addf %3, %6 : vector<8x128xf32>
    %c0_6 = arith.constant 0 : index
    %c0_7 = arith.constant 0 : index
    %8 = vector.load %arg8[%c0_6, %c0_7] : memref<8x128xf32, #tpu.memory_space<vmem>>, vector<8x128xf32>
    tpu.vector_store %arg8[%c0_6, %c0_7], %7 {strides = array<i32>} : memref<8x128xf32, #tpu.memory_space<vmem>>, vector<8x128xf32>,
    %c0_i32_8 = arith.constant 0 : i32
    %9 = arith.cmpi eq, %arg2, %c0_i32_8 : i32
    %10 = arith.extui %9 : i1 to i32
    %c0_i32_9 = arith.constant 0 : i32
    %11 = arith.cmpi ne, %10, %c0_i32_9 : i32
    scf.if %11 {
      %c0_10 = arith.constant 0 : index
      %c0_11 = arith.constant 0 : index
      %12 = vector.load %arg8[%c0_10, %c0_11] : memref<8x128xf32, #tpu.memory_space<vmem>>, vector<8x128xf32>
      %c0_12 = arith.constant 0 : index
      %c0_13 = arith.constant 0 : index
      %13 = vector.load %arg5[%c0_12, %c0_13] : memref<1x128xf32, #tpu.memory_space<vmem>>, vector<1x128xf32>
      %14 = vector.broadcast %13 : vector<1x128xf32> to vector<8x128xf32>
      %15 = arith.mulf %12, %14 : vector<8x128xf32>
      %c0_14 = arith.constant 0 : index
      %c0_15 = arith.constant 0 : index
      %16 = vector.load %arg6[%c0_14, %c0_15] : memref<1x128xf32, #tpu.memory_space<vmem>>, vector<1x128xf32>
      %17 = vector.broadcast %16 : vector<1x128xf32> to vector<8x128xf32>
      %18 = arith.addf %15, %17 : vector<8x128xf32>
      %19 = arith.truncf %18 : vector<8x128xf32> to vector<8x128xbf16>
      %c0_16 = arith.constant 0 : index
      %c0_17 = arith.constant 0 : index
      %20 = vector.load %arg7[%c0_16, %c0_17] : memref<8x128xbf16, #tpu.memory_space<vmem>>, vector<8x128xbf16>
      tpu.vector_store %arg7[%c0_16, %c0_17], %19 {strides = array<i32>} : memref<8x128xbf16, #tpu.memory_space<vmem>>, vector<8x128xbf16>,
    } else {
    }
    return
  }
  func.func @transform_0(%arg0: i32, %arg1: i32, %arg2: i32) -> (i32, i32) {
    %c0_i32 = arith.constant 0 : i32
    return %arg0, %arg2 : i32, i32
  }
  func.func @transform_1(%arg0: i32, %arg1: i32, %arg2: i32) -> (i32, i32) {
    %c0_i32 = arith.constant 0 : i32
    return %arg2, %arg1 : i32, i32
  }
  func.func @transform_2(%arg0: i32, %arg1: i32, %arg2: i32) -> (i32, i32) {
    %c0_i32 = arith.constant 0 : i32
    %c0_i32_0 = arith.constant 0 : i32
    return %c0_i32, %arg1 : i32, i32
  }
  func.func @transform_3(%arg0: i32, %arg1: i32, %arg2: i32) -> (i32, i32) {
    %c0_i32 = arith.constant 0 : i32
    %c0_i32_0 = arith.constant 0 : i32
    return %c0_i32, %arg1 : i32, i32
  }
  func.func @transform_4(%arg0: i32, %arg1: i32, %arg2: i32) -> (i32, i32) {
    %c0_i32 = arith.constant 0 : i32
    return %arg0, %arg1 : i32, i32
  }
}

module attributes {stable_mosaic.version = 11 : i64} {
  func.func @kernel(%arg0: i32, %arg1: i32, %arg2: i32, %arg3: memref<8x640xbf16, #tpu.memory_space<vmem>>, %arg4: memref<640x128xbf16, #tpu.memory_space<vmem>>, %arg5: memref<1x128xf32, #tpu.memory_space<vmem>>, %arg6: memref<1x128xf32, #tpu.memory_space<vmem>>, %arg7: memref<8x128xbf16, #tpu.memory_space<vmem>>, %arg8: memref<8x128xbf16, #tpu.memory_space<vmem>>, %arg9: memref<8x128xf32, #tpu.memory_space<vmem>>) attributes {dimension_semantics = [#tpu.dimension_semantics<parallel>, #tpu.dimension_semantics<parallel>, #tpu.dimension_semantics<arbitrary>], iteration_bounds = array<i64: 1, 1, 1>, scalar_prefetch = 0 : i64, scratch_operands = 1 : i64, tpu.core_type = #tpu.core_type<tc>, window_params = [{transform_indices = @transform_0, window_bounds = array<i64: 8, 640>}, {transform_indices = @transform_1, window_bounds = array<i64: 640, 128>}, {transform_indices = @transform_2, window_bounds = array<i64: 1, 128>}, {transform_indices = @transform_3, window_bounds = array<i64: 1, 128>}, {transform_indices = @transform_4, window_bounds = array<i64: 8, 128>}, {transform_indices = @transform_5, window_bounds = array<i64: 8, 128>}]} {
    %c0_i32 = arith.constant 0 : i32
    %0 = arith.cmpi eq, %arg2, %c0_i32 : i32
    %1 = arith.extui %0 : i1 to i32
    %c0_i32_0 = arith.constant 0 : i32
    %2 = arith.cmpi ne, %1, %c0_i32_0 : i32
    scf.if %2 {
      %cst_10 = arith.constant 0.000000e+00 : f32
      %12 = vector.broadcast %cst_10 : f32 to vector<8x128xf32>
      %c0_11 = arith.constant 0 : index
      %c0_12 = arith.constant 0 : index
      %13 = vector.load %arg9[%c0_11, %c0_12] : memref<8x128xf32, #tpu.memory_space<vmem>>, vector<8x128xf32>
      tpu.vector_store %arg9[%c0_11, %c0_12], %12 {strides = array<i32>} : memref<8x128xf32, #tpu.memory_space<vmem>>, vector<8x128xf32>,
    } else {
    }
    %c0 = arith.constant 0 : index
    %c0_1 = arith.constant 0 : index
    %3 = vector.load %arg9[%c0, %c0_1] : memref<8x128xf32, #tpu.memory_space<vmem>>, vector<8x128xf32>
    %c0_2 = arith.constant 0 : index
    %c0_3 = arith.constant 0 : index
    %4 = vector.load %arg3[%c0_2, %c0_3] : memref<8x640xbf16, #tpu.memory_space<vmem>>, vector<8x640xbf16>
    %c0_4 = arith.constant 0 : index
    %c0_5 = arith.constant 0 : index
    %5 = vector.load %arg4[%c0_4, %c0_5] : memref<640x128xbf16, #tpu.memory_space<vmem>>, vector<640x128xbf16>
    %cst = arith.constant dense<0.000000e+00> : vector<8x128xf32>
    %6 = tpu.matmul %4, %5, %cst {dimension_numbers = #tpu.dot_dimension_numbers<[1], [0], [0], [1], [0, 0, 1, 1], [], []>} : vector<8x640xbf16>, vector<640x128xbf16>, vector<8x128xf32> -> vector<8x128xf32>
    %7 = arith.addf %3, %6 : vector<8x128xf32>
    %c0_6 = arith.constant 0 : index
    %c0_7 = arith.constant 0 : index
    %8 = vector.load %arg9[%c0_6, %c0_7] : memref<8x128xf32, #tpu.memory_space<vmem>>, vector<8x128xf32>
    tpu.vector_store %arg9[%c0_6, %c0_7], %7 {strides = array<i32>} : memref<8x128xf32, #tpu.memory_space<vmem>>, vector<8x128xf32>,
    %c0_i32_8 = arith.constant 0 : i32
    %9 = arith.cmpi eq, %arg2, %c0_i32_8 : i32
    %10 = arith.extui %9 : i1 to i32
    %c0_i32_9 = arith.constant 0 : i32
    %11 = arith.cmpi ne, %10, %c0_i32_9 : i32
    scf.if %11 {
      %c0_10 = arith.constant 0 : index
      %c0_11 = arith.constant 0 : index
      %12 = vector.load %arg9[%c0_10, %c0_11] : memref<8x128xf32, #tpu.memory_space<vmem>>, vector<8x128xf32>
      %c0_12 = arith.constant 0 : index
      %c0_13 = arith.constant 0 : index
      %13 = vector.load %arg5[%c0_12, %c0_13] : memref<1x128xf32, #tpu.memory_space<vmem>>, vector<1x128xf32>
      %14 = vector.broadcast %13 : vector<1x128xf32> to vector<8x128xf32>
      %15 = arith.mulf %12, %14 : vector<8x128xf32>
      %c0_14 = arith.constant 0 : index
      %c0_15 = arith.constant 0 : index
      %16 = vector.load %arg6[%c0_14, %c0_15] : memref<1x128xf32, #tpu.memory_space<vmem>>, vector<1x128xf32>
      %17 = vector.broadcast %16 : vector<1x128xf32> to vector<8x128xf32>
      %18 = arith.addf %15, %17 : vector<8x128xf32>
      %c0_16 = arith.constant 0 : index
      %c0_17 = arith.constant 0 : index
      %19 = vector.load %arg7[%c0_16, %c0_17] : memref<8x128xbf16, #tpu.memory_space<vmem>>, vector<8x128xbf16>
      %20 = arith.extf %19 : vector<8x128xbf16> to vector<8x128xf32>
      %21 = arith.addf %18, %20 : vector<8x128xf32>
      %cst_18 = arith.constant 0.000000e+00 : f32
      %22 = vector.broadcast %cst_18 : f32 to vector<8x128xf32>
      %23 = arith.maximumf %21, %22 : vector<8x128xf32>
      %24 = arith.truncf %23 : vector<8x128xf32> to vector<8x128xbf16>
      %c0_19 = arith.constant 0 : index
      %c0_20 = arith.constant 0 : index
      %25 = vector.load %arg8[%c0_19, %c0_20] : memref<8x128xbf16, #tpu.memory_space<vmem>>, vector<8x128xbf16>
      tpu.vector_store %arg8[%c0_19, %c0_20], %24 {strides = array<i32>} : memref<8x128xbf16, #tpu.memory_space<vmem>>, vector<8x128xbf16>,
    } else {
    }
    return
  }
  func.func @transform_0(%arg0: i32, %arg1: i32, %arg2: i32) -> (i32, i32) {
    %c0_i32 = arith.constant 0 : i32
    return %arg0, %arg2 : i32, i32
  }
  func.func @transform_1(%arg0: i32, %arg1: i32, %arg2: i32) -> (i32, i32) {
    %c0_i32 = arith.constant 0 : i32
    return %arg2, %arg1 : i32, i32
  }
  func.func @transform_2(%arg0: i32, %arg1: i32, %arg2: i32) -> (i32, i32) {
    %c0_i32 = arith.constant 0 : i32
    %c0_i32_0 = arith.constant 0 : i32
    return %c0_i32, %arg1 : i32, i32
  }
  func.func @transform_3(%arg0: i32, %arg1: i32, %arg2: i32) -> (i32, i32) {
    %c0_i32 = arith.constant 0 : i32
    %c0_i32_0 = arith.constant 0 : i32
    return %c0_i32, %arg1 : i32, i32
  }
  func.func @transform_4(%arg0: i32, %arg1: i32, %arg2: i32) -> (i32, i32) {
    %c0_i32 = arith.constant 0 : i32
    return %arg0, %arg1 : i32, i32
  }
  func.func @transform_5(%arg0: i32, %arg1: i32, %arg2: i32) -> (i32, i32) {
    %c0_i32 = arith.constant 0 : i32
    return %arg0, %arg1 : i32, i32
  }
}

module attributes {stable_mosaic.version = 11 : i64} {
  func.func @kernel(%arg0: i32, %arg1: i32, %arg2: i32, %arg3: memref<8x640xbf16, #tpu.memory_space<vmem>>, %arg4: memref<640x128xbf16, #tpu.memory_space<vmem>>, %arg5: memref<1x128xf32, #tpu.memory_space<vmem>>, %arg6: memref<1x128xf32, #tpu.memory_space<vmem>>, %arg7: memref<8x128xbf16, #tpu.memory_space<vmem>>, %arg8: memref<8x128xf32, #tpu.memory_space<vmem>>) attributes {dimension_semantics = [#tpu.dimension_semantics<parallel>, #tpu.dimension_semantics<parallel>, #tpu.dimension_semantics<arbitrary>], iteration_bounds = array<i64: 1, 1, 1>, scalar_prefetch = 0 : i64, scratch_operands = 1 : i64, tpu.core_type = #tpu.core_type<tc>, window_params = [{transform_indices = @transform_0, window_bounds = array<i64: 8, 640>}, {transform_indices = @transform_1, window_bounds = array<i64: 640, 128>}, {transform_indices = @transform_2, window_bounds = array<i64: 1, 128>}, {transform_indices = @transform_3, window_bounds = array<i64: 1, 128>}, {transform_indices = @transform_4, window_bounds = array<i64: 8, 128>}]} {
    %c0_i32 = arith.constant 0 : i32
    %0 = arith.cmpi eq, %arg2, %c0_i32 : i32
    %1 = arith.extui %0 : i1 to i32
    %c0_i32_0 = arith.constant 0 : i32
    %2 = arith.cmpi ne, %1, %c0_i32_0 : i32
    scf.if %2 {
      %cst_10 = arith.constant 0.000000e+00 : f32
      %12 = vector.broadcast %cst_10 : f32 to vector<8x128xf32>
      %c0_11 = arith.constant 0 : index
      %c0_12 = arith.constant 0 : index
      %13 = vector.load %arg8[%c0_11, %c0_12] : memref<8x128xf32, #tpu.memory_space<vmem>>, vector<8x128xf32>
      tpu.vector_store %arg8[%c0_11, %c0_12], %12 {strides = array<i32>} : memref<8x128xf32, #tpu.memory_space<vmem>>, vector<8x128xf32>,
    } else {
    }
    %c0 = arith.constant 0 : index
    %c0_1 = arith.constant 0 : index
    %3 = vector.load %arg8[%c0, %c0_1] : memref<8x128xf32, #tpu.memory_space<vmem>>, vector<8x128xf32>
    %c0_2 = arith.constant 0 : index
    %c0_3 = arith.constant 0 : index
    %4 = vector.load %arg3[%c0_2, %c0_3] : memref<8x640xbf16, #tpu.memory_space<vmem>>, vector<8x640xbf16>
    %c0_4 = arith.constant 0 : index
    %c0_5 = arith.constant 0 : index
    %5 = vector.load %arg4[%c0_4, %c0_5] : memref<640x128xbf16, #tpu.memory_space<vmem>>, vector<640x128xbf16>
    %cst = arith.constant dense<0.000000e+00> : vector<8x128xf32>
    %6 = tpu.matmul %4, %5, %cst {dimension_numbers = #tpu.dot_dimension_numbers<[1], [0], [0], [1], [0, 0, 1, 1], [], []>} : vector<8x640xbf16>, vector<640x128xbf16>, vector<8x128xf32> -> vector<8x128xf32>
    %7 = arith.addf %3, %6 : vector<8x128xf32>
    %c0_6 = arith.constant 0 : index
    %c0_7 = arith.constant 0 : index
    %8 = vector.load %arg8[%c0_6, %c0_7] : memref<8x128xf32, #tpu.memory_space<vmem>>, vector<8x128xf32>
    tpu.vector_store %arg8[%c0_6, %c0_7], %7 {strides = array<i32>} : memref<8x128xf32, #tpu.memory_space<vmem>>, vector<8x128xf32>,
    %c0_i32_8 = arith.constant 0 : i32
    %9 = arith.cmpi eq, %arg2, %c0_i32_8 : i32
    %10 = arith.extui %9 : i1 to i32
    %c0_i32_9 = arith.constant 0 : i32
    %11 = arith.cmpi ne, %10, %c0_i32_9 : i32
    scf.if %11 {
      %c0_10 = arith.constant 0 : index
      %c0_11 = arith.constant 0 : index
      %12 = vector.load %arg8[%c0_10, %c0_11] : memref<8x128xf32, #tpu.memory_space<vmem>>, vector<8x128xf32>
      %c0_12 = arith.constant 0 : index
      %c0_13 = arith.constant 0 : index
      %13 = vector.load %arg5[%c0_12, %c0_13] : memref<1x128xf32, #tpu.memory_space<vmem>>, vector<1x128xf32>
      %14 = vector.broadcast %13 : vector<1x128xf32> to vector<8x128xf32>
      %15 = arith.mulf %12, %14 : vector<8x128xf32>
      %c0_14 = arith.constant 0 : index
      %c0_15 = arith.constant 0 : index
      %16 = vector.load %arg6[%c0_14, %c0_15] : memref<1x128xf32, #tpu.memory_space<vmem>>, vector<1x128xf32>
      %17 = vector.broadcast %16 : vector<1x128xf32> to vector<8x128xf32>
      %18 = arith.addf %15, %17 : vector<8x128xf32>
      %cst_16 = arith.constant 0.000000e+00 : f32
      %19 = vector.broadcast %cst_16 : f32 to vector<8x128xf32>
      %20 = arith.maximumf %18, %19 : vector<8x128xf32>
      %21 = arith.truncf %20 : vector<8x128xf32> to vector<8x128xbf16>
      %c0_17 = arith.constant 0 : index
      %c0_18 = arith.constant 0 : index
      %22 = vector.load %arg7[%c0_17, %c0_18] : memref<8x128xbf16, #tpu.memory_space<vmem>>, vector<8x128xbf16>
      tpu.vector_store %arg7[%c0_17, %c0_18], %21 {strides = array<i32>} : memref<8x128xbf16, #tpu.memory_space<vmem>>, vector<8x128xbf16>,
    } else {
    }
    return
  }
  func.func @transform_0(%arg0: i32, %arg1: i32, %arg2: i32) -> (i32, i32) {
    %c0_i32 = arith.constant 0 : i32
    return %arg0, %arg2 : i32, i32
  }
  func.func @transform_1(%arg0: i32, %arg1: i32, %arg2: i32) -> (i32, i32) {
    %c0_i32 = arith.constant 0 : i32
    return %arg2, %arg1 : i32, i32
  }
  func.func @transform_2(%arg0: i32, %arg1: i32, %arg2: i32) -> (i32, i32) {
    %c0_i32 = arith.constant 0 : i32
    %c0_i32_0 = arith.constant 0 : i32
    return %c0_i32, %arg1 : i32, i32
  }
  func.func @transform_3(%arg0: i32, %arg1: i32, %arg2: i32) -> (i32, i32) {
    %c0_i32 = arith.constant 0 : i32
    %c0_i32_0 = arith.constant 0 : i32
    return %c0_i32, %arg1 : i32, i32
  }
  func.func @transform_4(%arg0: i32, %arg1: i32, %arg2: i32) -> (i32, i32) {
    %c0_i32 = arith.constant 0 : i32
    return %arg0, %arg1 : i32, i32
  }
}

module attributes {stable_mosaic.version = 11 : i64} {
  func.func @kernel(%arg0: i32, %arg1: i32, %arg2: i32, %arg3: memref<8x1152xbf16, #tpu.memory_space<vmem>>, %arg4: memref<1152x128xbf16, #tpu.memory_space<vmem>>, %arg5: memref<1x128xf32, #tpu.memory_space<vmem>>, %arg6: memref<1x128xf32, #tpu.memory_space<vmem>>, %arg7: memref<8x128xbf16, #tpu.memory_space<vmem>>, %arg8: memref<8x128xbf16, #tpu.memory_space<vmem>>, %arg9: memref<8x128xf32, #tpu.memory_space<vmem>>) attributes {dimension_semantics = [#tpu.dimension_semantics<parallel>, #tpu.dimension_semantics<parallel>, #tpu.dimension_semantics<arbitrary>], iteration_bounds = array<i64: 1, 1, 1>, scalar_prefetch = 0 : i64, scratch_operands = 1 : i64, tpu.core_type = #tpu.core_type<tc>, window_params = [{transform_indices = @transform_0, window_bounds = array<i64: 8, 1152>}, {transform_indices = @transform_1, window_bounds = array<i64: 1152, 128>}, {transform_indices = @transform_2, window_bounds = array<i64: 1, 128>}, {transform_indices = @transform_3, window_bounds = array<i64: 1, 128>}, {transform_indices = @transform_4, window_bounds = array<i64: 8, 128>}, {transform_indices = @transform_5, window_bounds = array<i64: 8, 128>}]} {
    %c0_i32 = arith.constant 0 : i32
    %0 = arith.cmpi eq, %arg2, %c0_i32 : i32
    %1 = arith.extui %0 : i1 to i32
    %c0_i32_0 = arith.constant 0 : i32
    %2 = arith.cmpi ne, %1, %c0_i32_0 : i32
    scf.if %2 {
      %cst_10 = arith.constant 0.000000e+00 : f32
      %12 = vector.broadcast %cst_10 : f32 to vector<8x128xf32>
      %c0_11 = arith.constant 0 : index
      %c0_12 = arith.constant 0 : index
      %13 = vector.load %arg9[%c0_11, %c0_12] : memref<8x128xf32, #tpu.memory_space<vmem>>, vector<8x128xf32>
      tpu.vector_store %arg9[%c0_11, %c0_12], %12 {strides = array<i32>} : memref<8x128xf32, #tpu.memory_space<vmem>>, vector<8x128xf32>,
    } else {
    }
    %c0 = arith.constant 0 : index
    %c0_1 = arith.constant 0 : index
    %3 = vector.load %arg9[%c0, %c0_1] : memref<8x128xf32, #tpu.memory_space<vmem>>, vector<8x128xf32>
    %c0_2 = arith.constant 0 : index
    %c0_3 = arith.constant 0 : index
    %4 = vector.load %arg3[%c0_2, %c0_3] : memref<8x1152xbf16, #tpu.memory_space<vmem>>, vector<8x1152xbf16>
    %c0_4 = arith.constant 0 : index
    %c0_5 = arith.constant 0 : index
    %5 = vector.load %arg4[%c0_4, %c0_5] : memref<1152x128xbf16, #tpu.memory_space<vmem>>, vector<1152x128xbf16>
    %cst = arith.constant dense<0.000000e+00> : vector<8x128xf32>
    %6 = tpu.matmul %4, %5, %cst {dimension_numbers = #tpu.dot_dimension_numbers<[1], [0], [0], [1], [0, 0, 1, 1], [], []>} : vector<8x1152xbf16>, vector<1152x128xbf16>, vector<8x128xf32> -> vector<8x128xf32>
    %7 = arith.addf %3, %6 : vector<8x128xf32>
    %c0_6 = arith.constant 0 : index
    %c0_7 = arith.constant 0 : index
    %8 = vector.load %arg9[%c0_6, %c0_7] : memref<8x128xf32, #tpu.memory_space<vmem>>, vector<8x128xf32>
    tpu.vector_store %arg9[%c0_6, %c0_7], %7 {strides = array<i32>} : memref<8x128xf32, #tpu.memory_space<vmem>>, vector<8x128xf32>,
    %c0_i32_8 = arith.constant 0 : i32
    %9 = arith.cmpi eq, %arg2, %c0_i32_8 : i32
    %10 = arith.extui %9 : i1 to i32
    %c0_i32_9 = arith.constant 0 : i32
    %11 = arith.cmpi ne, %10, %c0_i32_9 : i32
    scf.if %11 {
      %c0_10 = arith.constant 0 : index
      %c0_11 = arith.constant 0 : index
      %12 = vector.load %arg9[%c0_10, %c0_11] : memref<8x128xf32, #tpu.memory_space<vmem>>, vector<8x128xf32>
      %c0_12 = arith.constant 0 : index
      %c0_13 = arith.constant 0 : index
      %13 = vector.load %arg5[%c0_12, %c0_13] : memref<1x128xf32, #tpu.memory_space<vmem>>, vector<1x128xf32>
      %14 = vector.broadcast %13 : vector<1x128xf32> to vector<8x128xf32>
      %15 = arith.mulf %12, %14 : vector<8x128xf32>
      %c0_14 = arith.constant 0 : index
      %c0_15 = arith.constant 0 : index
      %16 = vector.load %arg6[%c0_14, %c0_15] : memref<1x128xf32, #tpu.memory_space<vmem>>, vector<1x128xf32>
      %17 = vector.broadcast %16 : vector<1x128xf32> to vector<8x128xf32>
      %18 = arith.addf %15, %17 : vector<8x128xf32>
      %c0_16 = arith.constant 0 : index
      %c0_17 = arith.constant 0 : index
      %19 = vector.load %arg7[%c0_16, %c0_17] : memref<8x128xbf16, #tpu.memory_space<vmem>>, vector<8x128xbf16>
      %20 = arith.extf %19 : vector<8x128xbf16> to vector<8x128xf32>
      %21 = arith.addf %18, %20 : vector<8x128xf32>
      %cst_18 = arith.constant 0.000000e+00 : f32
      %22 = vector.broadcast %cst_18 : f32 to vector<8x128xf32>
      %23 = arith.maximumf %21, %22 : vector<8x128xf32>
      %24 = arith.truncf %23 : vector<8x128xf32> to vector<8x128xbf16>
      %c0_19 = arith.constant 0 : index
      %c0_20 = arith.constant 0 : index
      %25 = vector.load %arg8[%c0_19, %c0_20] : memref<8x128xbf16, #tpu.memory_space<vmem>>, vector<8x128xbf16>
      tpu.vector_store %arg8[%c0_19, %c0_20], %24 {strides = array<i32>} : memref<8x128xbf16, #tpu.memory_space<vmem>>, vector<8x128xbf16>,
    } else {
    }
    return
  }
  func.func @transform_0(%arg0: i32, %arg1: i32, %arg2: i32) -> (i32, i32) {
    %c0_i32 = arith.constant 0 : i32
    return %arg0, %arg2 : i32, i32
  }
  func.func @transform_1(%arg0: i32, %arg1: i32, %arg2: i32) -> (i32, i32) {
    %c0_i32 = arith.constant 0 : i32
    return %arg2, %arg1 : i32, i32
  }
  func.func @transform_2(%arg0: i32, %arg1: i32, %arg2: i32) -> (i32, i32) {
    %c0_i32 = arith.constant 0 : i32
    %c0_i32_0 = arith.constant 0 : i32
    return %c0_i32, %arg1 : i32, i32
  }
  func.func @transform_3(%arg0: i32, %arg1: i32, %arg2: i32) -> (i32, i32) {
    %c0_i32 = arith.constant 0 : i32
    %c0_i32_0 = arith.constant 0 : i32
    return %c0_i32, %arg1 : i32, i32
  }
  func.func @transform_4(%arg0: i32, %arg1: i32, %arg2: i32) -> (i32, i32) {
    %c0_i32 = arith.constant 0 : i32
    return %arg0, %arg1 : i32, i32
  }
  func.func @transform_5(%arg0: i32, %arg1: i32, %arg2: i32) -> (i32, i32) {
    %c0_i32 = arith.constant 0 : i32
    return %arg0, %arg1 : i32, i32
  }
}

module attributes {stable_mosaic.version = 11 : i64} {
  func.func @_gap_fc_relu_kernel(%arg0: memref<1x8x128xf32, #tpu.memory_space<vmem>>, %arg1: memref<128x128xf32, #tpu.memory_space<vmem>>, %arg2: memref<1x128xf32, #tpu.memory_space<vmem>>, %arg3: memref<8x128xf32, #tpu.memory_space<vmem>>) attributes {dimension_semantics = [], scalar_prefetch = 0 : i64, scratch_operands = 0 : i64, tpu.core_type = #tpu.core_type<tc>} {
    %c0 = arith.constant 0 : index
    %c0_0 = arith.constant 0 : index
    %c0_1 = arith.constant 0 : index
    %0 = vector.load %arg0[%c0, %c0_0, %c0_1] : memref<1x8x128xf32, #tpu.memory_space<vmem>>, vector<1x8x128xf32>
    %cst = arith.constant dense<0.000000e+00> : vector<8x128xf32>
    %1 = vector.multi_reduction <add>, %0, %cst [0] : vector<1x8x128xf32> to vector<8x128xf32>
    %cst_2 = arith.constant 1.000000e+00 : f32
    %2 = vector.broadcast %cst_2 : f32 to vector<8x128xf32>
    %3 = arith.divf %1, %2 : vector<8x128xf32>
    %c0_3 = arith.constant 0 : index
    %c0_4 = arith.constant 0 : index
    %4 = vector.load %arg1[%c0_3, %c0_4] : memref<128x128xf32, #tpu.memory_space<vmem>>, vector<128x128xf32>
    %cst_5 = arith.constant dense<0.000000e+00> : vector<8x128xf32>
    %5 = tpu.matmul %3, %4, %cst_5 {dimension_numbers = #tpu.dot_dimension_numbers<[1], [0], [0], [1], [0, 0, 1, 1], [], []>} : vector<8x128xf32>, vector<128x128xf32>, vector<8x128xf32> -> vector<8x128xf32>
    %c0_6 = arith.constant 0 : index
    %c0_7 = arith.constant 0 : index
    %6 = vector.load %arg2[%c0_6, %c0_7] : memref<1x128xf32, #tpu.memory_space<vmem>>, vector<1x128xf32>
    %7 = vector.broadcast %6 : vector<1x128xf32> to vector<8x128xf32>
    %8 = arith.addf %5, %7 : vector<8x128xf32>
    %cst_8 = arith.constant 0.000000e+00 : f32
    %9 = vector.broadcast %cst_8 : f32 to vector<8x128xf32>
    %10 = arith.maximumf %8, %9 : vector<8x128xf32>
    %c0_9 = arith.constant 0 : index
    %c0_10 = arith.constant 0 : index
    %11 = vector.load %arg3[%c0_9, %c0_10] : memref<8x128xf32, #tpu.memory_space<vmem>>, vector<8x128xf32>
    tpu.vector_store %arg3[%c0_9, %c0_10], %10 {strides = array<i32>} : memref<8x128xf32, #tpu.memory_space<vmem>>, vector<8x128xf32>,
    return
  }
}

</mosaic_0001>

<bundles_post_ra>
// kernel: _lambda_.13
= control target key start
LH: loop header
LB: loop body
LE: loop exit
PB: predicated region body
PF: predicated region fallthrough
CT: control target
= control target key end

     0   :  { %s2820_s1 = inlined_call_operand.vmem [shape: bf16[256,128], index: 1, kind: input, shape index: {}]   ;;  %s2821_s0 = inlined_call_operand.vmem [shape: bf16[512,256], index: 0, kind: input, shape index: {}]   ;;  %s2822_s2 = inlined_call_operand.vmem [shape: f32[1,128], index: 2, kind: input, shape index: {}]   ;;  %s2823_s3 = inlined_call_operand.vmem [shape: f32[1,128], index: 3, kind: input, shape index: {}]   ;;  %s2824_s4 = inlined_call_operand.vmem [shape: bf16[512,128], index: 4, kind: output, shape index: {}]  }
   0x1   :  { %v1917_v0 = vld [vmem:[%s2820_s1 + $0x38] sm:$0xff]  ;;  %v1916_v2 = vld [vmem:[%s2820_s1 + $0x30] sm:$0xff]  ;;  %v1915_v4 = vld [vmem:[%s2820_s1 + $0x28] sm:$0xff] }
   0x2   :  { %v1925_v1 = vld [vmem:[%s2820_s1 + $0x78] sm:$0xff]  ;;  %661 = vmatpush.bf16.msra.mxu0 %v1917_v0  ;;  %2117 = vmatpush.bf16.msra.mxu2 %v1917_v0  ;;  %v1924_v3 = vld [vmem:[%s2820_s1 + $0x70] sm:$0xff]  ;;  %v1923_v5 = vld [vmem:[%s2820_s1 + $0x68] sm:$0xff] }
   0x3   :  { %830 = vmatpush.bf16.msra.mxu1 %v1925_v1  ;;  %2125 = vmatpush.bf16.msra.mxu3 %v1925_v1  ;;  %v1914_v6 = vld [vmem:[%s2820_s1 + $0x20] sm:$0xff]  ;;  %v1913_v8 = vld [vmem:[%s2820_s1 + $0x18] sm:$0xff]  ;;  %v1912_v10 = vld [vmem:[%s2820_s1 + $0x10] sm:$0xff] }
   0x4   :  { %v1922_v7 = vld [vmem:[%s2820_s1 + $0x60] sm:$0xff]  ;;  %v1921_v9 = vld [vmem:[%s2820_s1 + $0x58] sm:$0xff]  ;;  %v1920_v11 = vld [vmem:[%s2820_s1 + $0x50] sm:$0xff] }
   0x5   :  { %v1911_v12 = vld [vmem:[%s2820_s1 + $0x8] sm:$0xff]  ;;  %v1910_v14 = vld [vmem:[%s2820_s1] sm:$0xff]  ;;  %v1536_v28 = vld [vmem:[%s2821_s0 + $0x10] sm:$0xf] }
   0x6   :  { %662 = vmatpush.bf16.msra.mxu0 %v1916_v2  ;;  %2118 = vmatpush.bf16.msra.mxu2 %v1916_v2  ;;  %v1919_v13 = vld [vmem:[%s2820_s1 + $0x48] sm:$0xff]  ;;  %v1918_v15 = vld [vmem:[%s2820_s1 + $0x40] sm:$0xff]  ;;  %v1849_v29 = vld [vmem:[%s2821_s0 + $0x14] sm:$0xf0] }
   0x7   :  { %831 = vmatpush.bf16.msra.mxu1 %v1924_v3  ;;  %2126 = vmatpush.bf16.msra.mxu3 %v1924_v3  ;;  %v1528_v16 = vld [vmem:[%s2821_s0] sm:$0xf]  ;;  %v1847_v17 = vld [vmem:[%s2821_s0 + $0x4] sm:$0xf0]  ;;  %v1846_v20 = vld [vmem:[%s2821_s0 + $0x4] sm:$0xf]  ;;  %v1537_v36 = vor.u32 %v1849_v29, %v1536_v28 }
   0x8   :  { %v1656_v18 = vld [vmem:[%s2821_s0 + $0x100] sm:$0xf]  ;;  %v1879_v19 = vld [vmem:[%s2821_s0 + $0x104] sm:$0xf0]  ;;  %v1530_v21 = vld [vmem:[%s2821_s0 + $0x8] sm:$0xf0]  ;;  %v1529_v24 = vor.u32 %v1847_v17, %v1528_v16 }
   0x9   :  { %v1878_v22 = vld [vmem:[%s2821_s0 + $0x104] sm:$0xf]  ;;  %v1658_v23 = vld [vmem:[%s2821_s0 + $0x108] sm:$0xf0]  ;;  %v1657_v25 = vor.u32 %v1879_v19, %v1656_v18  ;;  %v1533_v26 = vor.u32 %v1846_v20, %v1530_v21  ;;  %v1664_v30 = vld [vmem:[%s2821_s0 + $0x110] sm:$0xf] }
   0xa   :  { %663 = vmatpush.bf16.msra.mxu0 %v1915_v4  ;;  %2119 = vmatpush.bf16.msra.mxu2 %v1915_v4  ;;  %v1661_v27 = vor.u32 %v1878_v22, %v1658_v23  ;;  %v1881_v31 = vld [vmem:[%s2821_s0 + $0x114] sm:$0xf0]  ;;  %v1848_v32 = vld [vmem:[%s2821_s0 + $0x14] sm:$0xf]  ;;  %v1538_v33 = vld [vmem:[%s2821_s0 + $0x18] sm:$0xf0] }
   0xb   :  { %832 = vmatpush.bf16.msra.mxu1 %v1923_v5  ;;  %2127 = vmatpush.bf16.msra.mxu3 %v1923_v5  ;;  %v1880_v34 = vld [vmem:[%s2821_s0 + $0x114] sm:$0xf]  ;;  %v1666_v35 = vld [vmem:[%s2821_s0 + $0x118] sm:$0xf0]  ;;  %v1665_v37 = vor.u32 %v1881_v31, %v1664_v30  ;;  %v1541_v38 = vor.u32 %v1848_v32, %v1538_v33  ;;  %v1544_v40 = vld [vmem:[%s2821_s0 + $0x20] sm:$0xf] }
   0xc   :  { %v1669_v39 = vor.u32 %v1880_v34, %v1666_v35  ;;  %v1851_v41 = vld [vmem:[%s2821_s0 + $0x24] sm:$0xf0]  ;;  %v1672_v42 = vld [vmem:[%s2821_s0 + $0x120] sm:$0xf]  ;;  %v1850_v44 = vld [vmem:[%s2821_s0 + $0x24] sm:$0xf] }
   0xd   :  { %v1883_v43 = vld [vmem:[%s2821_s0 + $0x124] sm:$0xf0]  ;;  %v1546_v45 = vld [vmem:[%s2821_s0 + $0x28] sm:$0xf0]  ;;  %v1882_v46 = vld [vmem:[%s2821_s0 + $0x124] sm:$0xf]  ;;  %v1545_v48 = vor.u32 %v1851_v41, %v1544_v40 }
   0xe   :  { %664 = vmatpush.bf16.msra.mxu0 %v1914_v6  ;;  %2120 = vmatpush.bf16.msra.mxu2 %v1914_v6  ;;  %v1674_v47 = vld [vmem:[%s2821_s0 + $0x128] sm:$0xf0]  ;;  %v1673_v49 = vor.u32 %v1883_v43, %v1672_v42  ;;  %v1549_v50 = vor.u32 %v1850_v44, %v1546_v45  ;;  %v1552_v52 = vld [vmem:[%s2821_s0 + $0x30] sm:$0xf]  ;;  %v1853_v53 = vld [vmem:[%s2821_s0 + $0x34] sm:$0xf0] }
   0xf   :  { %833 = vmatpush.bf16.msra.mxu1 %v1922_v7  ;;  %2128 = vmatpush.bf16.msra.mxu3 %v1922_v7  ;;  %v1677_v51 = vor.u32 %v1882_v46, %v1674_v47  ;;  %v1680_v54 = vld [vmem:[%s2821_s0 + $0x130] sm:$0xf]  ;;  %v1885_v55 = vld [vmem:[%s2821_s0 + $0x134] sm:$0xf0]  ;;  %v1852_v56 = vld [vmem:[%s2821_s0 + $0x34] sm:$0xf]  ;;  %v1553_v60 = vor.u32 %v1853_v53, %v1552_v52 }
  0x10   :  { %v1554_v57 = vld [vmem:[%s2821_s0 + $0x38] sm:$0xf0]  ;;  %v1884_v58 = vld [vmem:[%s2821_s0 + $0x134] sm:$0xf]  ;;  %v1681_v61 = vor.u32 %v1885_v55, %v1680_v54  ;;  %v1560_v0 = vld [vmem:[%s2821_s0 + $0x40] sm:$0xf] }
  0x11   :  { %v1682_v59 = vld [vmem:[%s2821_s0 + $0x138] sm:$0xf0]  ;;  %v1557_v62 = vor.u32 %v1852_v56, %v1554_v57  ;;  %v1855_v1 = vld [vmem:[%s2821_s0 + $0x44] sm:$0xf0]  ;;  %v1688_v2 = vld [vmem:[%s2821_s0 + $0x140] sm:$0xf] }
  0x12   :  { %665 = vmatpush.bf16.msra.mxu0 %v1913_v8  ;;  %2121 = vmatpush.bf16.msra.mxu2 %v1913_v8  ;;  %v1685_v63 = vor.u32 %v1884_v58, %v1682_v59  ;;  %v1887_v3 = vld [vmem:[%s2821_s0 + $0x144] sm:$0xf0]  ;;  %v1854_v4 = vld [vmem:[%s2821_s0 + $0x44] sm:$0xf]  ;;  %v1562_v5 = vld [vmem:[%s2821_s0 + $0x48] sm:$0xf0]  ;;  %v1561_v8 = vor.u32 %v1855_v1, %v1560_v0 }
  0x13   :  { %834 = vmatpush.bf16.msra.mxu1 %v1921_v9  ;;  %2129 = vmatpush.bf16.msra.mxu3 %v1921_v9  ;;  %v1886_v6 = vld [vmem:[%s2821_s0 + $0x144] sm:$0xf]  ;;  %v1690_v7 = vld [vmem:[%s2821_s0 + $0x148] sm:$0xf0]  ;;  %v1689_v9 = vor.u32 %v1887_v3, %v1688_v2  ;;  %v1856_v16 = vld [vmem:[%s2821_s0 + $0x54] sm:$0xf] }
  0x14   :  { %v1570_v17 = vld [vmem:[%s2821_s0 + $0x58] sm:$0xf0]  ;;  %v1888_v18 = vld [vmem:[%s2821_s0 + $0x154] sm:$0xf]  ;;  %v1858_v28 = vld [vmem:[%s2821_s0 + $0x64] sm:$0xf] }
  0x15   :  { %v1698_v19 = vld [vmem:[%s2821_s0 + $0x158] sm:$0xf0]  ;;  %v1573_v22 = vor.u32 %v1856_v16, %v1570_v17  ;;  %v1578_v29 = vld [vmem:[%s2821_s0 + $0x68] sm:$0xf0]  ;;  %v1890_v30 = vld [vmem:[%s2821_s0 + $0x164] sm:$0xf] }
  0x16   :  { %666 = vmatpush.bf16.msra.mxu0 %v1912_v10  ;;  %2122 = vmatpush.bf16.msra.mxu2 %v1912_v10  ;;  %v1565_v10 = vor.u32 %v1854_v4, %v1562_v5  ;;  %v1701_v23 = vor.u32 %v1888_v18, %v1698_v19  ;;  %v1706_v31 = vld [vmem:[%s2821_s0 + $0x168] sm:$0xf0]  ;;  %v1581_v34 = vor.u32 %v1858_v28, %v1578_v29  ;;  %v1860_v40 = vld [vmem:[%s2821_s0 + $0x74] sm:$0xf]  ;;  %v1586_v41 = vld [vmem:[%s2821_s0 + $0x78] sm:$0xf0] }
  0x17   :  { %835 = vmatpush.bf16.msra.mxu1 %v1920_v11  ;;  %2130 = vmatpush.bf16.msra.mxu3 %v1920_v11  ;;  %v1693_v11 = vor.u32 %v1886_v6, %v1690_v7  ;;  %v1709_v35 = vor.u32 %v1890_v30, %v1706_v31  ;;  %v1892_v42 = vld [vmem:[%s2821_s0 + $0x174] sm:$0xf]  ;;  %v1714_v43 = vld [vmem:[%s2821_s0 + $0x178] sm:$0xf0]  ;;  %v1589_v46 = vor.u32 %v1860_v40, %v1586_v41  ;;  %v1862_v52 = vld [vmem:[%s2821_s0 + $0x84] sm:$0xf] }
  0x18   :  { %v1717_v47 = vor.u32 %v1892_v42, %v1714_v43  ;;  %v1594_v53 = vld [vmem:[%s2821_s0 + $0x88] sm:$0xf0]  ;;  %v1894_v54 = vld [vmem:[%s2821_s0 + $0x184] sm:$0xf]  ;;  %v2435_v3 = vld [vmem:[%s2823_s3] ss:$0 sm:$0xff] }
  0x19   :  { %v1722_v55 = vld [vmem:[%s2821_s0 + $0x188] sm:$0xf0]  ;;  %v1597_v59 = vor.u32 %v1862_v52, %v1594_v53  ;;  %v1896_v16 = vld [vmem:[%s2821_s0 + $0x194] sm:$0xf]  ;;  %v1730_v17 = vld [vmem:[%s2821_s0 + $0x198] sm:$0xf0] }
  0x1a   :  { %667 = vmatpush.bf16.msra.mxu0 %v1911_v12  ;;  %2123 = vmatpush.bf16.msra.mxu2 %v1911_v12  ;;  %v1568_v12 = vld [vmem:[%s2821_s0 + $0x50] sm:$0xf]  ;;  %v1733_v29 = vor.u32 %v1896_v16, %v1730_v17  ;;  %v1866_v52 = vld [vmem:[%s2821_s0 + $0xa4] sm:$0xf]  ;;  %v1610_v53 = vld [vmem:[%s2821_s0 + $0xa8] sm:$0xf0] }
  0x1b   :  { %836 = vmatpush.bf16.msra.mxu1 %v1919_v13  ;;  %2131 = vmatpush.bf16.msra.mxu3 %v1919_v13  ;;  %v1857_v13 = vld [vmem:[%s2821_s0 + $0x54] sm:$0xf0] }
  0x1c   :  { %v1569_v20 = vor.u32 %v1857_v13, %v1568_v12  ;;  %v1897_v13 = vld [vmem:[%s2821_s0 + $0x194] sm:$0xf0] }
  0x1e   :  { %668 = vmatpush.bf16.msra.mxu0 %v1910_v14  ;;  %2124 = vmatpush.bf16.msra.mxu2 %v1910_v14  ;;  %v1696_v14 = vld [vmem:[%s2821_s0 + $0x150] sm:$0xf] }
  0x1f   :  { %837 = vmatpush.bf16.msra.mxu1 %v1918_v15  ;;  %2132 = vmatpush.bf16.msra.mxu3 %v1918_v15  ;;  %v1889_v15 = vld [vmem:[%s2821_s0 + $0x154] sm:$0xf0] }
  0x20   :  { %v1697_v21 = vor.u32 %v1889_v15, %v1696_v14  ;;  %v1864_v14 = vld [vmem:[%s2821_s0 + $0x94] sm:$0xf]  ;;  %v1602_v15 = vld [vmem:[%s2821_s0 + $0x98] sm:$0xf0] }
  0x21   :  { %669 = vmatmul.bf16.vlgmr.msra.gmra.mxu0 %v1529_v24  ;;  %749 = vmatmul.bf16.vlgmr.msra.gmra.mxu2 %v1657_v25  ;;  %v1576_v24 = vld [vmem:[%s2821_s0 + $0x60] sm:$0xf]  ;;  %v1859_v25 = vld [vmem:[%s2821_s0 + $0x64] sm:$0xf0] }
  0x22   :  { %838 = vmatmul.bf16.vlgmr.msra.gmra.mxu1 %v1533_v26  ;;  %918 = vmatmul.bf16.vlgmr.msra.gmra.mxu3 %v1661_v27  ;;  %v1704_v26 = vld [vmem:[%s2821_s0 + $0x160] sm:$0xf]  ;;  %v1891_v27 = vld [vmem:[%s2821_s0 + $0x164] sm:$0xf0]  ;;  %v1577_v32 = vor.u32 %v1859_v25, %v1576_v24  ;;  %v1605_v24 = vor.u32 %v1864_v14, %v1602_v15 }
  0x23   :  { %v1705_v33 = vor.u32 %v1891_v27, %v1704_v26 }
  0x31   :  { %674 = vmatmul.bf16.gmra.mxu0 %v1537_v36  ;;  %754 = vmatmul.bf16.gmra.mxu2 %v1665_v37  ;;  %v1584_v36 = vld [vmem:[%s2821_s0 + $0x70] sm:$0xf]  ;;  %v1861_v37 = vld [vmem:[%s2821_s0 + $0x74] sm:$0xf0] }
  0x32   :  { %843 = vmatmul.bf16.gmra.mxu1 %v1541_v38  ;;  %923 = vmatmul.bf16.gmra.mxu3 %v1669_v39  ;;  %v1712_v38 = vld [vmem:[%s2821_s0 + $0x170] sm:$0xf]  ;;  %v1893_v39 = vld [vmem:[%s2821_s0 + $0x174] sm:$0xf0]  ;;  %v1585_v44 = vor.u32 %v1861_v37, %v1584_v36 }
  0x33   :  { %v1713_v45 = vor.u32 %v1893_v39, %v1712_v38 }
  0x41   :  { %679 = vmatmul.bf16.gmra.mxu0 %v1545_v48  ;;  %759 = vmatmul.bf16.gmra.mxu2 %v1673_v49  ;;  %v1592_v48 = vld [vmem:[%s2821_s0 + $0x80] sm:$0xf]  ;;  %v1863_v49 = vld [vmem:[%s2821_s0 + $0x84] sm:$0xf0] }
  0x42   :  { %848 = vmatmul.bf16.gmra.mxu1 %v1549_v50  ;;  %928 = vmatmul.bf16.gmra.mxu3 %v1677_v51  ;;  %v1720_v50 = vld [vmem:[%s2821_s0 + $0x180] sm:$0xf]  ;;  %v1895_v51 = vld [vmem:[%s2821_s0 + $0x184] sm:$0xf0]  ;;  %v1593_v56 = vor.u32 %v1863_v49, %v1592_v48 }
  0x43   :  { %v1721_v57 = vor.u32 %v1895_v51, %v1720_v50  ;;  %v1736_v48 = vld [vmem:[%s2821_s0 + $0x1a0] sm:$0xf]  ;;  %v1899_v51 = vld [vmem:[%s2821_s0 + $0x1a4] sm:$0xf0] }
  0x51   :  { %684 = vmatmul.bf16.gmra.mxu0 %v1553_v60  ;;  %764 = vmatmul.bf16.gmra.mxu2 %v1681_v61  ;;  %v1725_v60 = vor.u32 %v1894_v54, %v1722_v55  ;;  %v1898_v54 = vld [vmem:[%s2821_s0 + $0x1a4] sm:$0xf]  ;;  %v1738_v55 = vld [vmem:[%s2821_s0 + $0x1a8] sm:$0xf0] }
  0x52   :  { %853 = vmatmul.bf16.gmra.mxu1 %v1557_v62  ;;  %933 = vmatmul.bf16.gmra.mxu3 %v1685_v63  ;;  %v2429_v63 = vld [vmem:[%s2822_s2] ss:$0 sm:$0xff] }
  0x61   :  { %689 = vmatmul.bf16.gmra.mxu0 %v1561_v8  ;;  %769 = vmatmul.bf16.gmra.mxu2 %v1689_v9  ;;  %v1600_v8 = vld [vmem:[%s2821_s0 + $0x90] sm:$0xf]  ;;  %v1865_v9 = vld [vmem:[%s2821_s0 + $0x94] sm:$0xf0] }
  0x62   :  { %858 = vmatmul.bf16.gmra.mxu1 %v1565_v10  ;;  %938 = vmatmul.bf16.gmra.mxu3 %v1693_v11  ;;  %v1728_v10 = vld [vmem:[%s2821_s0 + $0x190] sm:$0xf] }
  0x71   :  { %694 = vmatmul.bf16.gmra.mxu0 %v1569_v20  ;;  %774 = vmatmul.bf16.gmra.mxu2 %v1697_v21 }
  0x72   :  { %863 = vmatmul.bf16.gmra.mxu1 %v1573_v22  ;;  %943 = vmatmul.bf16.gmra.mxu3 %v1701_v23  ;;  %v1601_v22 = vor.u32 %v1865_v9, %v1600_v8  ;;  %v1729_v23 = vor.u32 %v1897_v13, %v1728_v10 }
  0x81   :  { %699 = vmatmul.bf16.gmra.mxu0 %v1577_v32  ;;  %779 = vmatmul.bf16.gmra.mxu2 %v1705_v33 }
  0x82   :  { %868 = vmatmul.bf16.gmra.mxu1 %v1581_v34  ;;  %948 = vmatmul.bf16.gmra.mxu3 %v1709_v35 }
  0x91   :  { %704 = vmatmul.bf16.gmra.mxu0 %v1585_v44  ;;  %784 = vmatmul.bf16.gmra.mxu2 %v1713_v45 }
  0x92   :  { %873 = vmatmul.bf16.gmra.mxu1 %v1589_v46  ;;  %953 = vmatmul.bf16.gmra.mxu3 %v1717_v47  ;;  %v1608_v46 = vld [vmem:[%s2821_s0 + $0xa0] sm:$0xf]  ;;  %v1867_v47 = vld [vmem:[%s2821_s0 + $0xa4] sm:$0xf0] }
  0x9e   :  { %v670_v58 = vpop.f32.mrf.mxu0 }
  0x9f   :  { %v839_v61 = vpop.f32.mrf.mxu1 }
  0xa0   :  { %v840_v62 = vadd.f32 %v839_v61, %v670_v58  ;;  %v1737_v61 = vor.u32 %v1899_v51, %v1736_v48 }
  0xa1   :  { %709 = vmatmul.bf16.gmra.mxu0 %v1593_v56  ;;  %789 = vmatmul.bf16.gmra.mxu2 %v1721_v57 }
  0xa2   :  { %878 = vmatmul.bf16.gmra.mxu1 %v1597_v59  ;;  %958 = vmatmul.bf16.gmra.mxu3 %v1725_v60  ;;  %v1198_v2 = vmul.f32 %v2429_v63, %v840_v62  ;;  %v1609_v60 = vor.u32 %v1867_v47, %v1608_v46  ;;  %v1613_v62 = vor.u32 %v1866_v52, %v1610_v53 }
  0xa4   :  { %v750_v0 = vpop.f32.mrf.mxu2  ;;  %v1266_v11 = vadd.f32 %v2435_v3, %v1198_v2 }
  0xa5   :  { %v919_v1 = vpop.f32.mrf.mxu3 }
  0xa6   :  { %v672_v4 = vpop.f32.mrf.mxu0  ;;  %v920_v6 = vadd.f32 %v919_v1, %v750_v0  ;;  %v1330_v25 = vmax.f32 %v1266_v11, 0.0 }
  0xa7   :  { %v841_v5 = vpop.f32.mrf.mxu1 }
  0xa8   :  { %v842_v7 = vadd.f32 %v841_v5, %v672_v4  ;;  %v1230_v18 = vmul.f32 %v2429_v63, %v920_v6  ;;  %v1741_v5 = vor.u32 %v1898_v54, %v1738_v55 }
  0xaa   :  { %v1199_v12 = vmul.f32 %v2429_v63, %v842_v7  ;;  %v1298_v31 = vadd.f32 %v2435_v3, %v1230_v18 }
  0xac   :  { %v1267_v19 = vadd.f32 %v2435_v3, %v1199_v12  ;;  %v752_v20 = vpop.f32.mrf.mxu2  ;;  %v1362_v36 = vmax.f32 %v1298_v31, 0.0  ;;  %v1746_v31 = vld [vmem:[%s2821_s0 + $0x1b8] sm:$0xf0] }
  0xad   :  { %v921_v21 = vpop.f32.mrf.mxu3 }
  0xae   :  { %v1331_v26 = vmax.f32 %v1267_v19, 0.0  ;;  %v922_v27 = vadd.f32 %v921_v21, %v752_v20  ;;  %v675_v28 = vpop.f32.mrf.mxu0 }
  0xaf   :  { %v844_v30 = vpop.f32.mrf.mxu1 }
  0xb0   :  { %v1929_v32 = vpack.c.bf16 %v1331_v26, %v1330_v25  ;;  %v1231_v33 = vmul.f32 %v2429_v63, %v922_v27  ;;  %v845_v35 = vadd.f32 %v844_v30, %v675_v28  ;;  %v1901_v27 = vld [vmem:[%s2821_s0 + $0x1b4] sm:$0xf0]  ;;  %v1868_v28 = vld [vmem:[%s2821_s0 + $0xb4] sm:$0xf] }
  0xb1   :  { %714 = vmatmul.bf16.gmra.mxu0 %v1601_v22  ;;  %794 = vmatmul.bf16.gmra.mxu2 %v1729_v23  ;;  %v1616_v22 = vld [vmem:[%s2821_s0 + $0xb0] sm:$0xf]  ;;  %v1869_v23 = vld [vmem:[%s2821_s0 + $0xb4] sm:$0xf0]  ;;  %v1900_v30 = vld [vmem:[%s2821_s0 + $0x1b4] sm:$0xf] }
  0xb2   :  { %1930 = vst [vmem:[%s2824_s4] sm:$0xff] %v1929_v32   ;;  %v1299_v34 = vadd.f32 %v2435_v3, %v1231_v33  ;;  %883 = vmatmul.bf16.gmra.mxu1 %v1605_v24  ;;  %963 = vmatmul.bf16.gmra.mxu3 %v1733_v29  ;;  %v1200_v41 = vmul.f32 %v2429_v63, %v845_v35  ;;  %v1744_v24 = vld [vmem:[%s2821_s0 + $0x1b0] sm:$0xf]  ;;  %v1618_v29 = vld [vmem:[%s2821_s0 + $0xb8] sm:$0xf0] }
  0xb4   :  { %v1363_v37 = vmax.f32 %v1299_v34, 0.0  ;;  %v755_v38 = vpop.f32.mrf.mxu2  ;;  %v1268_v49 = vadd.f32 %v2435_v3, %v1200_v41 }
  0xb5   :  { %v924_v39 = vpop.f32.mrf.mxu3 }
  0xb6   :  { %v2009_v40 = vpack.c.bf16 %v1363_v37, %v1362_v36  ;;  %v677_v42 = vpop.f32.mrf.mxu0  ;;  %v925_v44 = vadd.f32 %v924_v39, %v755_v38  ;;  %v1332_v0 = vmax.f32 %v1268_v49, 0.0  ;;  %v1617_v36 = vor.u32 %v1869_v23, %v1616_v22 }
  0xb7   :  { %v846_v43 = vpop.f32.mrf.mxu1  ;;  %v1745_v37 = vor.u32 %v1901_v27, %v1744_v24  ;;  %v1621_v38 = vor.u32 %v1868_v28, %v1618_v29 }
  0xb8   :  { %2101 = vst [vmem:[%s2824_s4 + $0x80] sm:$0xff] %v2009_v40   ;;  %v847_v45 = vadd.f32 %v846_v43, %v677_v42  ;;  %v1232_v56 = vmul.f32 %v2429_v63, %v925_v44  ;;  %v1749_v43 = vor.u32 %v1900_v30, %v1746_v31 }
  0xba   :  { %v1201_v50 = vmul.f32 %v2429_v63, %v847_v45  ;;  %v1300_v7 = vadd.f32 %v2435_v3, %v1232_v56 }
  0xbc   :  { %v1269_v57 = vadd.f32 %v2435_v3, %v1201_v50  ;;  %v757_v58 = vpop.f32.mrf.mxu2  ;;  %v1364_v12 = vmax.f32 %v1300_v7, 0.0  ;;  %v1754_v7 = vld [vmem:[%s2821_s0 + $0x1c8] sm:$0xf0] }
  0xbd   :  { %v926_v59 = vpop.f32.mrf.mxu3 }
  0xbe   :  { %v1333_v1 = vmax.f32 %v1269_v57, 0.0  ;;  %v927_v2 = vadd.f32 %v926_v59, %v757_v58  ;;  %v680_v4 = vpop.f32.mrf.mxu0 }
  0xbf   :  { %v849_v6 = vpop.f32.mrf.mxu1 }
  0xc0   :  { %v1934_v8 = vpack.c.bf16 %v1333_v1, %v1332_v0  ;;  %v1233_v9 = vmul.f32 %v2429_v63, %v927_v2  ;;  %v850_v11 = vadd.f32 %v849_v6, %v680_v4  ;;  %v1903_v2 = vld [vmem:[%s2821_s0 + $0x1c4] sm:$0xf0]  ;;  %v1870_v4 = vld [vmem:[%s2821_s0 + $0xc4] sm:$0xf] }
  0xc1   :  { %719 = vmatmul.bf16.gmra.mxu0 %v1609_v60  ;;  %799 = vmatmul.bf16.gmra.mxu2 %v1737_v61  ;;  %v1624_v60 = vld [vmem:[%s2821_s0 + $0xc0] sm:$0xf]  ;;  %v1871_v61 = vld [vmem:[%s2821_s0 + $0xc4] sm:$0xf0]  ;;  %v1902_v6 = vld [vmem:[%s2821_s0 + $0x1c4] sm:$0xf] }
  0xc2   :  { %2086 = vst [vmem:[%s2824_s4 + $0x8] sm:$0xff] %v1934_v8   ;;  %v1301_v10 = vadd.f32 %v2435_v3, %v1233_v9  ;;  %888 = vmatmul.bf16.gmra.mxu1 %v1613_v62  ;;  %968 = vmatmul.bf16.gmra.mxu3 %v1741_v5  ;;  %v1202_v17 = vmul.f32 %v2429_v63, %v850_v11  ;;  %v1752_v62 = vld [vmem:[%s2821_s0 + $0x1c0] sm:$0xf]  ;;  %v1626_v5 = vld [vmem:[%s2821_s0 + $0xc8] sm:$0xf0] }
  0xc4   :  { %v1365_v13 = vmax.f32 %v1301_v10, 0.0  ;;  %v760_v14 = vpop.f32.mrf.mxu2  ;;  %v1270_v25 = vadd.f32 %v2435_v3, %v1202_v17 }
  0xc5   :  { %v929_v15 = vpop.f32.mrf.mxu3 }
  0xc6   :  { %v2014_v16 = vpack.c.bf16 %v1365_v13, %v1364_v12  ;;  %v682_v18 = vpop.f32.mrf.mxu0  ;;  %v930_v20 = vadd.f32 %v929_v15, %v760_v14  ;;  %v1334_v39 = vmax.f32 %v1270_v25, 0.0  ;;  %v1625_v12 = vor.u32 %v1871_v61, %v1624_v60 }
  0xc7   :  { %v851_v19 = vpop.f32.mrf.mxu1  ;;  %v1753_v13 = vor.u32 %v1903_v2, %v1752_v62  ;;  %v1629_v14 = vor.u32 %v1870_v4, %v1626_v5 }
  0xc8   :  { %2102 = vst [vmem:[%s2824_s4 + $0x88] sm:$0xff] %v2014_v16   ;;  %v852_v21 = vadd.f32 %v851_v19, %v682_v18  ;;  %v1234_v32 = vmul.f32 %v2429_v63, %v930_v20  ;;  %v1757_v19 = vor.u32 %v1902_v6, %v1754_v7 }
  0xca   :  { %v1203_v26 = vmul.f32 %v2429_v63, %v852_v21  ;;  %v1302_v45 = vadd.f32 %v2435_v3, %v1234_v32 }
  0xcc   :  { %v1271_v33 = vadd.f32 %v2435_v3, %v1203_v26  ;;  %v762_v34 = vpop.f32.mrf.mxu2  ;;  %v1366_v50 = vmax.f32 %v1302_v45, 0.0  ;;  %v1762_v45 = vld [vmem:[%s2821_s0 + $0x1d8] sm:$0xf0] }
  0xcd   :  { %v931_v35 = vpop.f32.mrf.mxu3 }
  0xce   :  { %v1335_v40 = vmax.f32 %v1271_v33, 0.0  ;;  %v932_v41 = vadd.f32 %v931_v35, %v762_v34  ;;  %v685_v42 = vpop.f32.mrf.mxu0 }
  0xcf   :  { %v854_v44 = vpop.f32.mrf.mxu1 }
  0xd0   :  { %v1939_v46 = vpack.c.bf16 %v1335_v40, %v1334_v39  ;;  %v1235_v47 = vmul.f32 %v2429_v63, %v932_v41  ;;  %v855_v49 = vadd.f32 %v854_v44, %v685_v42  ;;  %v1905_v41 = vld [vmem:[%s2821_s0 + $0x1d4] sm:$0xf0]  ;;  %v1872_v42 = vld [vmem:[%s2821_s0 + $0xd4] sm:$0xf] }
  0xd1   :  { %724 = vmatmul.bf16.gmra.mxu0 %v1617_v36  ;;  %804 = vmatmul.bf16.gmra.mxu2 %v1745_v37  ;;  %v1632_v36 = vld [vmem:[%s2821_s0 + $0xd0] sm:$0xf]  ;;  %v1873_v37 = vld [vmem:[%s2821_s0 + $0xd4] sm:$0xf0]  ;;  %v1904_v44 = vld [vmem:[%s2821_s0 + $0x1d4] sm:$0xf] }
  0xd2   :  { %2087 = vst [vmem:[%s2824_s4 + $0x10] sm:$0xff] %v1939_v46   ;;  %v1303_v48 = vadd.f32 %v2435_v3, %v1235_v47  ;;  %893 = vmatmul.bf16.gmra.mxu1 %v1621_v38  ;;  %973 = vmatmul.bf16.gmra.mxu3 %v1749_v43  ;;  %v1204_v55 = vmul.f32 %v2429_v63, %v855_v49  ;;  %v1760_v38 = vld [vmem:[%s2821_s0 + $0x1d0] sm:$0xf]  ;;  %v1634_v43 = vld [vmem:[%s2821_s0 + $0xd8] sm:$0xf0] }
  0xd4   :  { %v1367_v51 = vmax.f32 %v1303_v48, 0.0  ;;  %v765_v52 = vpop.f32.mrf.mxu2  ;;  %v1272_v0 = vadd.f32 %v2435_v3, %v1204_v55 }
  0xd5   :  { %v934_v53 = vpop.f32.mrf.mxu3 }
  0xd6   :  { %v2019_v54 = vpack.c.bf16 %v1367_v51, %v1366_v50  ;;  %v687_v56 = vpop.f32.mrf.mxu0  ;;  %v935_v58 = vadd.f32 %v934_v53, %v765_v52  ;;  %v1336_v15 = vmax.f32 %v1272_v0, 0.0  ;;  %v1633_v50 = vor.u32 %v1873_v37, %v1632_v36 }
  0xd7   :  { %v856_v57 = vpop.f32.mrf.mxu1  ;;  %v1761_v51 = vor.u32 %v1905_v41, %v1760_v38  ;;  %v1637_v52 = vor.u32 %v1872_v42, %v1634_v43 }
  0xd8   :  { %2103 = vst [vmem:[%s2824_s4 + $0x90] sm:$0xff] %v2019_v54   ;;  %v857_v59 = vadd.f32 %v856_v57, %v687_v56  ;;  %v1236_v8 = vmul.f32 %v2429_v63, %v935_v58  ;;  %v1765_v57 = vor.u32 %v1904_v44, %v1762_v45 }
  0xda   :  { %v1205_v1 = vmul.f32 %v2429_v63, %v857_v59  ;;  %v1304_v21 = vadd.f32 %v2435_v3, %v1236_v8 }
  0xdc   :  { %v1273_v9 = vadd.f32 %v2435_v3, %v1205_v1  ;;  %v767_v10 = vpop.f32.mrf.mxu2  ;;  %v1368_v26 = vmax.f32 %v1304_v21, 0.0  ;;  %v1770_v21 = vld [vmem:[%s2821_s0 + $0x1e8] sm:$0xf0] }
  0xdd   :  { %v936_v11 = vpop.f32.mrf.mxu3 }
  0xde   :  { %v1337_v16 = vmax.f32 %v1273_v9, 0.0  ;;  %v937_v17 = vadd.f32 %v936_v11, %v767_v10  ;;  %v690_v18 = vpop.f32.mrf.mxu0 }
  0xdf   :  { %v859_v20 = vpop.f32.mrf.mxu1 }
  0xe0   :  { %v1944_v22 = vpack.c.bf16 %v1337_v16, %v1336_v15  ;;  %v1237_v23 = vmul.f32 %v2429_v63, %v937_v17  ;;  %v860_v25 = vadd.f32 %v859_v20, %v690_v18  ;;  %v1907_v17 = vld [vmem:[%s2821_s0 + $0x1e4] sm:$0xf0]  ;;  %v1874_v18 = vld [vmem:[%s2821_s0 + $0xe4] sm:$0xf] }
  0xe1   :  { %729 = vmatmul.bf16.gmra.mxu0 %v1625_v12  ;;  %809 = vmatmul.bf16.gmra.mxu2 %v1753_v13  ;;  %v1640_v12 = vld [vmem:[%s2821_s0 + $0xe0] sm:$0xf]  ;;  %v1875_v13 = vld [vmem:[%s2821_s0 + $0xe4] sm:$0xf0]  ;;  %v1906_v20 = vld [vmem:[%s2821_s0 + $0x1e4] sm:$0xf] }
  0xe2   :  { %2088 = vst [vmem:[%s2824_s4 + $0x18] sm:$0xff] %v1944_v22   ;;  %v1305_v24 = vadd.f32 %v2435_v3, %v1237_v23  ;;  %898 = vmatmul.bf16.gmra.mxu1 %v1629_v14  ;;  %978 = vmatmul.bf16.gmra.mxu3 %v1757_v19  ;;  %v1206_v31 = vmul.f32 %v2429_v63, %v860_v25  ;;  %v1768_v14 = vld [vmem:[%s2821_s0 + $0x1e0] sm:$0xf]  ;;  %v1642_v19 = vld [vmem:[%s2821_s0 + $0xe8] sm:$0xf0] }
  0xe4   :  { %v1369_v27 = vmax.f32 %v1305_v24, 0.0  ;;  %v770_v28 = vpop.f32.mrf.mxu2  ;;  %v1274_v39 = vadd.f32 %v2435_v3, %v1206_v31 }
  0xe5   :  { %v939_v29 = vpop.f32.mrf.mxu3 }
  0xe6   :  { %v2024_v30 = vpack.c.bf16 %v1369_v27, %v1368_v26  ;;  %v692_v32 = vpop.f32.mrf.mxu0  ;;  %v940_v34 = vadd.f32 %v939_v29, %v770_v28  ;;  %v1338_v53 = vmax.f32 %v1274_v39, 0.0  ;;  %v1641_v26 = vor.u32 %v1875_v13, %v1640_v12 }
  0xe7   :  { %v861_v33 = vpop.f32.mrf.mxu1  ;;  %v1769_v27 = vor.u32 %v1907_v17, %v1768_v14  ;;  %v1645_v28 = vor.u32 %v1874_v18, %v1642_v19 }
  0xe8   :  { %2104 = vst [vmem:[%s2824_s4 + $0x98] sm:$0xff] %v2024_v30   ;;  %v862_v35 = vadd.f32 %v861_v33, %v692_v32  ;;  %v1238_v46 = vmul.f32 %v2429_v63, %v940_v34  ;;  %v1773_v33 = vor.u32 %v1906_v20, %v1770_v21 }
  0xea   :  { %v1207_v40 = vmul.f32 %v2429_v63, %v862_v35  ;;  %v1306_v59 = vadd.f32 %v2435_v3, %v1238_v46 }
  0xec   :  { %v1275_v47 = vadd.f32 %v2435_v3, %v1207_v40  ;;  %v772_v48 = vpop.f32.mrf.mxu2  ;;  %v1370_v1 = vmax.f32 %v1306_v59, 0.0  ;;  %v1778_v59 = vld [vmem:[%s2821_s0 + $0x1f8] sm:$0xf0] }
  0xed   :  { %v941_v49 = vpop.f32.mrf.mxu3 }
  0xee   :  { %v1339_v54 = vmax.f32 %v1275_v47, 0.0  ;;  %v942_v55 = vadd.f32 %v941_v49, %v772_v48  ;;  %v695_v56 = vpop.f32.mrf.mxu0 }
  0xef   :  { %v864_v58 = vpop.f32.mrf.mxu1 }
  0xf0   :  { %v1949_v60 = vpack.c.bf16 %v1339_v54, %v1338_v53  ;;  %v1239_v61 = vmul.f32 %v2429_v63, %v942_v55  ;;  %v865_v0 = vadd.f32 %v864_v58, %v695_v56  ;;  %v1909_v55 = vld [vmem:[%s2821_s0 + $0x1f4] sm:$0xf0]  ;;  %v1876_v56 = vld [vmem:[%s2821_s0 + $0xf4] sm:$0xf] }
  0xf1   :  { %734 = vmatmul.bf16.gmra.mxu0 %v1633_v50  ;;  %814 = vmatmul.bf16.gmra.mxu2 %v1761_v51  ;;  %v1648_v50 = vld [vmem:[%s2821_s0 + $0xf0] sm:$0xf]  ;;  %v1877_v51 = vld [vmem:[%s2821_s0 + $0xf4] sm:$0xf0]  ;;  %v1908_v58 = vld [vmem:[%s2821_s0 + $0x1f4] sm:$0xf] }
  0xf2   :  { %2089 = vst [vmem:[%s2824_s4 + $0x20] sm:$0xff] %v1949_v60   ;;  %v1307_v62 = vadd.f32 %v2435_v3, %v1239_v61  ;;  %903 = vmatmul.bf16.gmra.mxu1 %v1637_v52  ;;  %983 = vmatmul.bf16.gmra.mxu3 %v1765_v57  ;;  %v1208_v7 = vmul.f32 %v2429_v63, %v865_v0  ;;  %v1776_v52 = vld [vmem:[%s2821_s0 + $0x1f0] sm:$0xf]  ;;  %v1650_v57 = vld [vmem:[%s2821_s0 + $0xf8] sm:$0xf0] }
  0xf4   :  { %v1371_v2 = vmax.f32 %v1307_v62, 0.0  ;;  %v775_v4 = vpop.f32.mrf.mxu2  ;;  %v1276_v15 = vadd.f32 %v2435_v3, %v1208_v7 }
  0xf5   :  { %v944_v5 = vpop.f32.mrf.mxu3 }
  0xf6   :  { %v2029_v6 = vpack.c.bf16 %v1371_v2, %v1370_v1  ;;  %v697_v8 = vpop.f32.mrf.mxu0  ;;  %v945_v10 = vadd.f32 %v944_v5, %v775_v4  ;;  %v1340_v29 = vmax.f32 %v1276_v15, 0.0  ;;  %v1649_v1 = vor.u32 %v1877_v51, %v1648_v50 }
  0xf7   :  { %v866_v9 = vpop.f32.mrf.mxu1  ;;  %v1777_v2 = vor.u32 %v1909_v55, %v1776_v52  ;;  %v1653_v4 = vor.u32 %v1876_v56, %v1650_v57 }
  0xf8   :  { %2105 = vst [vmem:[%s2824_s4 + $0xa0] sm:$0xff] %v2029_v6   ;;  %v867_v11 = vadd.f32 %v866_v9, %v697_v8  ;;  %v1240_v22 = vmul.f32 %v2429_v63, %v945_v10  ;;  %v1781_v9 = vor.u32 %v1908_v58, %v1778_v59 }
  0xfa   :  { %v1209_v16 = vmul.f32 %v2429_v63, %v867_v11  ;;  %v1308_v35 = vadd.f32 %v2435_v3, %v1240_v22 }
  0xfc   :  { %v1277_v23 = vadd.f32 %v2435_v3, %v1209_v16  ;;  %v777_v24 = vpop.f32.mrf.mxu2  ;;  %v1372_v40 = vmax.f32 %v1308_v35, 0.0 }
  0xfd   :  { %v946_v25 = vpop.f32.mrf.mxu3 }
  0xfe   :  { %v1341_v30 = vmax.f32 %v1277_v23, 0.0  ;;  %v947_v31 = vadd.f32 %v946_v25, %v777_v24  ;;  %v700_v32 = vpop.f32.mrf.mxu0 }
  0xff   :  { %v869_v34 = vpop.f32.mrf.mxu1 }
 0x100   :  { %v1954_v36 = vpack.c.bf16 %v1341_v30, %v1340_v29  ;;  %v1241_v37 = vmul.f32 %v2429_v63, %v947_v31  ;;  %v870_v39 = vadd.f32 %v869_v34, %v700_v32 }
 0x101   :  { %739 = vmatmul.bf16.gmra.mxu0 %v1641_v26  ;;  %819 = vmatmul.bf16.gmra.mxu2 %v1769_v27 }
 0x102   :  { %2090 = vst [vmem:[%s2824_s4 + $0x28] sm:$0xff] %v1954_v36   ;;  %v1309_v38 = vadd.f32 %v2435_v3, %v1241_v37  ;;  %908 = vmatmul.bf16.gmra.mxu1 %v1645_v28  ;;  %988 = vmatmul.bf16.gmra.mxu3 %v1773_v33  ;;  %v1210_v45 = vmul.f32 %v2429_v63, %v870_v39 }
 0x104   :  { %v1373_v41 = vmax.f32 %v1309_v38, 0.0  ;;  %v780_v42 = vpop.f32.mrf.mxu2  ;;  %v1278_v53 = vadd.f32 %v2435_v3, %v1210_v45 }
 0x105   :  { %v949_v43 = vpop.f32.mrf.mxu3 }
 0x106   :  { %v2034_v44 = vpack.c.bf16 %v1373_v41, %v1372_v40  ;;  %v702_v46 = vpop.f32.mrf.mxu0  ;;  %v950_v48 = vadd.f32 %v949_v43, %v780_v42  ;;  %v1342_v5 = vmax.f32 %v1278_v53, 0.0 }
 0x107   :  { %v871_v47 = vpop.f32.mrf.mxu1 }
 0x108   :  { %2106 = vst [vmem:[%s2824_s4 + $0xa8] sm:$0xff] %v2034_v44   ;;  %v872_v49 = vadd.f32 %v871_v47, %v702_v46  ;;  %v1242_v60 = vmul.f32 %v2429_v63, %v950_v48 }
 0x10a   :  { %v1211_v54 = vmul.f32 %v2429_v63, %v872_v49  ;;  %v1310_v11 = vadd.f32 %v2435_v3, %v1242_v60 }
 0x10c   :  { %v1279_v61 = vadd.f32 %v2435_v3, %v1211_v54  ;;  %v782_v62 = vpop.f32.mrf.mxu2  ;;  %v1374_v16 = vmax.f32 %v1310_v11, 0.0 }
 0x10d   :  { %v951_v0 = vpop.f32.mrf.mxu3 }
 0x10e   :  { %v1343_v6 = vmax.f32 %v1279_v61, 0.0  ;;  %v952_v7 = vadd.f32 %v951_v0, %v782_v62  ;;  %v705_v8 = vpop.f32.mrf.mxu0 }
 0x10f   :  { %v874_v10 = vpop.f32.mrf.mxu1 }
 0x110   :  { %v1959_v12 = vpack.c.bf16 %v1343_v6, %v1342_v5  ;;  %v1243_v13 = vmul.f32 %v2429_v63, %v952_v7  ;;  %v875_v15 = vadd.f32 %v874_v10, %v705_v8 }
 0x111   :  { %744 = vmatmul.bf16.gmra.mxu0 %v1649_v1  ;;  %824 = vmatmul.bf16.gmra.mxu2 %v1777_v2 }
 0x112   :  { %2091 = vst [vmem:[%s2824_s4 + $0x30] sm:$0xff] %v1959_v12   ;;  %v1311_v14 = vadd.f32 %v2435_v3, %v1243_v13  ;;  %913 = vmatmul.bf16.gmra.mxu1 %v1653_v4  ;;  %993 = vmatmul.bf16.gmra.mxu3 %v1781_v9  ;;  %v1212_v21 = vmul.f32 %v2429_v63, %v875_v15 }
 0x114   :  { %v1375_v17 = vmax.f32 %v1311_v14, 0.0  ;;  %v785_v18 = vpop.f32.mrf.mxu2  ;;  %v1280_v26 = vadd.f32 %v2435_v3, %v1212_v21 }
 0x115   :  { %v954_v19 = vpop.f32.mrf.mxu3 }
 0x116   :  { %v2039_v20 = vpack.c.bf16 %v1375_v17, %v1374_v16  ;;  %v707_v22 = vpop.f32.mrf.mxu0  ;;  %v955_v24 = vadd.f32 %v954_v19, %v785_v18  ;;  %v1344_v32 = vmax.f32 %v1280_v26, 0.0 }
 0x117   :  { %v876_v23 = vpop.f32.mrf.mxu1 }
 0x118   :  { %2107 = vst [vmem:[%s2824_s4 + $0xb0] sm:$0xff] %v2039_v20   ;;  %v877_v25 = vadd.f32 %v876_v23, %v707_v22  ;;  %v1244_v28 = vmul.f32 %v2429_v63, %v955_v24 }
 0x11a   :  { %v1213_v27 = vmul.f32 %v2429_v63, %v877_v25  ;;  %v1312_v37 = vadd.f32 %v2435_v3, %v1244_v28 }
 0x11c   :  { %v1281_v29 = vadd.f32 %v2435_v3, %v1213_v27  ;;  %v787_v30 = vpop.f32.mrf.mxu2  ;;  %v1376_v42 = vmax.f32 %v1312_v37, 0.0 }
 0x11d   :  { %v956_v31 = vpop.f32.mrf.mxu3 }
 0x11e   :  { %v1345_v33 = vmax.f32 %v1281_v29, 0.0  ;;  %v957_v34 = vadd.f32 %v956_v31, %v787_v30  ;;  %v710_v35 = vpop.f32.mrf.mxu0 }
 0x11f   :  { %v879_v36 = vpop.f32.mrf.mxu1 }
 0x120   :  { %v1964_v38 = vpack.c.bf16 %v1345_v33, %v1344_v32  ;;  %v1245_v39 = vmul.f32 %v2429_v63, %v957_v34  ;;  %v880_v41 = vadd.f32 %v879_v36, %v710_v35 }
 0x122   :  { %2092 = vst [vmem:[%s2824_s4 + $0x38] sm:$0xff] %v1964_v38   ;;  %v1313_v40 = vadd.f32 %v2435_v3, %v1245_v39  ;;  %v1214_v47 = vmul.f32 %v2429_v63, %v880_v41 }
 0x124   :  { %v1377_v43 = vmax.f32 %v1313_v40, 0.0  ;;  %v790_v44 = vpop.f32.mrf.mxu2  ;;  %v1282_v52 = vadd.f32 %v2435_v3, %v1214_v47 }
 0x125   :  { %v959_v45 = vpop.f32.mrf.mxu3 }
 0x126   :  { %v2044_v46 = vpack.c.bf16 %v1377_v43, %v1376_v42  ;;  %v712_v48 = vpop.f32.mrf.mxu0  ;;  %v960_v50 = vadd.f32 %v959_v45, %v790_v44  ;;  %v1346_v58 = vmax.f32 %v1282_v52, 0.0 }
 0x127   :  { %v881_v49 = vpop.f32.mrf.mxu1 }
 0x128   :  { %2108 = vst [vmem:[%s2824_s4 + $0xb8] sm:$0xff] %v2044_v46   ;;  %v882_v51 = vadd.f32 %v881_v49, %v712_v48  ;;  %v1246_v54 = vmul.f32 %v2429_v63, %v960_v50 }
 0x12a   :  { %v1215_v53 = vmul.f32 %v2429_v63, %v882_v51  ;;  %v1314_v0 = vadd.f32 %v2435_v3, %v1246_v54 }
 0x12c   :  { %v1283_v55 = vadd.f32 %v2435_v3, %v1215_v53  ;;  %v792_v56 = vpop.f32.mrf.mxu2  ;;  %v1378_v6 = vmax.f32 %v1314_v0, 0.0 }
 0x12d   :  { %v961_v57 = vpop.f32.mrf.mxu3 }
 0x12e   :  { %v1347_v59 = vmax.f32 %v1283_v55, 0.0  ;;  %v962_v60 = vadd.f32 %v961_v57, %v792_v56  ;;  %v715_v61 = vpop.f32.mrf.mxu0 }
 0x12f   :  { %v884_v62 = vpop.f32.mrf.mxu1 }
 0x130   :  { %v1969_v1 = vpack.c.bf16 %v1347_v59, %v1346_v58  ;;  %v1247_v2 = vmul.f32 %v2429_v63, %v962_v60  ;;  %v885_v5 = vadd.f32 %v884_v62, %v715_v61 }
 0x132   :  { %2093 = vst [vmem:[%s2824_s4 + $0x40] sm:$0xff] %v1969_v1   ;;  %v1315_v4 = vadd.f32 %v2435_v3, %v1247_v2  ;;  %v1216_v11 = vmul.f32 %v2429_v63, %v885_v5 }
 0x134   :  { %v1379_v7 = vmax.f32 %v1315_v4, 0.0  ;;  %v795_v8 = vpop.f32.mrf.mxu2  ;;  %v1284_v16 = vadd.f32 %v2435_v3, %v1216_v11 }
 0x135   :  { %v964_v9 = vpop.f32.mrf.mxu3 }
 0x136   :  { %v2049_v10 = vpack.c.bf16 %v1379_v7, %v1378_v6  ;;  %v717_v12 = vpop.f32.mrf.mxu0  ;;  %v965_v14 = vadd.f32 %v964_v9, %v795_v8  ;;  %v1348_v22 = vmax.f32 %v1284_v16, 0.0 }
 0x137   :  { %v886_v13 = vpop.f32.mrf.mxu1 }
 0x138   :  { %2109 = vst [vmem:[%s2824_s4 + $0xc0] sm:$0xff] %v2049_v10   ;;  %v887_v15 = vadd.f32 %v886_v13, %v717_v12  ;;  %v1248_v18 = vmul.f32 %v2429_v63, %v965_v14 }
 0x13a   :  { %v1217_v17 = vmul.f32 %v2429_v63, %v887_v15  ;;  %v1316_v27 = vadd.f32 %v2435_v3, %v1248_v18 }
 0x13c   :  { %v1285_v19 = vadd.f32 %v2435_v3, %v1217_v17  ;;  %v797_v20 = vpop.f32.mrf.mxu2  ;;  %v1380_v32 = vmax.f32 %v1316_v27, 0.0 }
 0x13d   :  { %v966_v21 = vpop.f32.mrf.mxu3 }
 0x13e   :  { %v1349_v23 = vmax.f32 %v1285_v19, 0.0  ;;  %v967_v24 = vadd.f32 %v966_v21, %v797_v20  ;;  %v720_v25 = vpop.f32.mrf.mxu0 }
 0x13f   :  { %v889_v26 = vpop.f32.mrf.mxu1 }
 0x140   :  { %v1974_v28 = vpack.c.bf16 %v1349_v23, %v1348_v22  ;;  %v1249_v29 = vmul.f32 %v2429_v63, %v967_v24  ;;  %v890_v31 = vadd.f32 %v889_v26, %v720_v25 }
 0x142   :  { %2094 = vst [vmem:[%s2824_s4 + $0x48] sm:$0xff] %v1974_v28   ;;  %v1317_v30 = vadd.f32 %v2435_v3, %v1249_v29  ;;  %v1218_v37 = vmul.f32 %v2429_v63, %v890_v31 }
 0x144   :  { %v1381_v33 = vmax.f32 %v1317_v30, 0.0  ;;  %v800_v34 = vpop.f32.mrf.mxu2  ;;  %v1286_v42 = vadd.f32 %v2435_v3, %v1218_v37 }
 0x145   :  { %v969_v35 = vpop.f32.mrf.mxu3 }
 0x146   :  { %v2054_v36 = vpack.c.bf16 %v1381_v33, %v1380_v32  ;;  %v722_v38 = vpop.f32.mrf.mxu0  ;;  %v970_v40 = vadd.f32 %v969_v35, %v800_v34  ;;  %v1350_v48 = vmax.f32 %v1286_v42, 0.0 }
 0x147   :  { %v891_v39 = vpop.f32.mrf.mxu1 }
 0x148   :  { %2110 = vst [vmem:[%s2824_s4 + $0xc8] sm:$0xff] %v2054_v36   ;;  %v892_v41 = vadd.f32 %v891_v39, %v722_v38  ;;  %v1250_v44 = vmul.f32 %v2429_v63, %v970_v40 }
 0x14a   :  { %v1219_v43 = vmul.f32 %v2429_v63, %v892_v41  ;;  %v1318_v53 = vadd.f32 %v2435_v3, %v1250_v44 }
 0x14c   :  { %v1287_v45 = vadd.f32 %v2435_v3, %v1219_v43  ;;  %v802_v46 = vpop.f32.mrf.mxu2  ;;  %v1382_v58 = vmax.f32 %v1318_v53, 0.0 }
 0x14d   :  { %v971_v47 = vpop.f32.mrf.mxu3 }
 0x14e   :  { %v1351_v49 = vmax.f32 %v1287_v45, 0.0  ;;  %v972_v50 = vadd.f32 %v971_v47, %v802_v46  ;;  %v725_v51 = vpop.f32.mrf.mxu0 }
 0x14f   :  { %v894_v52 = vpop.f32.mrf.mxu1 }
 0x150   :  { %v1979_v54 = vpack.c.bf16 %v1351_v49, %v1350_v48  ;;  %v1251_v55 = vmul.f32 %v2429_v63, %v972_v50  ;;  %v895_v57 = vadd.f32 %v894_v52, %v725_v51 }
 0x152   :  { %2095 = vst [vmem:[%s2824_s4 + $0x50] sm:$0xff] %v1979_v54   ;;  %v1319_v56 = vadd.f32 %v2435_v3, %v1251_v55  ;;  %v1220_v0 = vmul.f32 %v2429_v63, %v895_v57 }
 0x154   :  { %v1383_v59 = vmax.f32 %v1319_v56, 0.0  ;;  %v805_v60 = vpop.f32.mrf.mxu2  ;;  %v1288_v6 = vadd.f32 %v2435_v3, %v1220_v0 }
 0x155   :  { %v974_v61 = vpop.f32.mrf.mxu3 }
 0x156   :  { %v2059_v62 = vpack.c.bf16 %v1383_v59, %v1382_v58  ;;  %v727_v1 = vpop.f32.mrf.mxu0  ;;  %v975_v4 = vadd.f32 %v974_v61, %v805_v60  ;;  %v1352_v12 = vmax.f32 %v1288_v6, 0.0 }
 0x157   :  { %v896_v2 = vpop.f32.mrf.mxu1 }
 0x158   :  { %2111 = vst [vmem:[%s2824_s4 + $0xd0] sm:$0xff] %v2059_v62   ;;  %v897_v5 = vadd.f32 %v896_v2, %v727_v1  ;;  %v1252_v8 = vmul.f32 %v2429_v63, %v975_v4 }
 0x15a   :  { %v1221_v7 = vmul.f32 %v2429_v63, %v897_v5  ;;  %v1320_v17 = vadd.f32 %v2435_v3, %v1252_v8 }
 0x15c   :  { %v1289_v9 = vadd.f32 %v2435_v3, %v1221_v7  ;;  %v807_v10 = vpop.f32.mrf.mxu2  ;;  %v1384_v22 = vmax.f32 %v1320_v17, 0.0 }
 0x15d   :  { %v976_v11 = vpop.f32.mrf.mxu3 }
 0x15e   :  { %v1353_v13 = vmax.f32 %v1289_v9, 0.0  ;;  %v977_v14 = vadd.f32 %v976_v11, %v807_v10  ;;  %v730_v15 = vpop.f32.mrf.mxu0 }
 0x15f   :  { %v899_v16 = vpop.f32.mrf.mxu1 }
 0x160   :  { %v1984_v18 = vpack.c.bf16 %v1353_v13, %v1352_v12  ;;  %v1253_v19 = vmul.f32 %v2429_v63, %v977_v14  ;;  %v900_v21 = vadd.f32 %v899_v16, %v730_v15 }
 0x162   :  { %2096 = vst [vmem:[%s2824_s4 + $0x58] sm:$0xff] %v1984_v18   ;;  %v1321_v20 = vadd.f32 %v2435_v3, %v1253_v19  ;;  %v1222_v27 = vmul.f32 %v2429_v63, %v900_v21 }
 0x164   :  { %v1385_v23 = vmax.f32 %v1321_v20, 0.0  ;;  %v810_v24 = vpop.f32.mrf.mxu2  ;;  %v1290_v32 = vadd.f32 %v2435_v3, %v1222_v27 }
 0x165   :  { %v979_v25 = vpop.f32.mrf.mxu3 }
 0x166   :  { %v2064_v26 = vpack.c.bf16 %v1385_v23, %v1384_v22  ;;  %v732_v28 = vpop.f32.mrf.mxu0  ;;  %v980_v30 = vadd.f32 %v979_v25, %v810_v24  ;;  %v1354_v38 = vmax.f32 %v1290_v32, 0.0  ;;  %v2135_v23 = vld [vmem:[%s2822_s2] ss:$0 sm:$0xff] }
 0x167   :  { %v901_v29 = vpop.f32.mrf.mxu1 }
 0x168   :  { %2112 = vst [vmem:[%s2824_s4 + $0xd8] sm:$0xff] %v2064_v26   ;;  %v902_v31 = vadd.f32 %v901_v29, %v732_v28  ;;  %v1254_v34 = vmul.f32 %v2429_v63, %v980_v30 }
 0x16a   :  { %v1223_v33 = vmul.f32 %v2429_v63, %v902_v31  ;;  %v1322_v43 = vadd.f32 %v2435_v3, %v1254_v34 }
 0x16c   :  { %v1291_v35 = vadd.f32 %v2435_v3, %v1223_v33  ;;  %v812_v36 = vpop.f32.mrf.mxu2  ;;  %v1386_v48 = vmax.f32 %v1322_v43, 0.0 }
 0x16d   :  { %v981_v37 = vpop.f32.mrf.mxu3 }
 0x16e   :  { %v1355_v39 = vmax.f32 %v1291_v35, 0.0  ;;  %v982_v40 = vadd.f32 %v981_v37, %v812_v36  ;;  %v735_v41 = vpop.f32.mrf.mxu0 }
 0x16f   :  { %v904_v42 = vpop.f32.mrf.mxu1 }
 0x170   :  { %v1989_v44 = vpack.c.bf16 %v1355_v39, %v1354_v38  ;;  %v1255_v45 = vmul.f32 %v2429_v63, %v982_v40  ;;  %v905_v47 = vadd.f32 %v904_v42, %v735_v41 }
 0x172   :  { %2097 = vst [vmem:[%s2824_s4 + $0x60] sm:$0xff] %v1989_v44   ;;  %v1323_v46 = vadd.f32 %v2435_v3, %v1255_v45  ;;  %v1224_v53 = vmul.f32 %v2429_v63, %v905_v47 }
 0x174   :  { %v1387_v49 = vmax.f32 %v1323_v46, 0.0  ;;  %v815_v50 = vpop.f32.mrf.mxu2  ;;  %v1292_v58 = vadd.f32 %v2435_v3, %v1224_v53 }
 0x175   :  { %v984_v51 = vpop.f32.mrf.mxu3 }
 0x176   :  { %v2069_v52 = vpack.c.bf16 %v1387_v49, %v1386_v48  ;;  %v737_v54 = vpop.f32.mrf.mxu0  ;;  %v985_v56 = vadd.f32 %v984_v51, %v815_v50  ;;  %v1356_v1 = vmax.f32 %v1292_v58, 0.0 }
 0x177   :  { %v906_v55 = vpop.f32.mrf.mxu1 }
 0x178   :  { %2113 = vst [vmem:[%s2824_s4 + $0xe0] sm:$0xff] %v2069_v52   ;;  %v907_v57 = vadd.f32 %v906_v55, %v737_v54  ;;  %v1256_v60 = vmul.f32 %v2429_v63, %v985_v56 }
 0x17a   :  { %v1225_v59 = vmul.f32 %v2429_v63, %v907_v57  ;;  %v1324_v7 = vadd.f32 %v2435_v3, %v1256_v60 }
 0x17c   :  { %v1293_v61 = vadd.f32 %v2435_v3, %v1225_v59  ;;  %v817_v62 = vpop.f32.mrf.mxu2  ;;  %v1388_v12 = vmax.f32 %v1324_v7, 0.0 }
 0x17d   :  { %v986_v0 = vpop.f32.mrf.mxu3 }
 0x17e   :  { %v1357_v2 = vmax.f32 %v1293_v61, 0.0  ;;  %v987_v4 = vadd.f32 %v986_v0, %v817_v62  ;;  %v740_v5 = vpop.f32.mrf.mxu0 }
 0x17f   :  { %v909_v6 = vpop.f32.mrf.mxu1 }
 0x180   :  { %v1994_v8 = vpack.c.bf16 %v1357_v2, %v1356_v1  ;;  %v1257_v9 = vmul.f32 %v2429_v63, %v987_v4  ;;  %v910_v11 = vadd.f32 %v909_v6, %v740_v5 }
 0x182   :  { %2098 = vst [vmem:[%s2824_s4 + $0x68] sm:$0xff] %v1994_v8   ;;  %v1325_v10 = vadd.f32 %v2435_v3, %v1257_v9  ;;  %v1226_v17 = vmul.f32 %v2429_v63, %v910_v11  ;;  %v2136_v63 = vld [vmem:[%s2823_s3] ss:$0 sm:$0xff] }
 0x184   :  { %v1389_v13 = vmax.f32 %v1325_v10, 0.0  ;;  %v820_v14 = vpop.f32.mrf.mxu2  ;;  %v1294_v22 = vadd.f32 %v2435_v3, %v1226_v17 }
 0x185   :  { %v989_v15 = vpop.f32.mrf.mxu3 }
 0x186   :  { %v2074_v16 = vpack.c.bf16 %v1389_v13, %v1388_v12  ;;  %v742_v18 = vpop.f32.mrf.mxu0  ;;  %v990_v20 = vadd.f32 %v989_v15, %v820_v14  ;;  %v1358_v29 = vmax.f32 %v1294_v22, 0.0 }
 0x187   :  { %v911_v19 = vpop.f32.mrf.mxu1 }
 0x188   :  { %2114 = vst [vmem:[%s2824_s4 + $0xe8] sm:$0xff] %v2074_v16   ;;  %v912_v21 = vadd.f32 %v911_v19, %v742_v18  ;;  %v1258_v25 = vmul.f32 %v2135_v23, %v990_v20 }
 0x18a   :  { %v1227_v24 = vmul.f32 %v2135_v23, %v912_v21  ;;  %v1326_v34 = vadd.f32 %v2136_v63, %v1258_v25 }
 0x18c   :  { %v1295_v26 = vadd.f32 %v2136_v63, %v1227_v24  ;;  %v822_v27 = vpop.f32.mrf.mxu2  ;;  %v1390_v38 = vmax.f32 %v1326_v34, 0.0 }
 0x18d   :  { %v991_v28 = vpop.f32.mrf.mxu3 }
 0x18e   :  { %v1359_v30 = vmax.f32 %v1295_v26, 0.0  ;;  %v992_v31 = vadd.f32 %v991_v28, %v822_v27  ;;  %v745_v32 = vpop.f32.mrf.mxu0 }
 0x18f   :  { %v914_v33 = vpop.f32.mrf.mxu1 }
 0x190   :  { %v1999_v3 = vpack.c.bf16 %v1359_v30, %v1358_v29  ;;  %v1259_v35 = vmul.f32 %v2135_v23, %v992_v31  ;;  %v915_v37 = vadd.f32 %v914_v33, %v745_v32 }
 0x192   :  { %2099 = vst [vmem:[%s2824_s4 + $0x70] sm:$0xff] %v1999_v3   ;;  %v1327_v36 = vadd.f32 %v2136_v63, %v1259_v35  ;;  %v1228_v43 = vmul.f32 %v2135_v23, %v915_v37 }
 0x194   :  { %v1391_v39 = vmax.f32 %v1327_v36, 0.0  ;;  %v825_v40 = vpop.f32.mrf.mxu2  ;;  %v1296_v48 = vadd.f32 %v2136_v63, %v1228_v43 }
 0x195   :  { %v994_v41 = vpop.f32.mrf.mxu3 }
 0x196   :  { %v2079_v42 = vpack.c.bf16 %v1391_v39, %v1390_v38  ;;  %v747_v44 = vpop.f32.mrf.mxu0  ;;  %v995_v46 = vadd.f32 %v994_v41, %v825_v40  ;;  %v1360_v54 = vmax.f32 %v1296_v48, 0.0 }
 0x197   :  { %v916_v45 = vpop.f32.mrf.mxu1 }
 0x198   :  { %2115 = vst [vmem:[%s2824_s4 + $0xf0] sm:$0xff] %v2079_v42   ;;  %v917_v47 = vadd.f32 %v916_v45, %v747_v44  ;;  %v1260_v50 = vmul.f32 %v2135_v23, %v995_v46 }
 0x19a   :  { %v1229_v49 = vmul.f32 %v2135_v23, %v917_v47  ;;  %v1328_v57 = vadd.f32 %v2136_v63, %v1260_v50 }
 0x19c   :  { %v1297_v51 = vadd.f32 %v2136_v63, %v1229_v49  ;;  %v827_v52 = vpop.f32.mrf.mxu2  ;;  %v1392_v61 = vmax.f32 %v1328_v57, 0.0 }
 0x19d   :  { %v996_v53 = vpop.f32.mrf.mxu3 }
 0x19e   :  { %v1361_v55 = vmax.f32 %v1297_v51, 0.0  ;;  %v997_v56 = vadd.f32 %v996_v53, %v827_v52 }
 0x1a0   :  { %v2004_v58 = vpack.c.bf16 %v1361_v55, %v1360_v54  ;;  %v1261_v59 = vmul.f32 %v2135_v23, %v997_v56 }
 0x1a2   :  { %2100 = vst [vmem:[%s2824_s4 + $0x78] sm:$0xff] %v2004_v58   ;;  %v1329_v60 = vadd.f32 %v2136_v63, %v1261_v59 }
 0x1a4   :  { %v1393_v62 = vmax.f32 %v1329_v60, 0.0 }
 0x1a6   :  { %v2084_v0 = vpack.c.bf16 %v1393_v62, %v1392_v61 }
 0x1a8   :  { %2116 = vst [vmem:[%s2824_s4 + $0xf8] sm:$0xff] %v2084_v0  }

// kernel: _lambda_.14
= control target key start
LH: loop header
LB: loop body
LE: loop exit
PB: predicated region body
PF: predicated region fallthrough
CT: control target
= control target key end

     0   :  { %s978_s1 = inlined_call_operand.vmem [shape: bf16[256,128], index: 1, kind: input, shape index: {}]   ;;  %s979_s0 = inlined_call_operand.vmem [shape: bf16[128,256], index: 0, kind: input, shape index: {}]   ;;  %s980_s2 = inlined_call_operand.vmem [shape: f32[1,128], index: 2, kind: input, shape index: {}]   ;;  %s981_s3 = inlined_call_operand.vmem [shape: f32[1,128], index: 3, kind: input, shape index: {}]   ;;  %s982_s4 = inlined_call_operand.vmem [shape: bf16[128,128], index: 4, kind: output, shape index: {}]  }
   0x1   :  { %v669_v0 = vld [vmem:[%s978_s1 + $0x38] sm:$0xff]  ;;  %v668_v2 = vld [vmem:[%s978_s1 + $0x30] sm:$0xff]  ;;  %v667_v4 = vld [vmem:[%s978_s1 + $0x28] sm:$0xff] }
   0x2   :  { %v677_v1 = vld [vmem:[%s978_s1 + $0x78] sm:$0xff]  ;;  %277 = vmatpush.bf16.msra.mxu0 %v669_v0  ;;  %725 = vmatpush.bf16.msra.mxu2 %v669_v0  ;;  %v676_v3 = vld [vmem:[%s978_s1 + $0x70] sm:$0xff]  ;;  %v675_v5 = vld [vmem:[%s978_s1 + $0x68] sm:$0xff] }
   0x3   :  { %326 = vmatpush.bf16.msra.mxu1 %v677_v1  ;;  %733 = vmatpush.bf16.msra.mxu3 %v677_v1  ;;  %v666_v6 = vld [vmem:[%s978_s1 + $0x20] sm:$0xff]  ;;  %v665_v8 = vld [vmem:[%s978_s1 + $0x18] sm:$0xff]  ;;  %v664_v10 = vld [vmem:[%s978_s1 + $0x10] sm:$0xff] }
   0x4   :  { %v674_v7 = vld [vmem:[%s978_s1 + $0x60] sm:$0xff]  ;;  %v673_v9 = vld [vmem:[%s978_s1 + $0x58] sm:$0xff]  ;;  %v672_v11 = vld [vmem:[%s978_s1 + $0x50] sm:$0xff] }
   0x5   :  { %v663_v12 = vld [vmem:[%s978_s1 + $0x8] sm:$0xff]  ;;  %v662_v14 = vld [vmem:[%s978_s1] sm:$0xff]  ;;  %v528_v28 = vld [vmem:[%s979_s0 + $0x10] sm:$0xf] }
   0x6   :  { %278 = vmatpush.bf16.msra.mxu0 %v668_v2  ;;  %726 = vmatpush.bf16.msra.mxu2 %v668_v2  ;;  %v671_v13 = vld [vmem:[%s978_s1 + $0x48] sm:$0xff]  ;;  %v670_v15 = vld [vmem:[%s978_s1 + $0x40] sm:$0xff]  ;;  %v649_v29 = vld [vmem:[%s979_s0 + $0x14] sm:$0xf0] }
   0x7   :  { %327 = vmatpush.bf16.msra.mxu1 %v676_v3  ;;  %734 = vmatpush.bf16.msra.mxu3 %v676_v3  ;;  %v520_v16 = vld [vmem:[%s979_s0] sm:$0xf]  ;;  %v647_v17 = vld [vmem:[%s979_s0 + $0x4] sm:$0xf0]  ;;  %v646_v20 = vld [vmem:[%s979_s0 + $0x4] sm:$0xf]  ;;  %v529_v36 = vor.u32 %v649_v29, %v528_v28 }
   0x8   :  { %v552_v18 = vld [vmem:[%s979_s0 + $0x40] sm:$0xf]  ;;  %v655_v19 = vld [vmem:[%s979_s0 + $0x44] sm:$0xf0]  ;;  %v522_v21 = vld [vmem:[%s979_s0 + $0x8] sm:$0xf0]  ;;  %v521_v24 = vor.u32 %v647_v17, %v520_v16 }
   0x9   :  { %v654_v22 = vld [vmem:[%s979_s0 + $0x44] sm:$0xf]  ;;  %v554_v23 = vld [vmem:[%s979_s0 + $0x48] sm:$0xf0]  ;;  %v553_v25 = vor.u32 %v655_v19, %v552_v18  ;;  %v525_v26 = vor.u32 %v646_v20, %v522_v21  ;;  %v560_v30 = vld [vmem:[%s979_s0 + $0x50] sm:$0xf] }
   0xa   :  { %279 = vmatpush.bf16.msra.mxu0 %v667_v4  ;;  %727 = vmatpush.bf16.msra.mxu2 %v667_v4  ;;  %v557_v27 = vor.u32 %v654_v22, %v554_v23  ;;  %v657_v31 = vld [vmem:[%s979_s0 + $0x54] sm:$0xf0]  ;;  %v648_v32 = vld [vmem:[%s979_s0 + $0x14] sm:$0xf]  ;;  %v530_v33 = vld [vmem:[%s979_s0 + $0x18] sm:$0xf0] }
   0xb   :  { %328 = vmatpush.bf16.msra.mxu1 %v675_v5  ;;  %735 = vmatpush.bf16.msra.mxu3 %v675_v5  ;;  %v656_v34 = vld [vmem:[%s979_s0 + $0x54] sm:$0xf]  ;;  %v562_v35 = vld [vmem:[%s979_s0 + $0x58] sm:$0xf0]  ;;  %v561_v37 = vor.u32 %v657_v31, %v560_v30  ;;  %v533_v38 = vor.u32 %v648_v32, %v530_v33  ;;  %v536_v40 = vld [vmem:[%s979_s0 + $0x20] sm:$0xf] }
   0xc   :  { %v565_v39 = vor.u32 %v656_v34, %v562_v35  ;;  %v651_v41 = vld [vmem:[%s979_s0 + $0x24] sm:$0xf0]  ;;  %v568_v42 = vld [vmem:[%s979_s0 + $0x60] sm:$0xf]  ;;  %v650_v44 = vld [vmem:[%s979_s0 + $0x24] sm:$0xf] }
   0xd   :  { %v659_v43 = vld [vmem:[%s979_s0 + $0x64] sm:$0xf0]  ;;  %v538_v45 = vld [vmem:[%s979_s0 + $0x28] sm:$0xf0]  ;;  %v658_v46 = vld [vmem:[%s979_s0 + $0x64] sm:$0xf]  ;;  %v537_v48 = vor.u32 %v651_v41, %v536_v40 }
   0xe   :  { %280 = vmatpush.bf16.msra.mxu0 %v666_v6  ;;  %728 = vmatpush.bf16.msra.mxu2 %v666_v6  ;;  %v570_v47 = vld [vmem:[%s979_s0 + $0x68] sm:$0xf0]  ;;  %v569_v49 = vor.u32 %v659_v43, %v568_v42  ;;  %v541_v50 = vor.u32 %v650_v44, %v538_v45  ;;  %v544_v52 = vld [vmem:[%s979_s0 + $0x30] sm:$0xf]  ;;  %v653_v53 = vld [vmem:[%s979_s0 + $0x34] sm:$0xf0] }
   0xf   :  { %329 = vmatpush.bf16.msra.mxu1 %v674_v7  ;;  %736 = vmatpush.bf16.msra.mxu3 %v674_v7  ;;  %v573_v51 = vor.u32 %v658_v46, %v570_v47  ;;  %v576_v54 = vld [vmem:[%s979_s0 + $0x70] sm:$0xf]  ;;  %v661_v55 = vld [vmem:[%s979_s0 + $0x74] sm:$0xf0]  ;;  %v652_v56 = vld [vmem:[%s979_s0 + $0x34] sm:$0xf]  ;;  %v545_v60 = vor.u32 %v653_v53, %v544_v52 }
  0x10   :  { %v546_v57 = vld [vmem:[%s979_s0 + $0x38] sm:$0xf0]  ;;  %v660_v58 = vld [vmem:[%s979_s0 + $0x74] sm:$0xf]  ;;  %v577_v61 = vor.u32 %v661_v55, %v576_v54  ;;  %v915_v3 = vld [vmem:[%s980_s2] ss:$0 sm:$0xff] }
  0x11   :  { %v578_v59 = vld [vmem:[%s979_s0 + $0x78] sm:$0xf0]  ;;  %v549_v62 = vor.u32 %v652_v56, %v546_v57  ;;  %v921_v7 = vld [vmem:[%s981_s3] ss:$0 sm:$0xff] }
  0x12   :  { %281 = vmatpush.bf16.msra.mxu0 %v665_v8  ;;  %729 = vmatpush.bf16.msra.mxu2 %v665_v8  ;;  %v581_v63 = vor.u32 %v660_v58, %v578_v59 }
  0x13   :  { %330 = vmatpush.bf16.msra.mxu1 %v673_v9  ;;  %737 = vmatpush.bf16.msra.mxu3 %v673_v9 }
  0x16   :  { %282 = vmatpush.bf16.msra.mxu0 %v664_v10  ;;  %730 = vmatpush.bf16.msra.mxu2 %v664_v10 }
  0x17   :  { %331 = vmatpush.bf16.msra.mxu1 %v672_v11  ;;  %738 = vmatpush.bf16.msra.mxu3 %v672_v11 }
  0x1a   :  { %283 = vmatpush.bf16.msra.mxu0 %v663_v12  ;;  %731 = vmatpush.bf16.msra.mxu2 %v663_v12 }
  0x1b   :  { %332 = vmatpush.bf16.msra.mxu1 %v671_v13  ;;  %739 = vmatpush.bf16.msra.mxu3 %v671_v13 }
  0x1e   :  { %284 = vmatpush.bf16.msra.mxu0 %v662_v14  ;;  %732 = vmatpush.bf16.msra.mxu2 %v662_v14 }
  0x1f   :  { %333 = vmatpush.bf16.msra.mxu1 %v670_v15  ;;  %740 = vmatpush.bf16.msra.mxu3 %v670_v15 }
  0x21   :  { %285 = vmatmul.bf16.vlgmr.msra.gmra.mxu0 %v521_v24  ;;  %305 = vmatmul.bf16.vlgmr.msra.gmra.mxu2 %v553_v25 }
  0x22   :  { %334 = vmatmul.bf16.vlgmr.msra.gmra.mxu1 %v525_v26  ;;  %354 = vmatmul.bf16.vlgmr.msra.gmra.mxu3 %v557_v27 }
  0x31   :  { %290 = vmatmul.bf16.gmra.mxu0 %v529_v36  ;;  %310 = vmatmul.bf16.gmra.mxu2 %v561_v37 }
  0x32   :  { %339 = vmatmul.bf16.gmra.mxu1 %v533_v38  ;;  %359 = vmatmul.bf16.gmra.mxu3 %v565_v39 }
  0x41   :  { %295 = vmatmul.bf16.gmra.mxu0 %v537_v48  ;;  %315 = vmatmul.bf16.gmra.mxu2 %v569_v49 }
  0x42   :  { %344 = vmatmul.bf16.gmra.mxu1 %v541_v50  ;;  %364 = vmatmul.bf16.gmra.mxu3 %v573_v51 }
  0x51   :  { %300 = vmatmul.bf16.gmra.mxu0 %v545_v60  ;;  %320 = vmatmul.bf16.gmra.mxu2 %v577_v61 }
  0x52   :  { %349 = vmatmul.bf16.gmra.mxu1 %v549_v62  ;;  %369 = vmatmul.bf16.gmra.mxu3 %v581_v63 }
  0x9e   :  { %v286_v0 = vpop.f32.mrf.mxu0 }
  0x9f   :  { %v335_v1 = vpop.f32.mrf.mxu1 }
  0xa0   :  { %v336_v2 = vadd.f32 %v335_v1, %v286_v0 }
  0xa2   :  { %v430_v6 = vmul.f32 %v915_v3, %v336_v2 }
  0xa4   :  { %v306_v4 = vpop.f32.mrf.mxu2  ;;  %v450_v12 = vadd.f32 %v921_v7, %v430_v6 }
  0xa5   :  { %v355_v5 = vpop.f32.mrf.mxu3 }
  0xa6   :  { %v288_v8 = vpop.f32.mrf.mxu0  ;;  %v356_v10 = vadd.f32 %v355_v5, %v306_v4  ;;  %v466_v18 = vmax.f32 %v450_v12, 0.0 }
  0xa7   :  { %v337_v9 = vpop.f32.mrf.mxu1 }
  0xa8   :  { %v338_v11 = vadd.f32 %v337_v9, %v288_v8  ;;  %v438_v14 = vmul.f32 %v915_v3, %v356_v10 }
  0xaa   :  { %v431_v13 = vmul.f32 %v915_v3, %v338_v11  ;;  %v458_v23 = vadd.f32 %v921_v7, %v438_v14 }
  0xac   :  { %v451_v15 = vadd.f32 %v921_v7, %v431_v13  ;;  %v308_v16 = vpop.f32.mrf.mxu2  ;;  %v474_v28 = vmax.f32 %v458_v23, 0.0 }
  0xad   :  { %v357_v17 = vpop.f32.mrf.mxu3 }
  0xae   :  { %v467_v19 = vmax.f32 %v451_v15, 0.0  ;;  %v358_v20 = vadd.f32 %v357_v17, %v308_v16  ;;  %v291_v21 = vpop.f32.mrf.mxu0 }
  0xaf   :  { %v340_v22 = vpop.f32.mrf.mxu1 }
  0xb0   :  { %v681_v24 = vpack.c.bf16 %v467_v19, %v466_v18  ;;  %v439_v25 = vmul.f32 %v915_v3, %v358_v20  ;;  %v341_v27 = vadd.f32 %v340_v22, %v291_v21 }
  0xb2   :  { %682 = vst [vmem:[%s982_s4] sm:$0xff] %v681_v24   ;;  %v459_v26 = vadd.f32 %v921_v7, %v439_v25  ;;  %v432_v33 = vmul.f32 %v915_v3, %v341_v27 }
  0xb4   :  { %v475_v29 = vmax.f32 %v459_v26, 0.0  ;;  %v311_v30 = vpop.f32.mrf.mxu2  ;;  %v452_v38 = vadd.f32 %v921_v7, %v432_v33 }
  0xb5   :  { %v360_v31 = vpop.f32.mrf.mxu3 }
  0xb6   :  { %v701_v32 = vpack.c.bf16 %v475_v29, %v474_v28  ;;  %v293_v34 = vpop.f32.mrf.mxu0  ;;  %v361_v36 = vadd.f32 %v360_v31, %v311_v30  ;;  %v468_v44 = vmax.f32 %v452_v38, 0.0 }
  0xb7   :  { %v342_v35 = vpop.f32.mrf.mxu1 }
  0xb8   :  { %721 = vst [vmem:[%s982_s4 + $0x20] sm:$0xff] %v701_v32   ;;  %v343_v37 = vadd.f32 %v342_v35, %v293_v34  ;;  %v440_v40 = vmul.f32 %v915_v3, %v361_v36 }
  0xba   :  { %v433_v39 = vmul.f32 %v915_v3, %v343_v37  ;;  %v460_v49 = vadd.f32 %v921_v7, %v440_v40 }
  0xbc   :  { %v453_v41 = vadd.f32 %v921_v7, %v433_v39  ;;  %v313_v42 = vpop.f32.mrf.mxu2  ;;  %v476_v54 = vmax.f32 %v460_v49, 0.0 }
  0xbd   :  { %v362_v43 = vpop.f32.mrf.mxu3 }
  0xbe   :  { %v469_v45 = vmax.f32 %v453_v41, 0.0  ;;  %v363_v46 = vadd.f32 %v362_v43, %v313_v42  ;;  %v296_v47 = vpop.f32.mrf.mxu0 }
  0xbf   :  { %v345_v48 = vpop.f32.mrf.mxu1 }
  0xc0   :  { %v686_v50 = vpack.c.bf16 %v469_v45, %v468_v44  ;;  %v441_v51 = vmul.f32 %v915_v3, %v363_v46  ;;  %v346_v53 = vadd.f32 %v345_v48, %v296_v47 }
  0xc2   :  { %718 = vst [vmem:[%s982_s4 + $0x8] sm:$0xff] %v686_v50   ;;  %v461_v52 = vadd.f32 %v921_v7, %v441_v51  ;;  %v434_v59 = vmul.f32 %v915_v3, %v346_v53 }
  0xc4   :  { %v477_v55 = vmax.f32 %v461_v52, 0.0  ;;  %v316_v56 = vpop.f32.mrf.mxu2  ;;  %v454_v0 = vadd.f32 %v921_v7, %v434_v59 }
  0xc5   :  { %v365_v57 = vpop.f32.mrf.mxu3 }
  0xc6   :  { %v706_v58 = vpack.c.bf16 %v477_v55, %v476_v54  ;;  %v298_v60 = vpop.f32.mrf.mxu0  ;;  %v366_v62 = vadd.f32 %v365_v57, %v316_v56  ;;  %v470_v8 = vmax.f32 %v454_v0, 0.0 }
  0xc7   :  { %v347_v61 = vpop.f32.mrf.mxu1 }
  0xc8   :  { %722 = vst [vmem:[%s982_s4 + $0x28] sm:$0xff] %v706_v58   ;;  %v348_v63 = vadd.f32 %v347_v61, %v298_v60  ;;  %v442_v2 = vmul.f32 %v915_v3, %v366_v62 }
  0xca   :  { %v435_v1 = vmul.f32 %v915_v3, %v348_v63  ;;  %v462_v13 = vadd.f32 %v921_v7, %v442_v2 }
  0xcc   :  { %v455_v4 = vadd.f32 %v921_v7, %v435_v1  ;;  %v318_v5 = vpop.f32.mrf.mxu2  ;;  %v478_v18 = vmax.f32 %v462_v13, 0.0 }
  0xcd   :  { %v367_v6 = vpop.f32.mrf.mxu3 }
  0xce   :  { %v471_v9 = vmax.f32 %v455_v4, 0.0  ;;  %v368_v10 = vadd.f32 %v367_v6, %v318_v5  ;;  %v301_v11 = vpop.f32.mrf.mxu0 }
  0xcf   :  { %v350_v12 = vpop.f32.mrf.mxu1 }
  0xd0   :  { %v691_v14 = vpack.c.bf16 %v471_v9, %v470_v8  ;;  %v443_v15 = vmul.f32 %v915_v3, %v368_v10  ;;  %v351_v17 = vadd.f32 %v350_v12, %v301_v11 }
  0xd2   :  { %719 = vst [vmem:[%s982_s4 + $0x10] sm:$0xff] %v691_v14   ;;  %v463_v16 = vadd.f32 %v921_v7, %v443_v15  ;;  %v436_v23 = vmul.f32 %v915_v3, %v351_v17 }
  0xd4   :  { %v479_v19 = vmax.f32 %v463_v16, 0.0  ;;  %v321_v20 = vpop.f32.mrf.mxu2  ;;  %v456_v28 = vadd.f32 %v921_v7, %v436_v23 }
  0xd5   :  { %v370_v21 = vpop.f32.mrf.mxu3 }
  0xd6   :  { %v711_v22 = vpack.c.bf16 %v479_v19, %v478_v18  ;;  %v303_v24 = vpop.f32.mrf.mxu0  ;;  %v371_v26 = vadd.f32 %v370_v21, %v321_v20  ;;  %v472_v34 = vmax.f32 %v456_v28, 0.0 }
  0xd7   :  { %v352_v25 = vpop.f32.mrf.mxu1 }
  0xd8   :  { %723 = vst [vmem:[%s982_s4 + $0x30] sm:$0xff] %v711_v22   ;;  %v353_v27 = vadd.f32 %v352_v25, %v303_v24  ;;  %v444_v30 = vmul.f32 %v915_v3, %v371_v26 }
  0xda   :  { %v437_v29 = vmul.f32 %v915_v3, %v353_v27  ;;  %v464_v37 = vadd.f32 %v921_v7, %v444_v30 }
  0xdc   :  { %v457_v31 = vadd.f32 %v921_v7, %v437_v29  ;;  %v323_v32 = vpop.f32.mrf.mxu2  ;;  %v480_v41 = vmax.f32 %v464_v37, 0.0 }
  0xdd   :  { %v372_v33 = vpop.f32.mrf.mxu3 }
  0xde   :  { %v473_v35 = vmax.f32 %v457_v31, 0.0  ;;  %v373_v36 = vadd.f32 %v372_v33, %v323_v32 }
  0xe0   :  { %v696_v38 = vpack.c.bf16 %v473_v35, %v472_v34  ;;  %v445_v39 = vmul.f32 %v915_v3, %v373_v36 }
  0xe2   :  { %720 = vst [vmem:[%s982_s4 + $0x18] sm:$0xff] %v696_v38   ;;  %v465_v40 = vadd.f32 %v921_v7, %v445_v39 }
  0xe4   :  { %v481_v42 = vmax.f32 %v465_v40, 0.0 }
  0xe6   :  { %v716_v43 = vpack.c.bf16 %v481_v42, %v480_v41 }
  0xe8   :  { %724 = vst [vmem:[%s982_s4 + $0x38] sm:$0xff] %v716_v43  }

// kernel: _lambda_.15
= control target key start
LH: loop header
LB: loop body
LE: loop exit
PB: predicated region body
PF: predicated region fallthrough
CT: control target
= control target key end

     0   :  { %s1097_s1 = inlined_call_operand.vmem [shape: bf16[256,128], index: 1, kind: input, shape index: {}]   ;;  %s1098_s0 = inlined_call_operand.vmem [shape: bf16[128,256], index: 0, kind: input, shape index: {}]   ;;  %s1099_s2 = inlined_call_operand.vmem [shape: f32[1,128], index: 2, kind: input, shape index: {}]   ;;  %s1100_s3 = inlined_call_operand.vmem [shape: f32[1,128], index: 3, kind: input, shape index: {}]   ;;  %s1101_s4 = inlined_call_operand.vmem [shape: bf16[128,128], index: 4, kind: input, shape index: {}]   ;;  %s1102_s5 = inlined_call_operand.vmem [shape: bf16[128,128], index: 5, kind: output, shape index: {}]  }
   0x1   :  { %v720_v0 = vld [vmem:[%s1097_s1 + $0x38] sm:$0xff]  ;;  %v719_v2 = vld [vmem:[%s1097_s1 + $0x30] sm:$0xff]  ;;  %v718_v4 = vld [vmem:[%s1097_s1 + $0x28] sm:$0xff] }
   0x2   :  { %v728_v1 = vld [vmem:[%s1097_s1 + $0x78] sm:$0xff]  ;;  %280 = vmatpush.bf16.msra.mxu0 %v720_v0  ;;  %815 = vmatpush.bf16.msra.mxu2 %v720_v0  ;;  %v727_v3 = vld [vmem:[%s1097_s1 + $0x70] sm:$0xff]  ;;  %v726_v5 = vld [vmem:[%s1097_s1 + $0x68] sm:$0xff] }
   0x3   :  { %329 = vmatpush.bf16.msra.mxu1 %v728_v1  ;;  %823 = vmatpush.bf16.msra.mxu3 %v728_v1  ;;  %v717_v6 = vld [vmem:[%s1097_s1 + $0x20] sm:$0xff]  ;;  %v716_v8 = vld [vmem:[%s1097_s1 + $0x18] sm:$0xff]  ;;  %v715_v10 = vld [vmem:[%s1097_s1 + $0x10] sm:$0xff] }
   0x4   :  { %v725_v7 = vld [vmem:[%s1097_s1 + $0x60] sm:$0xff]  ;;  %v724_v9 = vld [vmem:[%s1097_s1 + $0x58] sm:$0xff]  ;;  %v723_v11 = vld [vmem:[%s1097_s1 + $0x50] sm:$0xff] }
   0x5   :  { %v714_v12 = vld [vmem:[%s1097_s1 + $0x8] sm:$0xff]  ;;  %v713_v14 = vld [vmem:[%s1097_s1] sm:$0xff]  ;;  %v579_v28 = vld [vmem:[%s1098_s0 + $0x10] sm:$0xf] }
   0x6   :  { %281 = vmatpush.bf16.msra.mxu0 %v719_v2  ;;  %816 = vmatpush.bf16.msra.mxu2 %v719_v2  ;;  %v722_v13 = vld [vmem:[%s1097_s1 + $0x48] sm:$0xff]  ;;  %v721_v15 = vld [vmem:[%s1097_s1 + $0x40] sm:$0xff]  ;;  %v700_v29 = vld [vmem:[%s1098_s0 + $0x14] sm:$0xf0] }
   0x7   :  { %330 = vmatpush.bf16.msra.mxu1 %v727_v3  ;;  %824 = vmatpush.bf16.msra.mxu3 %v727_v3  ;;  %v571_v16 = vld [vmem:[%s1098_s0] sm:$0xf]  ;;  %v698_v17 = vld [vmem:[%s1098_s0 + $0x4] sm:$0xf0]  ;;  %v697_v20 = vld [vmem:[%s1098_s0 + $0x4] sm:$0xf]  ;;  %v580_v36 = vor.u32 %v700_v29, %v579_v28 }
   0x8   :  { %v603_v18 = vld [vmem:[%s1098_s0 + $0x40] sm:$0xf]  ;;  %v706_v19 = vld [vmem:[%s1098_s0 + $0x44] sm:$0xf0]  ;;  %v573_v21 = vld [vmem:[%s1098_s0 + $0x8] sm:$0xf0]  ;;  %v572_v24 = vor.u32 %v698_v17, %v571_v16 }
   0x9   :  { %v705_v22 = vld [vmem:[%s1098_s0 + $0x44] sm:$0xf]  ;;  %v605_v23 = vld [vmem:[%s1098_s0 + $0x48] sm:$0xf0]  ;;  %v604_v25 = vor.u32 %v706_v19, %v603_v18  ;;  %v576_v26 = vor.u32 %v697_v20, %v573_v21  ;;  %v611_v30 = vld [vmem:[%s1098_s0 + $0x50] sm:$0xf] }
   0xa   :  { %282 = vmatpush.bf16.msra.mxu0 %v718_v4  ;;  %817 = vmatpush.bf16.msra.mxu2 %v718_v4  ;;  %v608_v27 = vor.u32 %v705_v22, %v605_v23  ;;  %v708_v31 = vld [vmem:[%s1098_s0 + $0x54] sm:$0xf0]  ;;  %v699_v32 = vld [vmem:[%s1098_s0 + $0x14] sm:$0xf]  ;;  %v581_v33 = vld [vmem:[%s1098_s0 + $0x18] sm:$0xf0] }
   0xb   :  { %331 = vmatpush.bf16.msra.mxu1 %v726_v5  ;;  %825 = vmatpush.bf16.msra.mxu3 %v726_v5  ;;  %v707_v34 = vld [vmem:[%s1098_s0 + $0x54] sm:$0xf]  ;;  %v613_v35 = vld [vmem:[%s1098_s0 + $0x58] sm:$0xf0]  ;;  %v612_v37 = vor.u32 %v708_v31, %v611_v30  ;;  %v584_v38 = vor.u32 %v699_v32, %v581_v33  ;;  %v587_v40 = vld [vmem:[%s1098_s0 + $0x20] sm:$0xf] }
   0xc   :  { %v616_v39 = vor.u32 %v707_v34, %v613_v35  ;;  %v702_v41 = vld [vmem:[%s1098_s0 + $0x24] sm:$0xf0]  ;;  %v619_v42 = vld [vmem:[%s1098_s0 + $0x60] sm:$0xf]  ;;  %v701_v44 = vld [vmem:[%s1098_s0 + $0x24] sm:$0xf] }
   0xd   :  { %v710_v43 = vld [vmem:[%s1098_s0 + $0x64] sm:$0xf0]  ;;  %v589_v45 = vld [vmem:[%s1098_s0 + $0x28] sm:$0xf0]  ;;  %v709_v46 = vld [vmem:[%s1098_s0 + $0x64] sm:$0xf]  ;;  %v588_v48 = vor.u32 %v702_v41, %v587_v40 }
   0xe   :  { %283 = vmatpush.bf16.msra.mxu0 %v717_v6  ;;  %818 = vmatpush.bf16.msra.mxu2 %v717_v6  ;;  %v621_v47 = vld [vmem:[%s1098_s0 + $0x68] sm:$0xf0]  ;;  %v620_v49 = vor.u32 %v710_v43, %v619_v42  ;;  %v592_v50 = vor.u32 %v701_v44, %v589_v45  ;;  %v595_v52 = vld [vmem:[%s1098_s0 + $0x30] sm:$0xf]  ;;  %v704_v53 = vld [vmem:[%s1098_s0 + $0x34] sm:$0xf0] }
   0xf   :  { %332 = vmatpush.bf16.msra.mxu1 %v725_v7  ;;  %826 = vmatpush.bf16.msra.mxu3 %v725_v7  ;;  %v624_v51 = vor.u32 %v709_v46, %v621_v47  ;;  %v627_v54 = vld [vmem:[%s1098_s0 + $0x70] sm:$0xf]  ;;  %v712_v55 = vld [vmem:[%s1098_s0 + $0x74] sm:$0xf0]  ;;  %v703_v56 = vld [vmem:[%s1098_s0 + $0x34] sm:$0xf]  ;;  %v596_v60 = vor.u32 %v704_v53, %v595_v52 }
  0x10   :  { %v597_v57 = vld [vmem:[%s1098_s0 + $0x38] sm:$0xf0]  ;;  %v711_v58 = vld [vmem:[%s1098_s0 + $0x74] sm:$0xf]  ;;  %v628_v61 = vor.u32 %v712_v55, %v627_v54  ;;  %v1010_v3 = vld [vmem:[%s1099_s2] ss:$0 sm:$0xff] }
  0x11   :  { %v629_v59 = vld [vmem:[%s1098_s0 + $0x78] sm:$0xf0]  ;;  %v600_v62 = vor.u32 %v703_v56, %v597_v57  ;;  %v1016_v5 = vld [vmem:[%s1100_s3] ss:$0 sm:$0xff]  ;;  %v801_v40 = vld [vmem:[%s1101_s4 + $0x8] sm:$0xff]  }
  0x12   :  { %284 = vmatpush.bf16.msra.mxu0 %v716_v8  ;;  %819 = vmatpush.bf16.msra.mxu2 %v716_v8  ;;  %v632_v63 = vor.u32 %v711_v58, %v629_v59  ;;  %v730_v7 = vld [vmem:[%s1101_s4] sm:$0xff]   ;;  %v736_v53 = vunpack.c.h.bf16 %v801_v40  ;;  %v805_v54 = vld [vmem:[%s1101_s4 + $0x28] sm:$0xff]  }
  0x13   :  { %333 = vmatpush.bf16.msra.mxu1 %v724_v9  ;;  %827 = vmatpush.bf16.msra.mxu3 %v724_v9  ;;  %v732_v17 = vunpack.c.h.bf16 %v730_v7  ;;  %v804_v18 = vld [vmem:[%s1101_s4 + $0x20] sm:$0xff]  }
  0x14   :  { %v748_v28 = vunpack.c.h.bf16 %v804_v18 }
  0x16   :  { %285 = vmatpush.bf16.msra.mxu0 %v715_v10  ;;  %820 = vmatpush.bf16.msra.mxu2 %v715_v10 }
  0x17   :  { %334 = vmatpush.bf16.msra.mxu1 %v723_v11  ;;  %828 = vmatpush.bf16.msra.mxu3 %v723_v11 }
  0x1a   :  { %286 = vmatpush.bf16.msra.mxu0 %v714_v12  ;;  %821 = vmatpush.bf16.msra.mxu2 %v714_v12 }
  0x1b   :  { %335 = vmatpush.bf16.msra.mxu1 %v722_v13  ;;  %829 = vmatpush.bf16.msra.mxu3 %v722_v13  ;;  %v731_v13 = vunpack.c.l.bf16 %v730_v7 }
  0x1e   :  { %287 = vmatpush.bf16.msra.mxu0 %v713_v14  ;;  %822 = vmatpush.bf16.msra.mxu2 %v713_v14 }
  0x1f   :  { %336 = vmatpush.bf16.msra.mxu1 %v721_v15  ;;  %830 = vmatpush.bf16.msra.mxu3 %v721_v15 }
  0x21   :  { %288 = vmatmul.bf16.vlgmr.msra.gmra.mxu0 %v572_v24  ;;  %308 = vmatmul.bf16.vlgmr.msra.gmra.mxu2 %v604_v25  ;;  %v747_v24 = vunpack.c.l.bf16 %v804_v18 }
  0x22   :  { %337 = vmatmul.bf16.vlgmr.msra.gmra.mxu1 %v576_v26  ;;  %357 = vmatmul.bf16.vlgmr.msra.gmra.mxu3 %v608_v27 }
  0x31   :  { %293 = vmatmul.bf16.gmra.mxu0 %v580_v36  ;;  %313 = vmatmul.bf16.gmra.mxu2 %v612_v37 }
  0x32   :  { %342 = vmatmul.bf16.gmra.mxu1 %v584_v38  ;;  %362 = vmatmul.bf16.gmra.mxu3 %v616_v39 }
  0x41   :  { %298 = vmatmul.bf16.gmra.mxu0 %v588_v48  ;;  %318 = vmatmul.bf16.gmra.mxu2 %v620_v49  ;;  %v735_v49 = vunpack.c.l.bf16 %v801_v40 }
  0x42   :  { %347 = vmatmul.bf16.gmra.mxu1 %v592_v50  ;;  %367 = vmatmul.bf16.gmra.mxu3 %v624_v51 }
  0x51   :  { %303 = vmatmul.bf16.gmra.mxu0 %v596_v60  ;;  %323 = vmatmul.bf16.gmra.mxu2 %v628_v61  ;;  %v751_v60 = vunpack.c.l.bf16 %v805_v54 }
  0x52   :  { %352 = vmatmul.bf16.gmra.mxu1 %v600_v62  ;;  %372 = vmatmul.bf16.gmra.mxu3 %v632_v63 }
  0x9e   :  { %v289_v0 = vpop.f32.mrf.mxu0 }
  0x9f   :  { %v338_v1 = vpop.f32.mrf.mxu1 }
  0xa0   :  { %v339_v2 = vadd.f32 %v338_v1, %v289_v0  ;;  %v752_v0 = vunpack.c.h.bf16 %v805_v54 }
  0xa2   :  { %v433_v4 = vmul.f32 %v1010_v3, %v339_v2 }
  0xa4   :  { %v309_v6 = vpop.f32.mrf.mxu2  ;;  %v453_v12 = vadd.f32 %v1016_v5, %v433_v4 }
  0xa5   :  { %v358_v8 = vpop.f32.mrf.mxu3 }
  0xa6   :  { %v359_v9 = vadd.f32 %v358_v8, %v309_v6  ;;  %v291_v10 = vpop.f32.mrf.mxu0  ;;  %v501_v19 = vadd.f32 %v731_v13, %v453_v12 }
  0xa7   :  { %v340_v11 = vpop.f32.mrf.mxu1 }
  0xa8   :  { %v341_v14 = vadd.f32 %v340_v11, %v291_v10  ;;  %v441_v15 = vmul.f32 %v1010_v3, %v359_v9  ;;  %v517_v30 = vmax.f32 %v501_v19, 0.0 }
  0xaa   :  { %v434_v16 = vmul.f32 %v1010_v3, %v341_v14  ;;  %v461_v23 = vadd.f32 %v1016_v5, %v441_v15  ;;  %v802_v14 = vld [vmem:[%s1101_s4 + $0x10] sm:$0xff]  }
  0xac   :  { %v454_v20 = vadd.f32 %v1016_v5, %v434_v16  ;;  %v311_v21 = vpop.f32.mrf.mxu2  ;;  %v509_v34 = vadd.f32 %v747_v24, %v461_v23  ;;  %v739_v23 = vunpack.c.l.bf16 %v802_v14 }
  0xad   :  { %v360_v22 = vpop.f32.mrf.mxu3 }
  0xae   :  { %v502_v25 = vadd.f32 %v732_v17, %v454_v20  ;;  %v361_v26 = vadd.f32 %v360_v22, %v311_v21  ;;  %v294_v27 = vpop.f32.mrf.mxu0  ;;  %v525_v42 = vmax.f32 %v509_v34, 0.0 }
  0xaf   :  { %v343_v29 = vpop.f32.mrf.mxu1 }
  0xb0   :  { %v518_v31 = vmax.f32 %v502_v25, 0.0  ;;  %v442_v32 = vmul.f32 %v1010_v3, %v361_v26  ;;  %v344_v33 = vadd.f32 %v343_v29, %v294_v27  ;;  %v740_v27 = vunpack.c.h.bf16 %v802_v14 }
  0xb2   :  { %v764_v35 = vpack.c.bf16 %v518_v31, %v517_v30  ;;  %v462_v36 = vadd.f32 %v1016_v5, %v442_v32  ;;  %v435_v38 = vmul.f32 %v1010_v3, %v344_v33 }
  0xb4   :  { %765 = vst [vmem:[%s1102_s5] sm:$0xff] %v764_v35   ;;  %v510_v37 = vadd.f32 %v748_v28, %v462_v36  ;;  %v314_v39 = vpop.f32.mrf.mxu2  ;;  %v455_v48 = vadd.f32 %v1016_v5, %v435_v38  ;;  %v806_v28 = vld [vmem:[%s1101_s4 + $0x30] sm:$0xff]  }
  0xb5   :  { %v363_v41 = vpop.f32.mrf.mxu3  ;;  %v755_v34 = vunpack.c.l.bf16 %v806_v28  ;;  %v756_v38 = vunpack.c.h.bf16 %v806_v28 }
  0xb6   :  { %v526_v43 = vmax.f32 %v510_v37, 0.0  ;;  %v364_v44 = vadd.f32 %v363_v41, %v314_v39  ;;  %v296_v45 = vpop.f32.mrf.mxu0  ;;  %v503_v55 = vadd.f32 %v735_v49, %v455_v48 }
  0xb7   :  { %v345_v46 = vpop.f32.mrf.mxu1 }
  0xb8   :  { %v784_v47 = vpack.c.bf16 %v526_v43, %v525_v42  ;;  %v346_v50 = vadd.f32 %v345_v46, %v296_v45  ;;  %v443_v51 = vmul.f32 %v1010_v3, %v364_v44  ;;  %v519_v2 = vmax.f32 %v503_v55, 0.0 }
  0xba   :  { %811 = vst [vmem:[%s1102_s5 + $0x20] sm:$0xff] %v784_v47   ;;  %v436_v52 = vmul.f32 %v1010_v3, %v346_v50  ;;  %v463_v59 = vadd.f32 %v1016_v5, %v443_v51  ;;  %v803_v50 = vld [vmem:[%s1101_s4 + $0x18] sm:$0xff]  }
  0xbc   :  { %v456_v56 = vadd.f32 %v1016_v5, %v436_v52  ;;  %v316_v57 = vpop.f32.mrf.mxu2  ;;  %v511_v8 = vadd.f32 %v751_v60, %v463_v59  ;;  %v743_v59 = vunpack.c.l.bf16 %v803_v50 }
  0xbd   :  { %v365_v58 = vpop.f32.mrf.mxu3 }
  0xbe   :  { %v504_v61 = vadd.f32 %v736_v53, %v456_v56  ;;  %v366_v62 = vadd.f32 %v365_v58, %v316_v57  ;;  %v299_v63 = vpop.f32.mrf.mxu0  ;;  %v527_v16 = vmax.f32 %v511_v8, 0.0 }
  0xbf   :  { %v348_v1 = vpop.f32.mrf.mxu1 }
  0xc0   :  { %v520_v4 = vmax.f32 %v504_v61, 0.0  ;;  %v444_v6 = vmul.f32 %v1010_v3, %v366_v62  ;;  %v349_v7 = vadd.f32 %v348_v1, %v299_v63  ;;  %v744_v63 = vunpack.c.h.bf16 %v803_v50 }
  0xc2   :  { %v769_v9 = vpack.c.bf16 %v520_v4, %v519_v2  ;;  %v464_v10 = vadd.f32 %v1016_v5, %v444_v6  ;;  %v437_v12 = vmul.f32 %v1010_v3, %v349_v7 }
  0xc4   :  { %808 = vst [vmem:[%s1102_s5 + $0x8] sm:$0xff] %v769_v9   ;;  %v512_v11 = vadd.f32 %v752_v0, %v464_v10  ;;  %v319_v13 = vpop.f32.mrf.mxu2  ;;  %v457_v22 = vadd.f32 %v1016_v5, %v437_v12  ;;  %v807_v0 = vld [vmem:[%s1101_s4 + $0x38] sm:$0xff]  }
  0xc5   :  { %v368_v15 = vpop.f32.mrf.mxu3  ;;  %v759_v8 = vunpack.c.l.bf16 %v807_v0  ;;  %v760_v14 = vunpack.c.h.bf16 %v807_v0 }
  0xc6   :  { %v528_v17 = vmax.f32 %v512_v11, 0.0  ;;  %v369_v18 = vadd.f32 %v368_v15, %v319_v13  ;;  %v301_v19 = vpop.f32.mrf.mxu0  ;;  %v505_v29 = vadd.f32 %v739_v23, %v457_v22 }
  0xc7   :  { %v350_v20 = vpop.f32.mrf.mxu1 }
  0xc8   :  { %v789_v21 = vpack.c.bf16 %v528_v17, %v527_v16  ;;  %v351_v24 = vadd.f32 %v350_v20, %v301_v19  ;;  %v445_v25 = vmul.f32 %v1010_v3, %v369_v18  ;;  %v521_v40 = vmax.f32 %v505_v29, 0.0 }
  0xca   :  { %812 = vst [vmem:[%s1102_s5 + $0x28] sm:$0xff] %v789_v21   ;;  %v438_v26 = vmul.f32 %v1010_v3, %v351_v24  ;;  %v465_v33 = vadd.f32 %v1016_v5, %v445_v25 }
  0xcc   :  { %v458_v30 = vadd.f32 %v1016_v5, %v438_v26  ;;  %v321_v31 = vpop.f32.mrf.mxu2  ;;  %v513_v44 = vadd.f32 %v755_v34, %v465_v33 }
  0xcd   :  { %v370_v32 = vpop.f32.mrf.mxu3 }
  0xce   :  { %v506_v35 = vadd.f32 %v740_v27, %v458_v30  ;;  %v371_v36 = vadd.f32 %v370_v32, %v321_v31  ;;  %v304_v37 = vpop.f32.mrf.mxu0  ;;  %v529_v52 = vmax.f32 %v513_v44, 0.0 }
  0xcf   :  { %v353_v39 = vpop.f32.mrf.mxu1 }
  0xd0   :  { %v522_v41 = vmax.f32 %v506_v35, 0.0  ;;  %v446_v42 = vmul.f32 %v1010_v3, %v371_v36  ;;  %v354_v43 = vadd.f32 %v353_v39, %v304_v37 }
  0xd2   :  { %v774_v45 = vpack.c.bf16 %v522_v41, %v521_v40  ;;  %v466_v46 = vadd.f32 %v1016_v5, %v446_v42  ;;  %v439_v48 = vmul.f32 %v1010_v3, %v354_v43 }
  0xd4   :  { %809 = vst [vmem:[%s1102_s5 + $0x10] sm:$0xff] %v774_v45   ;;  %v514_v47 = vadd.f32 %v756_v38, %v466_v46  ;;  %v324_v49 = vpop.f32.mrf.mxu2  ;;  %v459_v58 = vadd.f32 %v1016_v5, %v439_v48 }
  0xd5   :  { %v373_v51 = vpop.f32.mrf.mxu3 }
  0xd6   :  { %v530_v53 = vmax.f32 %v514_v47, 0.0  ;;  %v374_v54 = vadd.f32 %v373_v51, %v324_v49  ;;  %v306_v55 = vpop.f32.mrf.mxu0  ;;  %v507_v1 = vadd.f32 %v743_v59, %v459_v58 }
  0xd7   :  { %v355_v56 = vpop.f32.mrf.mxu1 }
  0xd8   :  { %v794_v57 = vpack.c.bf16 %v530_v53, %v529_v52  ;;  %v356_v60 = vadd.f32 %v355_v56, %v306_v55  ;;  %v447_v61 = vmul.f32 %v1010_v3, %v374_v54  ;;  %v523_v11 = vmax.f32 %v507_v1, 0.0 }
  0xda   :  { %813 = vst [vmem:[%s1102_s5 + $0x30] sm:$0xff] %v794_v57   ;;  %v440_v62 = vmul.f32 %v1010_v3, %v356_v60  ;;  %v467_v7 = vadd.f32 %v1016_v5, %v447_v61 }
  0xdc   :  { %v460_v2 = vadd.f32 %v1016_v5, %v440_v62  ;;  %v326_v4 = vpop.f32.mrf.mxu2  ;;  %v515_v15 = vadd.f32 %v759_v8, %v467_v7 }
  0xdd   :  { %v375_v6 = vpop.f32.mrf.mxu3 }
  0xde   :  { %v508_v9 = vadd.f32 %v744_v63, %v460_v2  ;;  %v376_v10 = vadd.f32 %v375_v6, %v326_v4  ;;  %v531_v19 = vmax.f32 %v515_v15, 0.0 }
  0xe0   :  { %v524_v12 = vmax.f32 %v508_v9, 0.0  ;;  %v448_v13 = vmul.f32 %v1010_v3, %v376_v10 }
  0xe2   :  { %v779_v16 = vpack.c.bf16 %v524_v12, %v523_v11  ;;  %v468_v17 = vadd.f32 %v1016_v5, %v448_v13 }
  0xe4   :  { %810 = vst [vmem:[%s1102_s5 + $0x18] sm:$0xff] %v779_v16   ;;  %v516_v18 = vadd.f32 %v760_v14, %v468_v17 }
  0xe6   :  { %v532_v20 = vmax.f32 %v516_v18, 0.0 }
  0xe8   :  { %v799_v21 = vpack.c.bf16 %v532_v20, %v531_v19 }
  0xea   :  { %814 = vst [vmem:[%s1102_s5 + $0x38] sm:$0xff] %v799_v21  }

// kernel: _lambda_.16
= control target key start
LH: loop header
LB: loop body
LE: loop exit
PB: predicated region body
PF: predicated region fallthrough
CT: control target
= control target key end

     0   :  { %s504_s1 = inlined_call_operand.vmem [shape: bf16[256,128], index: 1, kind: input, shape index: {}]   ;;  %s505_s0 = inlined_call_operand.vmem [shape: bf16[32,256], index: 0, kind: input, shape index: {}]   ;;  %s506_s2 = inlined_call_operand.vmem [shape: f32[1,128], index: 2, kind: input, shape index: {}]   ;;  %s507_s3 = inlined_call_operand.vmem [shape: f32[1,128], index: 3, kind: input, shape index: {}]   ;;  %s508_s4 = inlined_call_operand.vmem [shape: bf16[32,128], index: 4, kind: output, shape index: {}]  }
   0x1   :  { %v357_v0 = vld [vmem:[%s504_s1 + $0x38] sm:$0xff]  ;;  %v356_v2 = vld [vmem:[%s504_s1 + $0x30] sm:$0xff]  ;;  %v355_v4 = vld [vmem:[%s504_s1 + $0x28] sm:$0xff] }
   0x2   :  { %v365_v1 = vld [vmem:[%s504_s1 + $0x78] sm:$0xff]  ;;  %181 = vmatpush.bf16.msra.mxu0 %v357_v0  ;;  %377 = vmatpush.bf16.msra.mxu2 %v357_v0  ;;  %v364_v3 = vld [vmem:[%s504_s1 + $0x70] sm:$0xff]  ;;  %v363_v5 = vld [vmem:[%s504_s1 + $0x68] sm:$0xff] }
   0x3   :  { %200 = vmatpush.bf16.msra.mxu1 %v365_v1  ;;  %385 = vmatpush.bf16.msra.mxu3 %v365_v1  ;;  %v354_v6 = vld [vmem:[%s504_s1 + $0x20] sm:$0xff]  ;;  %v353_v8 = vld [vmem:[%s504_s1 + $0x18] sm:$0xff]  ;;  %v352_v10 = vld [vmem:[%s504_s1 + $0x10] sm:$0xff] }
   0x4   :  { %v362_v7 = vld [vmem:[%s504_s1 + $0x60] sm:$0xff]  ;;  %v361_v9 = vld [vmem:[%s504_s1 + $0x58] sm:$0xff]  ;;  %v360_v11 = vld [vmem:[%s504_s1 + $0x50] sm:$0xff] }
   0x5   :  { %v351_v12 = vld [vmem:[%s504_s1 + $0x8] sm:$0xff]  ;;  %v350_v14 = vld [vmem:[%s504_s1] sm:$0xff]  ;;  %v276_v18 = vld [vmem:[%s505_s0 + $0x10] sm:$0xf] }
   0x6   :  { %182 = vmatpush.bf16.msra.mxu0 %v356_v2  ;;  %378 = vmatpush.bf16.msra.mxu2 %v356_v2  ;;  %v359_v13 = vld [vmem:[%s504_s1 + $0x48] sm:$0xff]  ;;  %v358_v15 = vld [vmem:[%s504_s1 + $0x40] sm:$0xff]  ;;  %v349_v19 = vld [vmem:[%s505_s0 + $0x14] sm:$0xf0] }
   0x7   :  { %201 = vmatpush.bf16.msra.mxu1 %v364_v3  ;;  %386 = vmatpush.bf16.msra.mxu3 %v364_v3  ;;  %v268_v16 = vld [vmem:[%s505_s0] sm:$0xf]  ;;  %v347_v17 = vld [vmem:[%s505_s0 + $0x4] sm:$0xf0]  ;;  %v346_v20 = vld [vmem:[%s505_s0 + $0x4] sm:$0xf]  ;;  %v277_v25 = vor.u32 %v349_v19, %v276_v18 }
   0x8   :  { %v270_v21 = vld [vmem:[%s505_s0 + $0x8] sm:$0xf0]  ;;  %v348_v22 = vld [vmem:[%s505_s0 + $0x14] sm:$0xf]  ;;  %v278_v23 = vld [vmem:[%s505_s0 + $0x18] sm:$0xf0]  ;;  %v269_v24 = vor.u32 %v347_v17, %v268_v16 }
   0x9   :  { %v273_v26 = vor.u32 %v346_v20, %v270_v21  ;;  %v281_v27 = vor.u32 %v348_v22, %v278_v23  ;;  %v393_v31 = vld [vmem:[%s506_s2] ss:$0 sm:$0xff] }
   0xa   :  { %183 = vmatpush.bf16.msra.mxu0 %v355_v4  ;;  %379 = vmatpush.bf16.msra.mxu2 %v355_v4  ;;  %v394_v35 = vld [vmem:[%s507_s3] ss:$0 sm:$0xff] }
   0xb   :  { %202 = vmatpush.bf16.msra.mxu1 %v363_v5  ;;  %387 = vmatpush.bf16.msra.mxu3 %v363_v5 }
   0xe   :  { %184 = vmatpush.bf16.msra.mxu0 %v354_v6  ;;  %380 = vmatpush.bf16.msra.mxu2 %v354_v6 }
   0xf   :  { %203 = vmatpush.bf16.msra.mxu1 %v362_v7  ;;  %388 = vmatpush.bf16.msra.mxu3 %v362_v7 }
  0x12   :  { %185 = vmatpush.bf16.msra.mxu0 %v353_v8  ;;  %381 = vmatpush.bf16.msra.mxu2 %v353_v8 }
  0x13   :  { %204 = vmatpush.bf16.msra.mxu1 %v361_v9  ;;  %389 = vmatpush.bf16.msra.mxu3 %v361_v9 }
  0x16   :  { %186 = vmatpush.bf16.msra.mxu0 %v352_v10  ;;  %382 = vmatpush.bf16.msra.mxu2 %v352_v10 }
  0x17   :  { %205 = vmatpush.bf16.msra.mxu1 %v360_v11  ;;  %390 = vmatpush.bf16.msra.mxu3 %v360_v11 }
  0x1a   :  { %187 = vmatpush.bf16.msra.mxu0 %v351_v12  ;;  %383 = vmatpush.bf16.msra.mxu2 %v351_v12 }
  0x1b   :  { %206 = vmatpush.bf16.msra.mxu1 %v359_v13  ;;  %391 = vmatpush.bf16.msra.mxu3 %v359_v13 }
  0x1e   :  { %188 = vmatpush.bf16.msra.mxu0 %v350_v14  ;;  %384 = vmatpush.bf16.msra.mxu2 %v350_v14 }
  0x1f   :  { %207 = vmatpush.bf16.msra.mxu1 %v358_v15  ;;  %392 = vmatpush.bf16.msra.mxu3 %v358_v15 }
  0x21   :  { %189 = vmatmul.bf16.vlgmr.msra.gmra.mxu0 %v269_v24  ;;  %194 = vmatmul.bf16.vlgmr.msra.gmra.mxu2 %v277_v25 }
  0x22   :  { %208 = vmatmul.bf16.vlgmr.msra.gmra.mxu1 %v273_v26  ;;  %213 = vmatmul.bf16.vlgmr.msra.gmra.mxu3 %v281_v27 }
  0x9e   :  { %v190_v28 = vpop.f32.mrf.mxu0 }
  0x9f   :  { %v209_v29 = vpop.f32.mrf.mxu1 }
  0xa0   :  { %v210_v30 = vadd.f32 %v209_v29, %v190_v28 }
  0xa2   :  { %v238_v34 = vmul.f32 %v393_v31, %v210_v30 }
  0xa4   :  { %v195_v32 = vpop.f32.mrf.mxu2  ;;  %v246_v40 = vadd.f32 %v394_v35, %v238_v34 }
  0xa5   :  { %v214_v33 = vpop.f32.mrf.mxu3 }
  0xa6   :  { %v192_v36 = vpop.f32.mrf.mxu0  ;;  %v215_v38 = vadd.f32 %v214_v33, %v195_v32  ;;  %v250_v46 = vmax.f32 %v246_v40, 0.0 }
  0xa7   :  { %v211_v37 = vpop.f32.mrf.mxu1 }
  0xa8   :  { %v212_v39 = vadd.f32 %v211_v37, %v192_v36  ;;  %v240_v42 = vmul.f32 %v393_v31, %v215_v38 }
  0xaa   :  { %v239_v41 = vmul.f32 %v393_v31, %v212_v39  ;;  %v248_v49 = vadd.f32 %v394_v35, %v240_v42 }
  0xac   :  { %v247_v43 = vadd.f32 %v394_v35, %v239_v41  ;;  %v197_v44 = vpop.f32.mrf.mxu2  ;;  %v252_v53 = vmax.f32 %v248_v49, 0.0 }
  0xad   :  { %v216_v45 = vpop.f32.mrf.mxu3 }
  0xae   :  { %v251_v47 = vmax.f32 %v247_v43, 0.0  ;;  %v217_v48 = vadd.f32 %v216_v45, %v197_v44 }
  0xb0   :  { %v369_v50 = vpack.c.bf16 %v251_v47, %v250_v46  ;;  %v241_v51 = vmul.f32 %v393_v31, %v217_v48 }
  0xb2   :  { %370 = vst [vmem:[%s508_s4] sm:$0xff] %v369_v50   ;;  %v249_v52 = vadd.f32 %v394_v35, %v241_v51 }
  0xb4   :  { %v253_v54 = vmax.f32 %v249_v52, 0.0 }
  0xb6   :  { %v374_v55 = vpack.c.bf16 %v253_v54, %v252_v53 }
  0xb8   :  { %376 = vst [vmem:[%s508_s4 + $0x8] sm:$0xff] %v374_v55  }

// kernel: _lambda_.17
= control target key start
LH: loop header
LB: loop body
LE: loop exit
PB: predicated region body
PF: predicated region fallthrough
CT: control target
= control target key end

     0   :  { %s309_s1 = inlined_call_operand.vmem [shape: bf16[128,128], index: 1, kind: input, shape index: {}]   ;;  %s310_s2 = inlined_call_operand.vmem [shape: f32[1,128], index: 2, kind: input, shape index: {}]   ;;  %s311_s3 = inlined_call_operand.vmem [shape: f32[1,128], index: 3, kind: input, shape index: {}]   ;;  %s312_s0 = inlined_call_operand.vmem [shape: bf16[32,128], index: 0, kind: input, shape index: {}]   ;;  %s313_s4 = inlined_call_operand.vmem [shape: bf16[32,128], index: 4, kind: output, shape index: {}]  }
   0x1   :  { %v220_v0 = vld [vmem:[%s309_s1 + $0x38] sm:$0xff]  ;;  %v219_v1 = vld [vmem:[%s309_s1 + $0x30] sm:$0xff]  ;;  %v218_v2 = vld [vmem:[%s309_s1 + $0x28] sm:$0xff] }
   0x2   :  { %109 = vmatpush.bf16.msra.mxu0 %v220_v0  ;;  %232 = vmatpush.bf16.msra.mxu1 %v220_v0  ;;  %v217_v3 = vld [vmem:[%s309_s1 + $0x20] sm:$0xff]  ;;  %v216_v4 = vld [vmem:[%s309_s1 + $0x18] sm:$0xff]  ;;  %v215_v5 = vld [vmem:[%s309_s1 + $0x10] sm:$0xff] }
   0x3   :  { %v214_v6 = vld [vmem:[%s309_s1 + $0x8] sm:$0xff]  ;;  %v213_v7 = vld [vmem:[%s309_s1] sm:$0xff] }
   0x4   :  { %v211_v8 = vld [vmem:[%s312_s0] sm:$0xff]  ;;  %v212_v9 = vld [vmem:[%s312_s0 + $0x8] sm:$0xff] }
   0x5   :  { %v240_v12 = vld [vmem:[%s310_s2] ss:$0 sm:$0xff] }
   0x6   :  { %110 = vmatpush.bf16.msra.mxu0 %v219_v1  ;;  %233 = vmatpush.bf16.msra.mxu1 %v219_v1  ;;  %v241_v14 = vld [vmem:[%s311_s3] ss:$0 sm:$0xff] }
   0xa   :  { %111 = vmatpush.bf16.msra.mxu0 %v218_v2  ;;  %234 = vmatpush.bf16.msra.mxu1 %v218_v2 }
   0xe   :  { %112 = vmatpush.bf16.msra.mxu0 %v217_v3  ;;  %235 = vmatpush.bf16.msra.mxu1 %v217_v3 }
  0x12   :  { %113 = vmatpush.bf16.msra.mxu0 %v216_v4  ;;  %236 = vmatpush.bf16.msra.mxu1 %v216_v4 }
  0x16   :  { %114 = vmatpush.bf16.msra.mxu0 %v215_v5  ;;  %237 = vmatpush.bf16.msra.mxu1 %v215_v5 }
  0x1a   :  { %115 = vmatpush.bf16.msra.mxu0 %v214_v6  ;;  %238 = vmatpush.bf16.msra.mxu1 %v214_v6 }
  0x1e   :  { %116 = vmatpush.bf16.msra.mxu0 %v213_v7  ;;  %239 = vmatpush.bf16.msra.mxu1 %v213_v7 }
  0x21   :  { %117 = vmatmul.bf16.vlgmr.msra.gmra.mxu0 %v211_v8  ;;  %122 = vmatmul.bf16.vlgmr.msra.gmra.mxu1 %v212_v9 }
  0x9e   :  { %v118_v10 = vpop.f32.mrf.mxu0  ;;  %v123_v11 = vpop.f32.mrf.mxu1 }
  0x9f   :  { %v147_v13 = vmul.f32 %v240_v12, %v118_v10  ;;  %v149_v15 = vmul.f32 %v240_v12, %v123_v11 }
  0xa1   :  { %v155_v20 = vadd.f32 %v241_v14, %v147_v13  ;;  %v157_v21 = vadd.f32 %v241_v14, %v149_v15 }
  0xa6   :  { %v120_v16 = vpop.f32.mrf.mxu0  ;;  %v125_v17 = vpop.f32.mrf.mxu1 }
  0xa7   :  { %v148_v18 = vmul.f32 %v240_v12, %v120_v16  ;;  %v150_v19 = vmul.f32 %v240_v12, %v125_v17 }
  0xa9   :  { %v156_v22 = vadd.f32 %v241_v14, %v148_v18  ;;  %v158_v23 = vadd.f32 %v241_v14, %v150_v19 }
  0xab   :  { %v224_v24 = vpack.c.bf16 %v156_v22, %v155_v20  ;;  %v229_v25 = vpack.c.bf16 %v158_v23, %v157_v21 }
  0xad   :  { %225 = vst [vmem:[%s313_s4] sm:$0xff] %v224_v24  }
  0xae   :  { %231 = vst [vmem:[%s313_s4 + $0x8] sm:$0xff] %v229_v25  }

// kernel: _lambda_.18
= control target key start
LH: loop header
LB: loop body
LE: loop exit
PB: predicated region body
PF: predicated region fallthrough
CT: control target
= control target key end

     0   :  { %s716_s1 = inlined_call_operand.vmem [shape: bf16[384,128], index: 1, kind: input, shape index: {}]   ;;  %s717_s0 = inlined_call_operand.vmem [shape: bf16[32,384], index: 0, kind: input, shape index: {}]   ;;  %s718_s2 = inlined_call_operand.vmem [shape: f32[1,128], index: 2, kind: input, shape index: {}]   ;;  %s719_s3 = inlined_call_operand.vmem [shape: f32[1,128], index: 3, kind: input, shape index: {}]   ;;  %s720_s4 = inlined_call_operand.vmem [shape: bf16[32,128], index: 4, kind: input, shape index: {}]   ;;  %s721_s5 = inlined_call_operand.vmem [shape: bf16[32,128], index: 5, kind: output, shape index: {}]  }
   0x1   :  { %v513_v0 = vld [vmem:[%s716_s1 + $0x38] sm:$0xff]  ;;  %v512_v3 = vld [vmem:[%s716_s1 + $0x30] sm:$0xff]  ;;  %v511_v6 = vld [vmem:[%s716_s1 + $0x28] sm:$0xff] }
   0x2   :  { %v521_v1 = vld [vmem:[%s716_s1 + $0x78] sm:$0xff]  ;;  %264 = vmatpush.bf16.msra.mxu0 %v513_v0  ;;  %v520_v4 = vld [vmem:[%s716_s1 + $0x70] sm:$0xff]  ;;  %550 = vmatpush.bf16.msra.mxu3 %v513_v0  ;;  %v519_v7 = vld [vmem:[%s716_s1 + $0x68] sm:$0xff] }
   0x3   :  { %v529_v2 = vld [vmem:[%s716_s1 + $0xb8] sm:$0xff]  ;;  %283 = vmatpush.bf16.msra.mxu1 %v521_v1  ;;  %v528_v5 = vld [vmem:[%s716_s1 + $0xb0] sm:$0xff]  ;;  %v527_v8 = vld [vmem:[%s716_s1 + $0xa8] sm:$0xff] }
   0x4   :  { %302 = vmatpush.bf16.msra.mxu2 %v529_v2  ;;  %v510_v9 = vld [vmem:[%s716_s1 + $0x20] sm:$0xff]  ;;  %v509_v12 = vld [vmem:[%s716_s1 + $0x18] sm:$0xff]  ;;  %v508_v15 = vld [vmem:[%s716_s1 + $0x10] sm:$0xff] }
   0x5   :  { %v518_v10 = vld [vmem:[%s716_s1 + $0x60] sm:$0xff]  ;;  %v517_v13 = vld [vmem:[%s716_s1 + $0x58] sm:$0xff]  ;;  %v516_v16 = vld [vmem:[%s716_s1 + $0x50] sm:$0xff] }
   0x6   :  { %265 = vmatpush.bf16.msra.mxu0 %v512_v3  ;;  %551 = vmatpush.bf16.msra.mxu3 %v512_v3  ;;  %v526_v11 = vld [vmem:[%s716_s1 + $0xa0] sm:$0xff]  ;;  %v525_v14 = vld [vmem:[%s716_s1 + $0x98] sm:$0xff]  ;;  %v524_v17 = vld [vmem:[%s716_s1 + $0x90] sm:$0xff] }
   0x7   :  { %284 = vmatpush.bf16.msra.mxu1 %v520_v4  ;;  %v507_v18 = vld [vmem:[%s716_s1 + $0x8] sm:$0xff]  ;;  %v506_v21 = vld [vmem:[%s716_s1] sm:$0xff]  ;;  %v384_v27 = vld [vmem:[%s717_s0 + $0xc] sm:$0xf0] }
   0x8   :  { %303 = vmatpush.bf16.msra.mxu2 %v528_v5  ;;  %v515_v19 = vld [vmem:[%s716_s1 + $0x48] sm:$0xff]  ;;  %v514_v22 = vld [vmem:[%s716_s1 + $0x40] sm:$0xff]  ;;  %v502_v29 = vld [vmem:[%s717_s0 + $0x10] sm:$0xf0] }
   0x9   :  { %v523_v20 = vld [vmem:[%s716_s1 + $0x88] sm:$0xff]  ;;  %v522_v23 = vld [vmem:[%s716_s1 + $0x80] sm:$0xff]  ;;  %v394_v30 = vld [vmem:[%s717_s0 + $0x18] sm:$0xf] }
   0xa   :  { %266 = vmatpush.bf16.msra.mxu0 %v511_v6  ;;  %552 = vmatpush.bf16.msra.mxu3 %v511_v6  ;;  %v382_v24 = vld [vmem:[%s717_s0] sm:$0xf]  ;;  %v501_v25 = vld [vmem:[%s717_s0 + $0x8] sm:$0xf0]  ;;  %v500_v26 = vld [vmem:[%s717_s0 + $0x4] sm:$0xf] }
   0xb   :  { %285 = vmatpush.bf16.msra.mxu1 %v519_v7  ;;  %v390_v28 = vld [vmem:[%s717_s0 + $0x8] sm:$0xf]  ;;  %v504_v31 = vld [vmem:[%s717_s0 + $0x20] sm:$0xf0]  ;;  %v383_v32 = vor.u32 %v501_v25, %v382_v24  ;;  %v387_v33 = vor.u32 %v500_v26, %v384_v27  ;;  %v503_v36 = vld [vmem:[%s717_s0 + $0x1c] sm:$0xf] }
   0xc   :  { %304 = vmatpush.bf16.msra.mxu2 %v527_v8  ;;  %v391_v34 = vor.u32 %v502_v29, %v390_v28  ;;  %v395_v35 = vor.u32 %v504_v31, %v394_v30  ;;  %v396_v37 = vld [vmem:[%s717_s0 + $0x24] sm:$0xf0]  ;;  %v402_v38 = vld [vmem:[%s717_s0 + $0x20] sm:$0xf]  ;;  %v505_v39 = vld [vmem:[%s717_s0 + $0x28] sm:$0xf0] }
   0xd   :  { %v399_v40 = vor.u32 %v503_v36, %v396_v37  ;;  %v403_v41 = vor.u32 %v505_v39, %v402_v38  ;;  %v558_v47 = vld [vmem:[%s718_s2] ss:$0 sm:$0xff] }
   0xe   :  { %267 = vmatpush.bf16.msra.mxu0 %v510_v9  ;;  %553 = vmatpush.bf16.msra.mxu3 %v510_v9  ;;  %v559_v51 = vld [vmem:[%s719_s3] ss:$0 sm:$0xff] }
   0xf   :  { %286 = vmatpush.bf16.msra.mxu1 %v518_v10  ;;  %v531_v52 = vld [vmem:[%s720_s4] sm:$0xff]   ;;  %v548_v10 = vld [vmem:[%s720_s4 + $0x8] sm:$0xff]  }
  0x10   :  { %305 = vmatpush.bf16.msra.mxu2 %v526_v11  ;;  %v532_v56 = vunpack.c.l.bf16 %v531_v52  ;;  %v533_v60 = vunpack.c.h.bf16 %v531_v52 }
  0x12   :  { %268 = vmatpush.bf16.msra.mxu0 %v509_v12  ;;  %554 = vmatpush.bf16.msra.mxu3 %v509_v12 }
  0x13   :  { %287 = vmatpush.bf16.msra.mxu1 %v517_v13 }
  0x14   :  { %306 = vmatpush.bf16.msra.mxu2 %v525_v14  ;;  %v536_v14 = vunpack.c.l.bf16 %v548_v10 }
  0x16   :  { %269 = vmatpush.bf16.msra.mxu0 %v508_v15  ;;  %555 = vmatpush.bf16.msra.mxu3 %v508_v15 }
  0x17   :  { %288 = vmatpush.bf16.msra.mxu1 %v516_v16 }
  0x18   :  { %307 = vmatpush.bf16.msra.mxu2 %v524_v17  ;;  %v537_v17 = vunpack.c.h.bf16 %v548_v10 }
  0x1a   :  { %270 = vmatpush.bf16.msra.mxu0 %v507_v18  ;;  %556 = vmatpush.bf16.msra.mxu3 %v507_v18 }
  0x1b   :  { %289 = vmatpush.bf16.msra.mxu1 %v515_v19 }
  0x1c   :  { %308 = vmatpush.bf16.msra.mxu2 %v523_v20 }
  0x1e   :  { %271 = vmatpush.bf16.msra.mxu0 %v506_v21  ;;  %557 = vmatpush.bf16.msra.mxu3 %v506_v21 }
  0x1f   :  { %290 = vmatpush.bf16.msra.mxu1 %v514_v22 }
  0x20   :  { %309 = vmatpush.bf16.msra.mxu2 %v522_v23 }
  0x21   :  { %272 = vmatmul.bf16.vlgmr.msra.gmra.mxu0 %v383_v32  ;;  %277 = vmatmul.bf16.vlgmr.msra.gmra.mxu3 %v395_v35 }
  0x22   :  { %291 = vmatmul.bf16.vlgmr.msra.gmra.mxu1 %v387_v33 }
  0x23   :  { %310 = vmatmul.bf16.vlgmr.msra.gmra.mxu2 %v391_v34 }
  0x32   :  { %296 = vmatmul.bf16.gmra.mxu1 %v399_v40 }
  0x33   :  { %315 = vmatmul.bf16.gmra.mxu2 %v403_v41 }
  0x9e   :  { %v273_v43 = vpop.f32.mrf.mxu0 }
  0x9f   :  { %v292_v42 = vpop.f32.mrf.mxu1 }
  0xa0   :  { %v293_v44 = vadd.f32 %v292_v42, %v273_v43 }
  0xa4   :  { %v278_v61 = vpop.f32.mrf.mxu3 }
  0xa6   :  { %v311_v45 = vpop.f32.mrf.mxu2  ;;  %v275_v49 = vpop.f32.mrf.mxu0 }
  0xa7   :  { %v312_v46 = vadd.f32 %v311_v45, %v293_v44  ;;  %v294_v48 = vpop.f32.mrf.mxu1 }
  0xa8   :  { %v295_v53 = vadd.f32 %v294_v48, %v275_v49 }
  0xa9   :  { %v340_v50 = vmul.f32 %v558_v47, %v312_v46 }
  0xab   :  { %v348_v55 = vadd.f32 %v559_v51, %v340_v50 }
  0xac   :  { %v280_v9 = vpop.f32.mrf.mxu3 }
  0xad   :  { %v360_v62 = vadd.f32 %v532_v56, %v348_v55 }
  0xae   :  { %v313_v54 = vpop.f32.mrf.mxu2 }
  0xaf   :  { %v314_v57 = vadd.f32 %v313_v54, %v295_v53  ;;  %v297_v58 = vpop.f32.mrf.mxu1  ;;  %v364_v3 = vmax.f32 %v360_v62, 0.0 }
  0xb0   :  { %v298_v0 = vadd.f32 %v297_v58, %v278_v61 }
  0xb1   :  { %v341_v59 = vmul.f32 %v558_v47, %v314_v57 }
  0xb3   :  { %v349_v63 = vadd.f32 %v559_v51, %v341_v59 }
  0xb5   :  { %v361_v1 = vadd.f32 %v533_v60, %v349_v63 }
  0xb6   :  { %v316_v2 = vpop.f32.mrf.mxu2 }
  0xb7   :  { %v365_v4 = vmax.f32 %v361_v1, 0.0  ;;  %v317_v5 = vadd.f32 %v316_v2, %v298_v0  ;;  %v299_v7 = vpop.f32.mrf.mxu1 }
  0xb8   :  { %v300_v11 = vadd.f32 %v299_v7, %v280_v9 }
  0xb9   :  { %v541_v6 = vpack.c.bf16 %v365_v4, %v364_v3  ;;  %v342_v8 = vmul.f32 %v558_v47, %v317_v5 }
  0xbb   :  { %542 = vst [vmem:[%s721_s5] sm:$0xff] %v541_v6   ;;  %v350_v13 = vadd.f32 %v559_v51, %v342_v8 }
  0xbd   :  { %v362_v18 = vadd.f32 %v536_v14, %v350_v13 }
  0xbe   :  { %v318_v12 = vpop.f32.mrf.mxu2 }
  0xbf   :  { %v319_v15 = vadd.f32 %v318_v12, %v300_v11  ;;  %v366_v21 = vmax.f32 %v362_v18, 0.0 }
  0xc1   :  { %v343_v16 = vmul.f32 %v558_v47, %v319_v15 }
  0xc3   :  { %v351_v19 = vadd.f32 %v559_v51, %v343_v16 }
  0xc5   :  { %v363_v20 = vadd.f32 %v537_v17, %v351_v19 }
  0xc7   :  { %v367_v22 = vmax.f32 %v363_v20, 0.0 }
  0xc9   :  { %v546_v23 = vpack.c.bf16 %v367_v22, %v366_v21 }
  0xcb   :  { %549 = vst [vmem:[%s721_s5 + $0x8] sm:$0xff] %v546_v23  }

// kernel: _lambda_.19
= control target key start
LH: loop header
LB: loop body
LE: loop exit
PB: predicated region body
PF: predicated region fallthrough
CT: control target
= control target key end

     0   :  { %s524_s1 = inlined_call_operand.vmem [shape: bf16[384,128], index: 1, kind: input, shape index: {}]   ;;  %s525_s0 = inlined_call_operand.vmem [shape: bf16[8,384], index: 0, kind: input, shape index: {}]   ;;  %s526_s2 = inlined_call_operand.vmem [shape: f32[1,128], index: 2, kind: input, shape index: {}]   ;;  %s527_s3 = inlined_call_operand.vmem [shape: f32[1,128], index: 3, kind: input, shape index: {}]   ;;  %s528_s4 = inlined_call_operand.vmem [shape: bf16[8,128], index: 4, kind: output, shape index: {}]  }
   0x1   :  { %v393_v0 = vld [vmem:[%s524_s1 + $0x38] sm:$0xff]  ;;  %v392_v3 = vld [vmem:[%s524_s1 + $0x30] sm:$0xff]  ;;  %v391_v6 = vld [vmem:[%s524_s1 + $0x28] sm:$0xff] }
   0x2   :  { %v401_v1 = vld [vmem:[%s524_s1 + $0x78] sm:$0xff]  ;;  %228 = vmatpush.bf16.msra.mxu0 %v393_v0  ;;  %v400_v4 = vld [vmem:[%s524_s1 + $0x70] sm:$0xff]  ;;  %v399_v7 = vld [vmem:[%s524_s1 + $0x68] sm:$0xff] }
   0x3   :  { %v409_v2 = vld [vmem:[%s524_s1 + $0xb8] sm:$0xff]  ;;  %241 = vmatpush.bf16.msra.mxu1 %v401_v1  ;;  %v408_v5 = vld [vmem:[%s524_s1 + $0xb0] sm:$0xff]  ;;  %v407_v8 = vld [vmem:[%s524_s1 + $0xa8] sm:$0xff] }
   0x4   :  { %254 = vmatpush.bf16.msra.mxu2 %v409_v2  ;;  %v390_v9 = vld [vmem:[%s524_s1 + $0x20] sm:$0xff]  ;;  %v389_v12 = vld [vmem:[%s524_s1 + $0x18] sm:$0xff]  ;;  %v388_v15 = vld [vmem:[%s524_s1 + $0x10] sm:$0xff] }
   0x5   :  { %v398_v10 = vld [vmem:[%s524_s1 + $0x60] sm:$0xff]  ;;  %v397_v13 = vld [vmem:[%s524_s1 + $0x58] sm:$0xff]  ;;  %v396_v16 = vld [vmem:[%s524_s1 + $0x50] sm:$0xff] }
   0x6   :  { %229 = vmatpush.bf16.msra.mxu0 %v392_v3  ;;  %v406_v11 = vld [vmem:[%s524_s1 + $0xa0] sm:$0xff]  ;;  %v405_v14 = vld [vmem:[%s524_s1 + $0x98] sm:$0xff]  ;;  %v404_v17 = vld [vmem:[%s524_s1 + $0x90] sm:$0xff] }
   0x7   :  { %242 = vmatpush.bf16.msra.mxu1 %v400_v4  ;;  %v387_v18 = vld [vmem:[%s524_s1 + $0x8] sm:$0xff]  ;;  %v23_v20 = vld [vmem:[%s525_s0] sm:$0xff] }
   0x8   :  { %255 = vmatpush.bf16.msra.mxu2 %v408_v5  ;;  %v395_v19 = vld [vmem:[%s524_s1 + $0x48] sm:$0xff]  ;;  %v75_v23 = vunpack.c.l.b16 %v23_v20  ;;  %v76_v24 = vunpack.c.h.b16 %v23_v20  ;;  %v386_v25 = vld [vmem:[%s524_s1] sm:$0xff] }
   0x9   :  { %v403_v21 = vld [vmem:[%s524_s1 + $0x88] sm:$0xff]  ;;  %v394_v26 = vld [vmem:[%s524_s1 + $0x40] sm:$0xff] }
   0xa   :  { %230 = vmatpush.bf16.msra.mxu0 %v391_v6  ;;  %v24_v22 = vld [vmem:[%s525_s0 + $0x8] sm:$0xf]  ;;  %v402_v28 = vld [vmem:[%s524_s1 + $0x80] sm:$0xff]  ;;  %v78_v29 = vpack.c.b16 %v75_v23, %v75_v23  ;;  %v79_v30 = vpack.c.b16 %v76_v24, %v76_v24 }
   0xb   :  { %243 = vmatpush.bf16.msra.mxu1 %v399_v7  ;;  %v77_v27 = vunpack.c.l.b16 %v24_v22  ;;  %v410_v35 = vld [vmem:[%s526_s2] ss:$0 sm:$0xff] }
   0xc   :  { %256 = vmatpush.bf16.msra.mxu2 %v407_v8  ;;  %v411_v38 = vld [vmem:[%s527_s3] ss:$0 sm:$0xff] }
   0xd   :  { %v80_v31 = vpack.c.b16 %v77_v27, %v77_v27 }
   0xe   :  { %231 = vmatpush.bf16.msra.mxu0 %v390_v9 }
   0xf   :  { %244 = vmatpush.bf16.msra.mxu1 %v398_v10 }
  0x10   :  { %257 = vmatpush.bf16.msra.mxu2 %v406_v11 }
  0x12   :  { %232 = vmatpush.bf16.msra.mxu0 %v389_v12 }
  0x13   :  { %245 = vmatpush.bf16.msra.mxu1 %v397_v13 }
  0x14   :  { %258 = vmatpush.bf16.msra.mxu2 %v405_v14 }
  0x16   :  { %233 = vmatpush.bf16.msra.mxu0 %v388_v15 }
  0x17   :  { %246 = vmatpush.bf16.msra.mxu1 %v396_v16 }
  0x18   :  { %259 = vmatpush.bf16.msra.mxu2 %v404_v17 }
  0x1a   :  { %234 = vmatpush.bf16.msra.mxu0 %v387_v18 }
  0x1b   :  { %247 = vmatpush.bf16.msra.mxu1 %v395_v19 }
  0x1c   :  { %260 = vmatpush.bf16.msra.mxu2 %v403_v21 }
  0x1e   :  { %235 = vmatpush.bf16.msra.mxu0 %v386_v25 }
  0x1f   :  { %248 = vmatpush.bf16.msra.mxu1 %v394_v26 }
  0x20   :  { %261 = vmatpush.bf16.msra.mxu2 %v402_v28 }
  0x21   :  { %236 = vmatmul.bf16.vlgmr.msra.gmra.mxu0 %v78_v29 }
  0x22   :  { %249 = vmatmul.bf16.vlgmr.msra.gmra.mxu1 %v79_v30 }
  0x23   :  { %262 = vmatmul.bf16.vlgmr.msra.gmra.mxu2 %v80_v31 }
  0x9e   :  { %v237_v32 = vpop.f32.mrf.mxu0 }
  0x9f   :  { %v250_v33 = vpop.f32.mrf.mxu1 }
  0xa0   :  { %v251_v34 = vadd.f32 %v250_v33, %v237_v32 }
  0xa6   :  { %v263_v36 = vpop.f32.mrf.mxu2  ;;  %v239_v39 = vpop.f32.mrf.mxu0 }
  0xa7   :  { %v264_v37 = vadd.f32 %v263_v36, %v251_v34  ;;  %v252_v40 = vpop.f32.mrf.mxu1 }
  0xa9   :  { %v277_v41 = vmul.f32 %v410_v35, %v264_v37 }
  0xab   :  { %v282_v42 = vadd.f32 %v411_v38, %v277_v41 }
  0xad   :  { %v283_v43 = vmax.f32 %v282_v42, 0.0 }
  0xae   :  { %v265_v44 = vpop.f32.mrf.mxu2 }
  0xaf   :  { %v284_v45 = vpack.c.bf16 %v283_v43, %v283_v43 }
  0xb1   :  { %285 = vst [vmem:[%s528_s4] sm:$0xf] %v284_v45 }

// kernel: _lambda_.20
= control target key start
LH: loop header
LB: loop body
LE: loop exit
PB: predicated region body
PF: predicated region fallthrough
CT: control target
= control target key end

     0   :  { %s226_s1 = inlined_call_operand.vmem [shape: bf16[128,128], index: 1, kind: input, shape index: {}]   ;;  %s227_s2 = inlined_call_operand.vmem [shape: f32[1,128], index: 2, kind: input, shape index: {}]   ;;  %s228_s3 = inlined_call_operand.vmem [shape: f32[1,128], index: 3, kind: input, shape index: {}]   ;;  %s229_s0 = inlined_call_operand.vmem [shape: bf16[8,128], index: 0, kind: input, shape index: {}]   ;;  %s230_s4 = inlined_call_operand.vmem [shape: bf16[8,128], index: 4, kind: output, shape index: {}]  }
   0x1   :  { %v162_v0 = vld [vmem:[%s226_s1 + $0x38] sm:$0xff]  ;;  %v161_v1 = vld [vmem:[%s226_s1 + $0x30] sm:$0xff]  ;;  %v160_v2 = vld [vmem:[%s226_s1 + $0x28] sm:$0xff] }
   0x2   :  { %88 = vmatpush.bf16.msra.mxu0 %v162_v0  ;;  %v159_v3 = vld [vmem:[%s226_s1 + $0x20] sm:$0xff]  ;;  %v158_v4 = vld [vmem:[%s226_s1 + $0x18] sm:$0xff]  ;;  %v157_v5 = vld [vmem:[%s226_s1 + $0x10] sm:$0xff] }
   0x3   :  { %v156_v6 = vld [vmem:[%s226_s1 + $0x8] sm:$0xff]  ;;  %v155_v7 = vld [vmem:[%s226_s1] sm:$0xff] }
   0x4   :  { %v23_v8 = vld [vmem:[%s229_s0] sm:$0xf] }
   0x5   :  { %v163_v9 = vld [vmem:[%s227_s2] ss:$0 sm:$0xff] }
   0x6   :  { %89 = vmatpush.bf16.msra.mxu0 %v161_v1  ;;  %v164_v10 = vld [vmem:[%s228_s3] ss:$0 sm:$0xff] }
   0xa   :  { %90 = vmatpush.bf16.msra.mxu0 %v160_v2 }
   0xe   :  { %91 = vmatpush.bf16.msra.mxu0 %v159_v3 }
  0x12   :  { %92 = vmatpush.bf16.msra.mxu0 %v158_v4 }
  0x16   :  { %93 = vmatpush.bf16.msra.mxu0 %v157_v5 }
  0x1a   :  { %94 = vmatpush.bf16.msra.mxu0 %v156_v6 }
  0x1e   :  { %95 = vmatpush.bf16.msra.mxu0 %v155_v7 }
  0x21   :  { %96 = vmatmul.bf16.vlgmr.msra.gmra.mxu0 %v23_v8 }
  0x9e   :  { %v97_v11 = vpop.f32.mrf.mxu0 }
  0x9f   :  { %v111_v12 = vmul.f32 %v163_v9, %v97_v11 }
  0xa1   :  { %v116_v13 = vadd.f32 %v164_v10, %v111_v12 }
  0xa3   :  { %v117_v14 = vpack.c.bf16 %v116_v13, %v116_v13 }
  0xa5   :  { %118 = vst [vmem:[%s230_s4] sm:$0xf] %v117_v14 }
  0xa6   :  { %v99_v15 = vpop.f32.mrf.mxu0 }

// kernel: _lambda_.21
= control target key start
LH: loop header
LB: loop body
LE: loop exit
PB: predicated region body
PF: predicated region fallthrough
CT: control target
= control target key end

     0   :  { %s831_s1 = inlined_call_operand.vmem [shape: bf16[640,128], index: 1, kind: input, shape index: {}]   ;;  %s832_s0 = inlined_call_operand.vmem [shape: bf16[8,640], index: 0, kind: input, shape index: {}]   ;;  %s833_s2 = inlined_call_operand.vmem [shape: f32[1,128], index: 2, kind: input, shape index: {}]   ;;  %s834_s3 = inlined_call_operand.vmem [shape: f32[1,128], index: 3, kind: input, shape index: {}]   ;;  %s835_s4 = inlined_call_operand.vmem [shape: bf16[8,128], index: 4, kind: input, shape index: {}]   ;;  %s836_s5 = inlined_call_operand.vmem [shape: bf16[8,128], index: 5, kind: output, shape index: {}]  }
   0x1   :  { %v625_v0 = vld [vmem:[%s831_s1 + $0x38] sm:$0xff]  ;;  %v624_v3 = vld [vmem:[%s831_s1 + $0x30] sm:$0xff]  ;;  %v623_v8 = vld [vmem:[%s831_s1 + $0x28] sm:$0xff] }
   0x2   :  { %v641_v1 = vld [vmem:[%s831_s1 + $0xb8] sm:$0xff]  ;;  %367 = vmatpush.bf16.msra.mxu0 %v625_v0  ;;  %v640_v5 = vld [vmem:[%s831_s1 + $0xb0] sm:$0xff]  ;;  %v639_v9 = vld [vmem:[%s831_s1 + $0xa8] sm:$0xff] }
   0x3   :  { %v649_v2 = vld [vmem:[%s831_s1 + $0xf8] sm:$0xff]  ;;  %393 = vmatpush.bf16.msra.mxu2 %v641_v1  ;;  %v648_v6 = vld [vmem:[%s831_s1 + $0xf0] sm:$0xff]  ;;  %v647_v10 = vld [vmem:[%s831_s1 + $0xe8] sm:$0xff] }
   0x4   :  { %v633_v4 = vld [vmem:[%s831_s1 + $0x78] sm:$0xff]  ;;  %406 = vmatpush.bf16.msra.mxu3 %v649_v2  ;;  %v632_v7 = vld [vmem:[%s831_s1 + $0x70] sm:$0xff]  ;;  %v631_v11 = vld [vmem:[%s831_s1 + $0x68] sm:$0xff] }
   0x5   :  { %380 = vmatpush.bf16.msra.mxu1 %v633_v4  ;;  %v622_v12 = vld [vmem:[%s831_s1 + $0x20] sm:$0xff]  ;;  %v621_v16 = vld [vmem:[%s831_s1 + $0x18] sm:$0xff]  ;;  %v620_v20 = vld [vmem:[%s831_s1 + $0x10] sm:$0xff] }
   0x6   :  { %368 = vmatpush.bf16.msra.mxu0 %v624_v3  ;;  %v638_v13 = vld [vmem:[%s831_s1 + $0xa0] sm:$0xff]  ;;  %v637_v17 = vld [vmem:[%s831_s1 + $0x98] sm:$0xff]  ;;  %v636_v21 = vld [vmem:[%s831_s1 + $0x90] sm:$0xff] }
   0x7   :  { %394 = vmatpush.bf16.msra.mxu2 %v640_v5  ;;  %v646_v14 = vld [vmem:[%s831_s1 + $0xe0] sm:$0xff]  ;;  %v645_v18 = vld [vmem:[%s831_s1 + $0xd8] sm:$0xff]  ;;  %v644_v22 = vld [vmem:[%s831_s1 + $0xd0] sm:$0xff] }
   0x8   :  { %407 = vmatpush.bf16.msra.mxu3 %v648_v6  ;;  %v630_v15 = vld [vmem:[%s831_s1 + $0x60] sm:$0xff]  ;;  %v629_v19 = vld [vmem:[%s831_s1 + $0x58] sm:$0xff]  ;;  %v628_v23 = vld [vmem:[%s831_s1 + $0x50] sm:$0xff] }
   0x9   :  { %381 = vmatpush.bf16.msra.mxu1 %v632_v7  ;;  %v619_v24 = vld [vmem:[%s831_s1 + $0x8] sm:$0xff]  ;;  %v26_v25 = vld [vmem:[%s832_s0] sm:$0xff]  ;;  %v657_v33 = vld [vmem:[%s831_s1 + $0x138] sm:$0xff] }
   0xa   :  { %369 = vmatpush.bf16.msra.mxu0 %v623_v8  ;;  %v635_v26 = vld [vmem:[%s831_s1 + $0x88] sm:$0xff]  ;;  %v112_v30 = vunpack.c.l.b16 %v26_v25  ;;  %v618_v31 = vld [vmem:[%s831_s1] sm:$0xff]  ;;  %v113_v38 = vunpack.c.h.b16 %v26_v25  ;;  %v656_v41 = vld [vmem:[%s831_s1 + $0x130] sm:$0xff] }
   0xb   :  { %395 = vmatpush.bf16.msra.mxu2 %v639_v9  ;;  %v643_v27 = vld [vmem:[%s831_s1 + $0xc8] sm:$0xff]  ;;  %v634_v34 = vld [vmem:[%s831_s1 + $0x80] sm:$0xff]  ;;  %v653_v46 = vld [vmem:[%s831_s1 + $0x118] sm:$0xff] }
   0xc   :  { %408 = vmatpush.bf16.msra.mxu3 %v647_v10  ;;  %v27_v28 = vld [vmem:[%s832_s0 + $0x8] sm:$0xff]  ;;  %v642_v36 = vld [vmem:[%s831_s1 + $0xc0] sm:$0xff]  ;;  %v117_v39 = vpack.c.b16 %v112_v30, %v112_v30  ;;  %v118_v43 = vpack.c.b16 %v113_v38, %v113_v38  ;;  %v652_v47 = vld [vmem:[%s831_s1 + $0x110] sm:$0xff] }
   0xd   :  { %382 = vmatpush.bf16.msra.mxu1 %v631_v11  ;;  %v627_v29 = vld [vmem:[%s831_s1 + $0x48] sm:$0xff]  ;;  %v114_v32 = vunpack.c.l.b16 %v27_v28  ;;  %v115_v35 = vunpack.c.h.b16 %v27_v28  ;;  %v626_v37 = vld [vmem:[%s831_s1 + $0x40] sm:$0xff]  ;;  %v28_v49 = vld [vmem:[%s832_s0 + $0x10] sm:$0xf] }
   0xe   :  { %370 = vmatpush.bf16.msra.mxu0 %v622_v12  ;;  %v655_v44 = vld [vmem:[%s831_s1 + $0x128] sm:$0xff]  ;;  %v654_v45 = vld [vmem:[%s831_s1 + $0x120] sm:$0xff]  ;;  %v116_v50 = vunpack.c.l.b16 %v28_v49 }
   0xf   :  { %396 = vmatpush.bf16.msra.mxu2 %v638_v13  ;;  %v119_v40 = vpack.c.b16 %v114_v32, %v114_v32  ;;  %v120_v42 = vpack.c.b16 %v115_v35, %v115_v35  ;;  %v651_v48 = vld [vmem:[%s831_s1 + $0x108] sm:$0xff]  ;;  %v650_v51 = vld [vmem:[%s831_s1 + $0x100] sm:$0xff] }
  0x10   :  { %409 = vmatpush.bf16.msra.mxu3 %v646_v14  ;;  %v121_v52 = vpack.c.b16 %v116_v50, %v116_v50  ;;  %v658_v0 = vld [vmem:[%s833_s2] ss:$0 sm:$0xff] }
  0x11   :  { %383 = vmatpush.bf16.msra.mxu1 %v630_v15  ;;  %v448_v2 = vld [vmem:[%s835_s4] sm:$0xf] }
  0x12   :  { %371 = vmatpush.bf16.msra.mxu0 %v621_v16  ;;  %v659_v4 = vld [vmem:[%s834_s3] ss:$0 sm:$0xff]  ;;  %v449_v6 = vunpack.c.l.bf16 %v448_v2 }
  0x13   :  { %397 = vmatpush.bf16.msra.mxu2 %v637_v17 }
  0x14   :  { %410 = vmatpush.bf16.msra.mxu3 %v645_v18 }
  0x15   :  { %384 = vmatpush.bf16.msra.mxu1 %v629_v19 }
  0x16   :  { %372 = vmatpush.bf16.msra.mxu0 %v620_v20 }
  0x17   :  { %398 = vmatpush.bf16.msra.mxu2 %v636_v21 }
  0x18   :  { %411 = vmatpush.bf16.msra.mxu3 %v644_v22 }
  0x19   :  { %385 = vmatpush.bf16.msra.mxu1 %v628_v23 }
  0x1a   :  { %373 = vmatpush.bf16.msra.mxu0 %v619_v24 }
  0x1b   :  { %399 = vmatpush.bf16.msra.mxu2 %v635_v26 }
  0x1c   :  { %412 = vmatpush.bf16.msra.mxu3 %v643_v27 }
  0x1d   :  { %386 = vmatpush.bf16.msra.mxu1 %v627_v29 }
  0x1e   :  { %374 = vmatpush.bf16.msra.mxu0 %v618_v31 }
  0x1f   :  { %400 = vmatpush.bf16.msra.mxu2 %v634_v34 }
  0x20   :  { %413 = vmatpush.bf16.msra.mxu3 %v642_v36 }
  0x21   :  { %387 = vmatpush.bf16.msra.mxu1 %v626_v37  ;;  %375 = vmatmul.bf16.vlgmr.msra.gmra.mxu0 %v117_v39 }
  0x22   :  { %419 = vmatpush.bf16.msrb.mxu0 %v657_v33  ;;  %401 = vmatmul.bf16.vlgmr.msra.gmra.mxu2 %v119_v40 }
  0x23   :  { %414 = vmatmul.bf16.vlgmr.msra.gmra.mxu3 %v120_v42 }
  0x24   :  { %388 = vmatmul.bf16.vlgmr.msra.gmra.mxu1 %v118_v43 }
  0x26   :  { %420 = vmatpush.bf16.msrb.mxu0 %v656_v41 }
  0x2a   :  { %421 = vmatpush.bf16.msrb.mxu0 %v655_v44 }
  0x2e   :  { %422 = vmatpush.bf16.msrb.mxu0 %v654_v45 }
  0x32   :  { %423 = vmatpush.bf16.msrb.mxu0 %v653_v46 }
  0x36   :  { %424 = vmatpush.bf16.msrb.mxu0 %v652_v47 }
  0x3a   :  { %425 = vmatpush.bf16.msrb.mxu0 %v651_v48 }
  0x3e   :  { %426 = vmatpush.bf16.msrb.mxu0 %v650_v51 }
  0x41   :  { %427 = vmatmul.bf16.vlgmr.msrb.gmra.mxu0 %v121_v52 }
  0x9e   :  { %v376_v53 = vpop.f32.mrf.mxu0 }
  0xa1   :  { %v389_v54 = vpop.f32.mrf.mxu1 }
  0xa2   :  { %v390_v61 = vadd.f32 %v389_v54, %v376_v53 }
  0xa5   :  { %v402_v55 = vpop.f32.mrf.mxu2 }
  0xa6   :  { %v378_v56 = vpop.f32.mrf.mxu0  ;;  %v415_v57 = vpop.f32.mrf.mxu3  ;;  %v403_v62 = vadd.f32 %v402_v55, %v390_v61 }
  0xa8   :  { %v416_v63 = vadd.f32 %v415_v57, %v403_v62 }
  0xa9   :  { %v391_v58 = vpop.f32.mrf.mxu1 }
  0xad   :  { %v404_v59 = vpop.f32.mrf.mxu2 }
  0xae   :  { %v417_v60 = vpop.f32.mrf.mxu3 }
  0xbe   :  { %v428_v1 = vpop.f32.mrf.mxu0 }
  0xbf   :  { %v429_v3 = vadd.f32 %v428_v1, %v416_v63 }
  0xc1   :  { %v442_v5 = vmul.f32 %v658_v0, %v429_v3 }
  0xc3   :  { %v447_v7 = vadd.f32 %v659_v4, %v442_v5 }
  0xc5   :  { %v450_v8 = vadd.f32 %v449_v6, %v447_v7 }
  0xc6   :  { %v430_v9 = vpop.f32.mrf.mxu0 }
  0xc7   :  { %v451_v10 = vmax.f32 %v450_v8, 0.0 }
  0xc9   :  { %v452_v11 = vpack.c.bf16 %v451_v10, %v451_v10 }
  0xcb   :  { %453 = vst [vmem:[%s836_s5] sm:$0xf] %v452_v11 }

// kernel: _lambda_.22
= control target key start
LH: loop header
LB: loop body
LE: loop exit
PB: predicated region body
PF: predicated region fallthrough
CT: control target
= control target key end

     0   :  { %s817_s1 = inlined_call_operand.vmem [shape: bf16[640,128], index: 1, kind: input, shape index: {}]   ;;  %s818_s0 = inlined_call_operand.vmem [shape: bf16[8,640], index: 0, kind: input, shape index: {}]   ;;  %s819_s2 = inlined_call_operand.vmem [shape: f32[1,128], index: 2, kind: input, shape index: {}]   ;;  %s820_s3 = inlined_call_operand.vmem [shape: f32[1,128], index: 3, kind: input, shape index: {}]   ;;  %s821_s4 = inlined_call_operand.vmem [shape: bf16[8,128], index: 4, kind: output, shape index: {}]  }
   0x1   :  { %v619_v0 = vld [vmem:[%s817_s1 + $0x38] sm:$0xff]  ;;  %v618_v3 = vld [vmem:[%s817_s1 + $0x30] sm:$0xff]  ;;  %v617_v8 = vld [vmem:[%s817_s1 + $0x28] sm:$0xff] }
   0x2   :  { %v635_v1 = vld [vmem:[%s817_s1 + $0xb8] sm:$0xff]  ;;  %364 = vmatpush.bf16.msra.mxu0 %v619_v0  ;;  %v634_v5 = vld [vmem:[%s817_s1 + $0xb0] sm:$0xff]  ;;  %v633_v9 = vld [vmem:[%s817_s1 + $0xa8] sm:$0xff] }
   0x3   :  { %v643_v2 = vld [vmem:[%s817_s1 + $0xf8] sm:$0xff]  ;;  %390 = vmatpush.bf16.msra.mxu2 %v635_v1  ;;  %v642_v6 = vld [vmem:[%s817_s1 + $0xf0] sm:$0xff]  ;;  %v641_v10 = vld [vmem:[%s817_s1 + $0xe8] sm:$0xff] }
   0x4   :  { %v627_v4 = vld [vmem:[%s817_s1 + $0x78] sm:$0xff]  ;;  %403 = vmatpush.bf16.msra.mxu3 %v643_v2  ;;  %v626_v7 = vld [vmem:[%s817_s1 + $0x70] sm:$0xff]  ;;  %v625_v11 = vld [vmem:[%s817_s1 + $0x68] sm:$0xff] }
   0x5   :  { %377 = vmatpush.bf16.msra.mxu1 %v627_v4  ;;  %v616_v12 = vld [vmem:[%s817_s1 + $0x20] sm:$0xff]  ;;  %v615_v16 = vld [vmem:[%s817_s1 + $0x18] sm:$0xff]  ;;  %v614_v20 = vld [vmem:[%s817_s1 + $0x10] sm:$0xff] }
   0x6   :  { %365 = vmatpush.bf16.msra.mxu0 %v618_v3  ;;  %v632_v13 = vld [vmem:[%s817_s1 + $0xa0] sm:$0xff]  ;;  %v631_v17 = vld [vmem:[%s817_s1 + $0x98] sm:$0xff]  ;;  %v630_v21 = vld [vmem:[%s817_s1 + $0x90] sm:$0xff] }
   0x7   :  { %391 = vmatpush.bf16.msra.mxu2 %v634_v5  ;;  %v640_v14 = vld [vmem:[%s817_s1 + $0xe0] sm:$0xff]  ;;  %v639_v18 = vld [vmem:[%s817_s1 + $0xd8] sm:$0xff]  ;;  %v638_v22 = vld [vmem:[%s817_s1 + $0xd0] sm:$0xff] }
   0x8   :  { %404 = vmatpush.bf16.msra.mxu3 %v642_v6  ;;  %v624_v15 = vld [vmem:[%s817_s1 + $0x60] sm:$0xff]  ;;  %v623_v19 = vld [vmem:[%s817_s1 + $0x58] sm:$0xff]  ;;  %v622_v23 = vld [vmem:[%s817_s1 + $0x50] sm:$0xff] }
   0x9   :  { %378 = vmatpush.bf16.msra.mxu1 %v626_v7  ;;  %v613_v24 = vld [vmem:[%s817_s1 + $0x8] sm:$0xff]  ;;  %v23_v25 = vld [vmem:[%s818_s0] sm:$0xff]  ;;  %v651_v33 = vld [vmem:[%s817_s1 + $0x138] sm:$0xff] }
   0xa   :  { %366 = vmatpush.bf16.msra.mxu0 %v617_v8  ;;  %v629_v26 = vld [vmem:[%s817_s1 + $0x88] sm:$0xff]  ;;  %v109_v30 = vunpack.c.l.b16 %v23_v25  ;;  %v612_v31 = vld [vmem:[%s817_s1] sm:$0xff]  ;;  %v110_v38 = vunpack.c.h.b16 %v23_v25  ;;  %v650_v41 = vld [vmem:[%s817_s1 + $0x130] sm:$0xff] }
   0xb   :  { %392 = vmatpush.bf16.msra.mxu2 %v633_v9  ;;  %v637_v27 = vld [vmem:[%s817_s1 + $0xc8] sm:$0xff]  ;;  %v628_v34 = vld [vmem:[%s817_s1 + $0x80] sm:$0xff]  ;;  %v647_v46 = vld [vmem:[%s817_s1 + $0x118] sm:$0xff] }
   0xc   :  { %405 = vmatpush.bf16.msra.mxu3 %v641_v10  ;;  %v24_v28 = vld [vmem:[%s818_s0 + $0x8] sm:$0xff]  ;;  %v636_v36 = vld [vmem:[%s817_s1 + $0xc0] sm:$0xff]  ;;  %v114_v39 = vpack.c.b16 %v109_v30, %v109_v30  ;;  %v115_v43 = vpack.c.b16 %v110_v38, %v110_v38  ;;  %v646_v47 = vld [vmem:[%s817_s1 + $0x110] sm:$0xff] }
   0xd   :  { %379 = vmatpush.bf16.msra.mxu1 %v625_v11  ;;  %v621_v29 = vld [vmem:[%s817_s1 + $0x48] sm:$0xff]  ;;  %v111_v32 = vunpack.c.l.b16 %v24_v28  ;;  %v112_v35 = vunpack.c.h.b16 %v24_v28  ;;  %v620_v37 = vld [vmem:[%s817_s1 + $0x40] sm:$0xff]  ;;  %v25_v49 = vld [vmem:[%s818_s0 + $0x10] sm:$0xf] }
   0xe   :  { %367 = vmatpush.bf16.msra.mxu0 %v616_v12  ;;  %v649_v44 = vld [vmem:[%s817_s1 + $0x128] sm:$0xff]  ;;  %v648_v45 = vld [vmem:[%s817_s1 + $0x120] sm:$0xff]  ;;  %v113_v50 = vunpack.c.l.b16 %v25_v49 }
   0xf   :  { %393 = vmatpush.bf16.msra.mxu2 %v632_v13  ;;  %v116_v40 = vpack.c.b16 %v111_v32, %v111_v32  ;;  %v117_v42 = vpack.c.b16 %v112_v35, %v112_v35  ;;  %v645_v48 = vld [vmem:[%s817_s1 + $0x108] sm:$0xff]  ;;  %v644_v51 = vld [vmem:[%s817_s1 + $0x100] sm:$0xff] }
  0x10   :  { %406 = vmatpush.bf16.msra.mxu3 %v640_v14  ;;  %v118_v52 = vpack.c.b16 %v113_v50, %v113_v50  ;;  %v652_v0 = vld [vmem:[%s819_s2] ss:$0 sm:$0xff] }
  0x11   :  { %380 = vmatpush.bf16.msra.mxu1 %v624_v15  ;;  %v653_v3 = vld [vmem:[%s820_s3] ss:$0 sm:$0xff] }
  0x12   :  { %368 = vmatpush.bf16.msra.mxu0 %v615_v16 }
  0x13   :  { %394 = vmatpush.bf16.msra.mxu2 %v631_v17 }
  0x14   :  { %407 = vmatpush.bf16.msra.mxu3 %v639_v18 }
  0x15   :  { %381 = vmatpush.bf16.msra.mxu1 %v623_v19 }
  0x16   :  { %369 = vmatpush.bf16.msra.mxu0 %v614_v20 }
  0x17   :  { %395 = vmatpush.bf16.msra.mxu2 %v630_v21 }
  0x18   :  { %408 = vmatpush.bf16.msra.mxu3 %v638_v22 }
  0x19   :  { %382 = vmatpush.bf16.msra.mxu1 %v622_v23 }
  0x1a   :  { %370 = vmatpush.bf16.msra.mxu0 %v613_v24 }
  0x1b   :  { %396 = vmatpush.bf16.msra.mxu2 %v629_v26 }
  0x1c   :  { %409 = vmatpush.bf16.msra.mxu3 %v637_v27 }
  0x1d   :  { %383 = vmatpush.bf16.msra.mxu1 %v621_v29 }
  0x1e   :  { %371 = vmatpush.bf16.msra.mxu0 %v612_v31 }
  0x1f   :  { %397 = vmatpush.bf16.msra.mxu2 %v628_v34 }
  0x20   :  { %410 = vmatpush.bf16.msra.mxu3 %v636_v36 }
  0x21   :  { %384 = vmatpush.bf16.msra.mxu1 %v620_v37  ;;  %372 = vmatmul.bf16.vlgmr.msra.gmra.mxu0 %v114_v39 }
  0x22   :  { %416 = vmatpush.bf16.msrb.mxu0 %v651_v33  ;;  %398 = vmatmul.bf16.vlgmr.msra.gmra.mxu2 %v116_v40 }
  0x23   :  { %411 = vmatmul.bf16.vlgmr.msra.gmra.mxu3 %v117_v42 }
  0x24   :  { %385 = vmatmul.bf16.vlgmr.msra.gmra.mxu1 %v115_v43 }
  0x26   :  { %417 = vmatpush.bf16.msrb.mxu0 %v650_v41 }
  0x2a   :  { %418 = vmatpush.bf16.msrb.mxu0 %v649_v44 }
  0x2e   :  { %419 = vmatpush.bf16.msrb.mxu0 %v648_v45 }
  0x32   :  { %420 = vmatpush.bf16.msrb.mxu0 %v647_v46 }
  0x36   :  { %421 = vmatpush.bf16.msrb.mxu0 %v646_v47 }
  0x3a   :  { %422 = vmatpush.bf16.msrb.mxu0 %v645_v48 }
  0x3e   :  { %423 = vmatpush.bf16.msrb.mxu0 %v644_v51 }
  0x41   :  { %424 = vmatmul.bf16.vlgmr.msrb.gmra.mxu0 %v118_v52 }
  0x9e   :  { %v373_v53 = vpop.f32.mrf.mxu0 }
  0xa1   :  { %v386_v54 = vpop.f32.mrf.mxu1 }
  0xa2   :  { %v387_v61 = vadd.f32 %v386_v54, %v373_v53 }
  0xa5   :  { %v399_v55 = vpop.f32.mrf.mxu2 }
  0xa6   :  { %v375_v56 = vpop.f32.mrf.mxu0  ;;  %v412_v57 = vpop.f32.mrf.mxu3  ;;  %v400_v62 = vadd.f32 %v399_v55, %v387_v61 }
  0xa8   :  { %v413_v63 = vadd.f32 %v412_v57, %v400_v62 }
  0xa9   :  { %v388_v58 = vpop.f32.mrf.mxu1 }
  0xad   :  { %v401_v59 = vpop.f32.mrf.mxu2 }
  0xae   :  { %v414_v60 = vpop.f32.mrf.mxu3 }
  0xbe   :  { %v425_v1 = vpop.f32.mrf.mxu0 }
  0xbf   :  { %v426_v2 = vadd.f32 %v425_v1, %v413_v63 }
  0xc1   :  { %v439_v4 = vmul.f32 %v652_v0, %v426_v2 }
  0xc3   :  { %v444_v5 = vadd.f32 %v653_v3, %v439_v4 }
  0xc5   :  { %v445_v6 = vmax.f32 %v444_v5, 0.0 }
  0xc6   :  { %v427_v7 = vpop.f32.mrf.mxu0 }
  0xc7   :  { %v446_v8 = vpack.c.bf16 %v445_v6, %v445_v6 }
  0xc9   :  { %447 = vst [vmem:[%s821_s4] sm:$0xf] %v446_v8 }

// kernel: _lambda_.25
= control target key start
LH: loop header
LB: loop body
LE: loop exit
PB: predicated region body
PF: predicated region fallthrough
CT: control target
= control target key end

     0   :  { %s140_s1 = inlined_call_operand.vmem [shape: f32[128,128], index: 1, kind: input, shape index: {}]   ;;  %s141_s2 = inlined_call_operand.vmem [shape: f32[1,128], index: 2, kind: input, shape index: {}]   ;;  %s142_s0 = inlined_call_operand.vmem [shape: f32[1,8,128], index: 0, kind: input, shape index: {}]   ;;  %s143_s3 = inlined_call_operand.vmem [shape: f32[8,128], index: 3, kind: output, shape index: {}]  }
   0x1   :  { %v31_v0 = vld [vmem:[%s140_s1 + $0x78] sm:$0xff]  ;;  %v30_v1 = vld [vmem:[%s140_s1 + $0x70] sm:$0xff]  ;;  %v29_v2 = vld [vmem:[%s140_s1 + $0x68] sm:$0xff] }
   0x2   :  { %36 = vmatpush.msra.mxu0 %v31_v0  ;;  %v28_v3 = vld [vmem:[%s140_s1 + $0x60] sm:$0xff]  ;;  %v27_v4 = vld [vmem:[%s140_s1 + $0x58] sm:$0xff]  ;;  %v26_v5 = vld [vmem:[%s140_s1 + $0x50] sm:$0xff] }
   0x3   :  { %v25_v6 = vld [vmem:[%s140_s1 + $0x48] sm:$0xff]  ;;  %v24_v7 = vld [vmem:[%s140_s1 + $0x40] sm:$0xff]  ;;  %v23_v8 = vld [vmem:[%s140_s1 + $0x38] sm:$0xff] }
   0x4   :  { %37 = vmatpush.msra.mxu0 %v30_v1  ;;  %v22_v9 = vld [vmem:[%s140_s1 + $0x30] sm:$0xff]  ;;  %v21_v10 = vld [vmem:[%s140_s1 + $0x28] sm:$0xff]  ;;  %v20_v11 = vld [vmem:[%s140_s1 + $0x20] sm:$0xff] }
   0x5   :  { %v19_v12 = vld [vmem:[%s140_s1 + $0x18] sm:$0xff]  ;;  %v18_v13 = vld [vmem:[%s140_s1 + $0x10] sm:$0xff]  ;;  %v17_v14 = vld [vmem:[%s140_s1 + $0x8] sm:$0xff] }
   0x6   :  { %38 = vmatpush.msra.mxu0 %v29_v2  ;;  %v16_v15 = vld [vmem:[%s140_s1] sm:$0xff] }
   0x7   :  { %v14_v16 = vld [vmem:[%s142_s0] sm:$0xff] }
   0x8   :  { %39 = vmatpush.msra.mxu0 %v28_v3  ;;  %v62_v17 = vld [vmem:[%s141_s2] ss:$0 sm:$0xff] }
   0xa   :  { %40 = vmatpush.msra.mxu0 %v27_v4 }
   0xc   :  { %41 = vmatpush.msra.mxu0 %v26_v5 }
   0xe   :  { %42 = vmatpush.msra.mxu0 %v25_v6 }
  0x10   :  { %43 = vmatpush.msra.mxu0 %v24_v7 }
  0x12   :  { %44 = vmatpush.msra.mxu0 %v23_v8 }
  0x14   :  { %45 = vmatpush.msra.mxu0 %v22_v9 }
  0x16   :  { %46 = vmatpush.msra.mxu0 %v21_v10 }
  0x18   :  { %47 = vmatpush.msra.mxu0 %v20_v11 }
  0x1a   :  { %48 = vmatpush.msra.mxu0 %v19_v12 }
  0x1c   :  { %49 = vmatpush.msra.mxu0 %v18_v13 }
  0x1e   :  { %50 = vmatpush.msra.mxu0 %v17_v14 }
  0x20   :  { %51 = vmatpush.msra.mxu0 %v16_v15 }
  0x21   :  { %52 = vmatmul.f32.vlgmr.msra.gmra.mxu0 %v14_v16 }
  0x9e   :  { %v53_v18 = vpop.f32.mrf.mxu0 }
  0x9f   :  { %v54_v19 = vadd.f32 %v62_v17, %v53_v18 }
  0xa1   :  { %v56_v20 = vmax.f32 %v54_v19, 0.0 }
  0xa3   :  { %57 = vst [vmem:[%s143_s3] sm:$0xff] %v56_v20 }

// kernel: _lambda_.24
= control target key start
LH: loop header
LB: loop body
LE: loop exit
PB: predicated region body
PF: predicated region fallthrough
CT: control target
= control target key end

     0   :  { %s1417_s1 = inlined_call_operand.vmem [shape: bf16[1152,128], index: 1, kind: input, shape index: {}]   ;;  %s1418_s0 = inlined_call_operand.vmem [shape: bf16[8,1152], index: 0, kind: input, shape index: {}]   ;;  %s1419_s2 = inlined_call_operand.vmem [shape: f32[1,128], index: 2, kind: input, shape index: {}]   ;;  %s1420_s3 = inlined_call_operand.vmem [shape: f32[1,128], index: 3, kind: input, shape index: {}]   ;;  %s1421_s4 = inlined_call_operand.vmem [shape: bf16[8,128], index: 4, kind: input, shape index: {}]   ;;  %s1422_s5 = inlined_call_operand.vmem [shape: bf16[8,128], index: 5, kind: output, shape index: {}]  }
   0x1   :  { %v1077_v0 = vld [vmem:[%s1417_s1 + $0x38] sm:$0xff]  ;;  %v1076_v4 = vld [vmem:[%s1417_s1 + $0x30] sm:$0xff]  ;;  %v1075_v8 = vld [vmem:[%s1417_s1 + $0x28] sm:$0xff] }
   0x2   :  { %v1093_v1 = vld [vmem:[%s1417_s1 + $0xb8] sm:$0xff]  ;;  %639 = vmatpush.bf16.msra.mxu0 %v1077_v0  ;;  %v1092_v5 = vld [vmem:[%s1417_s1 + $0xb0] sm:$0xff]  ;;  %v1091_v9 = vld [vmem:[%s1417_s1 + $0xa8] sm:$0xff] }
   0x3   :  { %v1101_v2 = vld [vmem:[%s1417_s1 + $0xf8] sm:$0xff]  ;;  %665 = vmatpush.bf16.msra.mxu2 %v1093_v1  ;;  %v1100_v6 = vld [vmem:[%s1417_s1 + $0xf0] sm:$0xff]  ;;  %v1099_v10 = vld [vmem:[%s1417_s1 + $0xe8] sm:$0xff] }
   0x4   :  { %v1085_v3 = vld [vmem:[%s1417_s1 + $0x78] sm:$0xff]  ;;  %678 = vmatpush.bf16.msra.mxu3 %v1101_v2  ;;  %v1084_v7 = vld [vmem:[%s1417_s1 + $0x70] sm:$0xff]  ;;  %v1083_v11 = vld [vmem:[%s1417_s1 + $0x68] sm:$0xff] }
   0x5   :  { %652 = vmatpush.bf16.msra.mxu1 %v1085_v3  ;;  %v1074_v12 = vld [vmem:[%s1417_s1 + $0x20] sm:$0xff]  ;;  %v1073_v16 = vld [vmem:[%s1417_s1 + $0x18] sm:$0xff]  ;;  %v1072_v20 = vld [vmem:[%s1417_s1 + $0x10] sm:$0xff] }
   0x6   :  { %640 = vmatpush.bf16.msra.mxu0 %v1076_v4  ;;  %v1090_v13 = vld [vmem:[%s1417_s1 + $0xa0] sm:$0xff]  ;;  %v1089_v17 = vld [vmem:[%s1417_s1 + $0x98] sm:$0xff]  ;;  %v1088_v21 = vld [vmem:[%s1417_s1 + $0x90] sm:$0xff] }
   0x7   :  { %666 = vmatpush.bf16.msra.mxu2 %v1092_v5  ;;  %v1098_v14 = vld [vmem:[%s1417_s1 + $0xe0] sm:$0xff]  ;;  %v1097_v18 = vld [vmem:[%s1417_s1 + $0xd8] sm:$0xff]  ;;  %v1096_v22 = vld [vmem:[%s1417_s1 + $0xd0] sm:$0xff] }
   0x8   :  { %679 = vmatpush.bf16.msra.mxu3 %v1100_v6  ;;  %v1082_v15 = vld [vmem:[%s1417_s1 + $0x60] sm:$0xff]  ;;  %v1081_v19 = vld [vmem:[%s1417_s1 + $0x58] sm:$0xff]  ;;  %v1080_v23 = vld [vmem:[%s1417_s1 + $0x50] sm:$0xff] }
   0x9   :  { %653 = vmatpush.bf16.msra.mxu1 %v1084_v7  ;;  %v1071_v24 = vld [vmem:[%s1417_s1 + $0x8] sm:$0xff]  ;;  %v26_v29 = vld [vmem:[%s1418_s0] sm:$0xff]  ;;  %v1109_v34 = vld [vmem:[%s1417_s1 + $0x138] sm:$0xff] }
   0xa   :  { %641 = vmatpush.bf16.msra.mxu0 %v1075_v8  ;;  %v1087_v25 = vld [vmem:[%s1417_s1 + $0x88] sm:$0xff]  ;;  %v1070_v30 = vld [vmem:[%s1417_s1] sm:$0xff]  ;;  %v180_v33 = vunpack.c.l.b16 %v26_v29  ;;  %v1125_v35 = vld [vmem:[%s1417_s1 + $0x1b8] sm:$0xff]  ;;  %v181_v39 = vunpack.c.h.b16 %v26_v29 }
   0xb   :  { %667 = vmatpush.bf16.msra.mxu2 %v1091_v9  ;;  %v1095_v26 = vld [vmem:[%s1417_s1 + $0xc8] sm:$0xff]  ;;  %v1086_v31 = vld [vmem:[%s1417_s1 + $0x80] sm:$0xff]  ;;  %v1133_v40 = vld [vmem:[%s1417_s1 + $0x1f8] sm:$0xff] }
   0xc   :  { %680 = vmatpush.bf16.msra.mxu3 %v1099_v10  ;;  %v1079_v27 = vld [vmem:[%s1417_s1 + $0x48] sm:$0xff]  ;;  %v1094_v36 = vld [vmem:[%s1417_s1 + $0xc0] sm:$0xff]  ;;  %v1117_v41 = vld [vmem:[%s1417_s1 + $0x178] sm:$0xff]  ;;  %v189_v43 = vpack.c.b16 %v180_v33, %v180_v33  ;;  %v190_v47 = vpack.c.b16 %v181_v39, %v181_v39 }
   0xd   :  { %654 = vmatpush.bf16.msra.mxu1 %v1083_v11  ;;  %v27_v28 = vld [vmem:[%s1418_s0 + $0x8] sm:$0xff]  ;;  %v1078_v37 = vld [vmem:[%s1417_s1 + $0x40] sm:$0xff]  ;;  %v1108_v44 = vld [vmem:[%s1417_s1 + $0x130] sm:$0xff] }
   0xe   :  { %642 = vmatpush.bf16.msra.mxu0 %v1074_v12  ;;  %v182_v32 = vunpack.c.l.b16 %v27_v28  ;;  %v183_v38 = vunpack.c.h.b16 %v27_v28  ;;  %v1124_v45 = vld [vmem:[%s1417_s1 + $0x1b0] sm:$0xff]  ;;  %v1107_v50 = vld [vmem:[%s1417_s1 + $0x128] sm:$0xff]  ;;  %v1106_v54 = vld [vmem:[%s1417_s1 + $0x120] sm:$0xff] }
   0xf   :  { %668 = vmatpush.bf16.msra.mxu2 %v1090_v13  ;;  %v1132_v48 = vld [vmem:[%s1417_s1 + $0x1f0] sm:$0xff]  ;;  %v1123_v51 = vld [vmem:[%s1417_s1 + $0x1a8] sm:$0xff]  ;;  %v1122_v55 = vld [vmem:[%s1417_s1 + $0x1a0] sm:$0xff] }
  0x10   :  { %681 = vmatpush.bf16.msra.mxu3 %v1098_v14  ;;  %v191_v42 = vpack.c.b16 %v182_v32, %v182_v32  ;;  %v192_v46 = vpack.c.b16 %v183_v38, %v183_v38  ;;  %v1116_v49 = vld [vmem:[%s1417_s1 + $0x170] sm:$0xff]  ;;  %v1131_v52 = vld [vmem:[%s1417_s1 + $0x1e8] sm:$0xff]  ;;  %v1130_v56 = vld [vmem:[%s1417_s1 + $0x1e0] sm:$0xff] }
  0x11   :  { %655 = vmatpush.bf16.msra.mxu1 %v1082_v15  ;;  %v1115_v53 = vld [vmem:[%s1417_s1 + $0x168] sm:$0xff]  ;;  %v1114_v57 = vld [vmem:[%s1417_s1 + $0x160] sm:$0xff]  ;;  %v1105_v58 = vld [vmem:[%s1417_s1 + $0x118] sm:$0xff] }
  0x12   :  { %643 = vmatpush.bf16.msra.mxu0 %v1073_v16  ;;  %v1121_v59 = vld [vmem:[%s1417_s1 + $0x198] sm:$0xff]  ;;  %v1104_v62 = vld [vmem:[%s1417_s1 + $0x110] sm:$0xff]  ;;  %v1103_v2 = vld [vmem:[%s1417_s1 + $0x108] sm:$0xff] }
  0x13   :  { %669 = vmatpush.bf16.msra.mxu2 %v1089_v17  ;;  %v1129_v60 = vld [vmem:[%s1417_s1 + $0x1d8] sm:$0xff]  ;;  %v1120_v63 = vld [vmem:[%s1417_s1 + $0x190] sm:$0xff]  ;;  %v1119_v3 = vld [vmem:[%s1417_s1 + $0x188] sm:$0xff] }
  0x14   :  { %682 = vmatpush.bf16.msra.mxu3 %v1097_v18  ;;  %v1113_v61 = vld [vmem:[%s1417_s1 + $0x158] sm:$0xff]  ;;  %v1128_v0 = vld [vmem:[%s1417_s1 + $0x1d0] sm:$0xff]  ;;  %v1127_v6 = vld [vmem:[%s1417_s1 + $0x1c8] sm:$0xff] }
  0x15   :  { %656 = vmatpush.bf16.msra.mxu1 %v1081_v19  ;;  %v1112_v1 = vld [vmem:[%s1417_s1 + $0x150] sm:$0xff]  ;;  %v29_v4 = vld [vmem:[%s1418_s0 + $0x18] sm:$0xff]  ;;  %v1111_v7 = vld [vmem:[%s1417_s1 + $0x148] sm:$0xff] }
  0x16   :  { %644 = vmatpush.bf16.msra.mxu0 %v1072_v20  ;;  %v28_v5 = vld [vmem:[%s1418_s0 + $0x10] sm:$0xff]  ;;  %v186_v8 = vunpack.c.l.b16 %v29_v4  ;;  %v1102_v10 = vld [vmem:[%s1417_s1 + $0x100] sm:$0xff]  ;;  %v1141_v12 = vld [vmem:[%s1417_s1 + $0x238] sm:$0xff]  ;;  %v187_v13 = vunpack.c.h.b16 %v29_v4 }
  0x17   :  { %670 = vmatpush.bf16.msra.mxu2 %v1088_v21  ;;  %v184_v9 = vunpack.c.l.b16 %v28_v5  ;;  %v1118_v11 = vld [vmem:[%s1417_s1 + $0x180] sm:$0xff]  ;;  %v185_v16 = vunpack.c.h.b16 %v28_v5  ;;  %v1140_v19 = vld [vmem:[%s1417_s1 + $0x230] sm:$0xff] }
  0x18   :  { %683 = vmatpush.bf16.msra.mxu3 %v1096_v22  ;;  %v1126_v14 = vld [vmem:[%s1417_s1 + $0x1c0] sm:$0xff]  ;;  %v195_v17 = vpack.c.b16 %v186_v8, %v186_v8  ;;  %v196_v20 = vpack.c.b16 %v187_v13, %v187_v13  ;;  %v1139_v22 = vld [vmem:[%s1417_s1 + $0x228] sm:$0xff] }
  0x19   :  { %657 = vmatpush.bf16.msra.mxu1 %v1080_v23  ;;  %v1110_v15 = vld [vmem:[%s1417_s1 + $0x140] sm:$0xff]  ;;  %v193_v18 = vpack.c.b16 %v184_v9, %v184_v9  ;;  %v194_v21 = vpack.c.b16 %v185_v16, %v185_v16 }
  0x1a   :  { %645 = vmatpush.bf16.msra.mxu0 %v1071_v24  ;;  %v1138_v23 = vld [vmem:[%s1417_s1 + $0x220] sm:$0xff]  ;;  %v1137_v24 = vld [vmem:[%s1417_s1 + $0x218] sm:$0xff] }
  0x1b   :  { %671 = vmatpush.bf16.msra.mxu2 %v1087_v25  ;;  %v1136_v25 = vld [vmem:[%s1417_s1 + $0x210] sm:$0xff]  ;;  %v1134_v29 = vld [vmem:[%s1417_s1 + $0x200] sm:$0xff] }
  0x1c   :  { %684 = vmatpush.bf16.msra.mxu3 %v1095_v26  ;;  %v1135_v26 = vld [vmem:[%s1417_s1 + $0x208] sm:$0xff] }
  0x1d   :  { %658 = vmatpush.bf16.msra.mxu1 %v1079_v27  ;;  %v30_v27 = vld [vmem:[%s1418_s0 + $0x20] sm:$0xf] }
  0x1e   :  { %646 = vmatpush.bf16.msra.mxu0 %v1070_v30  ;;  %v188_v28 = vunpack.c.l.b16 %v30_v27 }
  0x1f   :  { %672 = vmatpush.bf16.msra.mxu2 %v1086_v31 }
  0x20   :  { %685 = vmatpush.bf16.msra.mxu3 %v1094_v36  ;;  %v197_v30 = vpack.c.b16 %v188_v28, %v188_v28 }
  0x21   :  { %659 = vmatpush.bf16.msra.mxu1 %v1078_v37  ;;  %647 = vmatmul.bf16.vlgmr.msra.gmra.mxu0 %v189_v43 }
  0x22   :  { %691 = vmatpush.bf16.msrb.mxu0 %v1109_v34  ;;  %673 = vmatmul.bf16.vlgmr.msra.gmra.mxu2 %v191_v42 }
  0x23   :  { %717 = vmatpush.bf16.msrb.mxu2 %v1125_v35  ;;  %686 = vmatmul.bf16.vlgmr.msra.gmra.mxu3 %v192_v46 }
  0x24   :  { %730 = vmatpush.bf16.msrb.mxu3 %v1133_v40  ;;  %660 = vmatmul.bf16.vlgmr.msra.gmra.mxu1 %v190_v47 }
  0x25   :  { %704 = vmatpush.bf16.msrb.mxu1 %v1117_v41 }
  0x26   :  { %692 = vmatpush.bf16.msrb.mxu0 %v1108_v44 }
  0x27   :  { %718 = vmatpush.bf16.msrb.mxu2 %v1124_v45 }
  0x28   :  { %731 = vmatpush.bf16.msrb.mxu3 %v1132_v48 }
  0x29   :  { %705 = vmatpush.bf16.msrb.mxu1 %v1116_v49 }
  0x2a   :  { %693 = vmatpush.bf16.msrb.mxu0 %v1107_v50 }
  0x2b   :  { %719 = vmatpush.bf16.msrb.mxu2 %v1123_v51 }
  0x2c   :  { %732 = vmatpush.bf16.msrb.mxu3 %v1131_v52 }
  0x2d   :  { %706 = vmatpush.bf16.msrb.mxu1 %v1115_v53 }
  0x2e   :  { %694 = vmatpush.bf16.msrb.mxu0 %v1106_v54  ;;  %v1142_v54 = vld [vmem:[%s1419_s2] ss:$0 sm:$0xff] }
  0x2f   :  { %720 = vmatpush.bf16.msrb.mxu2 %v1122_v55 }
  0x30   :  { %733 = vmatpush.bf16.msrb.mxu3 %v1130_v56  ;;  %v772_v56 = vld [vmem:[%s1421_s4] sm:$0xf] }
  0x31   :  { %707 = vmatpush.bf16.msrb.mxu1 %v1114_v57 }
  0x32   :  { %695 = vmatpush.bf16.msrb.mxu0 %v1105_v58  ;;  %v1143_v58 = vld [vmem:[%s1420_s3] ss:$0 sm:$0xff] }
  0x33   :  { %721 = vmatpush.bf16.msrb.mxu2 %v1121_v59 }
  0x34   :  { %734 = vmatpush.bf16.msrb.mxu3 %v1129_v60  ;;  %v773_v60 = vunpack.c.l.bf16 %v772_v56 }
  0x35   :  { %708 = vmatpush.bf16.msrb.mxu1 %v1113_v61 }
  0x36   :  { %696 = vmatpush.bf16.msrb.mxu0 %v1104_v62 }
  0x37   :  { %722 = vmatpush.bf16.msrb.mxu2 %v1120_v63 }
  0x38   :  { %735 = vmatpush.bf16.msrb.mxu3 %v1128_v0 }
  0x39   :  { %709 = vmatpush.bf16.msrb.mxu1 %v1112_v1 }
  0x3a   :  { %697 = vmatpush.bf16.msrb.mxu0 %v1103_v2 }
  0x3b   :  { %723 = vmatpush.bf16.msrb.mxu2 %v1119_v3 }
  0x3c   :  { %736 = vmatpush.bf16.msrb.mxu3 %v1127_v6 }
  0x3d   :  { %710 = vmatpush.bf16.msrb.mxu1 %v1111_v7 }
  0x3e   :  { %698 = vmatpush.bf16.msrb.mxu0 %v1102_v10 }
  0x3f   :  { %724 = vmatpush.bf16.msrb.mxu2 %v1118_v11 }
  0x40   :  { %737 = vmatpush.bf16.msrb.mxu3 %v1126_v14 }
  0x41   :  { %711 = vmatpush.bf16.msrb.mxu1 %v1110_v15  ;;  %699 = vmatmul.bf16.vlgmr.msrb.gmra.mxu0 %v193_v18 }
  0x42   :  { %743 = vmatpush.bf16.msra.mxu0 %v1141_v12  ;;  %725 = vmatmul.bf16.vlgmr.msrb.gmra.mxu2 %v195_v17 }
  0x43   :  { %738 = vmatmul.bf16.vlgmr.msrb.gmra.mxu3 %v196_v20 }
  0x44   :  { %712 = vmatmul.bf16.vlgmr.msrb.gmra.mxu1 %v194_v21 }
  0x46   :  { %744 = vmatpush.bf16.msra.mxu0 %v1140_v19 }
  0x4a   :  { %745 = vmatpush.bf16.msra.mxu0 %v1139_v22 }
  0x4e   :  { %746 = vmatpush.bf16.msra.mxu0 %v1138_v23 }
  0x52   :  { %747 = vmatpush.bf16.msra.mxu0 %v1137_v24 }
  0x56   :  { %748 = vmatpush.bf16.msra.mxu0 %v1136_v25 }
  0x5a   :  { %749 = vmatpush.bf16.msra.mxu0 %v1135_v26 }
  0x5e   :  { %750 = vmatpush.bf16.msra.mxu0 %v1134_v29 }
  0x61   :  { %751 = vmatmul.bf16.vlgmr.msra.gmra.mxu0 %v197_v30 }
  0x9e   :  { %v648_v31 = vpop.f32.mrf.mxu0 }
  0xa1   :  { %v661_v32 = vpop.f32.mrf.mxu1 }
  0xa2   :  { %v662_v41 = vadd.f32 %v661_v32, %v648_v31 }
  0xa5   :  { %v674_v33 = vpop.f32.mrf.mxu2 }
  0xa6   :  { %v687_v34 = vpop.f32.mrf.mxu3  ;;  %v650_v35 = vpop.f32.mrf.mxu0  ;;  %v675_v43 = vadd.f32 %v674_v33, %v662_v41 }
  0xa8   :  { %v688_v47 = vadd.f32 %v687_v34, %v675_v43 }
  0xa9   :  { %v663_v36 = vpop.f32.mrf.mxu1 }
  0xad   :  { %v676_v37 = vpop.f32.mrf.mxu2 }
  0xae   :  { %v689_v38 = vpop.f32.mrf.mxu3 }
  0xbe   :  { %v700_v39 = vpop.f32.mrf.mxu0 }
  0xbf   :  { %v701_v49 = vadd.f32 %v700_v39, %v688_v47 }
  0xc1   :  { %v713_v40 = vpop.f32.mrf.mxu1 }
  0xc2   :  { %v714_v51 = vadd.f32 %v713_v40, %v701_v49 }
  0xc5   :  { %v726_v42 = vpop.f32.mrf.mxu2 }
  0xc6   :  { %v739_v44 = vpop.f32.mrf.mxu3  ;;  %v702_v45 = vpop.f32.mrf.mxu0  ;;  %v727_v52 = vadd.f32 %v726_v42, %v714_v51 }
  0xc8   :  { %v740_v53 = vadd.f32 %v739_v44, %v727_v52 }
  0xc9   :  { %v715_v46 = vpop.f32.mrf.mxu1 }
  0xcd   :  { %v728_v48 = vpop.f32.mrf.mxu2 }
  0xce   :  { %v741_v50 = vpop.f32.mrf.mxu3 }
  0xde   :  { %v752_v55 = vpop.f32.mrf.mxu0 }
  0xdf   :  { %v753_v57 = vadd.f32 %v752_v55, %v740_v53 }
  0xe1   :  { %v766_v59 = vmul.f32 %v1142_v54, %v753_v57 }
  0xe3   :  { %v771_v61 = vadd.f32 %v1143_v58, %v766_v59 }
  0xe5   :  { %v774_v62 = vadd.f32 %v773_v60, %v771_v61 }
  0xe6   :  { %v754_v63 = vpop.f32.mrf.mxu0 }
  0xe7   :  { %v775_v0 = vmax.f32 %v774_v62, 0.0 }
  0xe9   :  { %v776_v1 = vpack.c.bf16 %v775_v0, %v775_v0 }
  0xeb   :  { %777 = vst [vmem:[%s1422_s5] sm:$0xf] %v776_v1 }

</bundles_post_ra>
